<compile_context>
chip_gen: v6e
topology: v6e:2x2x1
jax: 0.10.0
libtpu: 0.0.40
codegen_flags: <defaults>
</compile_context>

<pallas_src>
import math
import functools

import jax
import jax.numpy as jnp
from jax import lax
from jax.experimental import pallas as pl
from jax.experimental.pallas import tpu as pltpu

GAIN = 0.2
LEAKINESS = 0.2


def _downsample_block_kernel(x_ref, w1_ref, b1_ref, w2_ref, b2_ref, pool_ref, o_ref,
                             h1pad_ref, *, H, W, C_in, C_mid, scale1, scale2, leak):
    """One batch element: conv1(3x3,p=1) -> lrelu -> conv2(3x3,p=1) -> lrelu -> avgpool 2x2."""

    def conv3x3(load_tap, w_ref, b_ref, scale):
        # 3x3 conv as 9 tap matmuls; contraction over channels = last dim of BOTH operands,
        # so the (C_out, C_in) weight goes to the MXU without a transpose.
        acc = jnp.zeros((H * W, C_mid), jnp.float32)
        for t in range(9):
            ky, kx = divmod(t, 3)
            acc = acc + lax.dot_general(
                load_tap(ky, kx), w_ref[t],
                dimension_numbers=(((1,), (1,)), ((), ())),
                preferred_element_type=jnp.float32)
        # Equalized-LR scale folded into the epilogue instead of scaling the weights.
        y = acc * scale + b_ref[...]
        return jnp.where(y > 0, y, leak * y)            # leaky ReLU

    # --- conv1 (input is already zero-padded to (H+2, W+2, C_in) by the wrapper) ---
    h1 = conv3x3(
        lambda ky, kx: x_ref[0, ky:ky + H, kx:kx + W, :].reshape(H * W, C_in),
        w1_ref, b1_ref, scale1)                         # (H*W, C_mid)

    # Zero-pad the intermediate in VMEM scratch for the second 3x3/pad=1 conv.
    h1pad_ref[...] = jnp.zeros((H + 2, W + 2, C_mid), jnp.float32)
    h1pad_ref[1:H + 1, 1:W + 1, :] = h1.reshape(H, W, C_mid)

    # --- conv2 ---
    h2 = conv3x3(
        lambda ky, kx: h1pad_ref[ky:ky + H, kx:kx + W, :].reshape(H * W, C_mid),
        w2_ref, b2_ref, scale2)                         # (H*W, C_mid)

    # --- 2x2 average pool as one MXU matmul with a constant (H*W/4, H*W) pooling matrix ---
    # (keeps the channel/lane dim untouched; no strided slices or lane-changing reshapes).
    pooled = jnp.dot(pool_ref[...], h2, preferred_element_type=jnp.float32)
    o_ref[0] = pooled.reshape(H // 2, W // 2, C_mid).astype(o_ref.dtype)


def downsample_block(x, w1, b1, w2, b2, *, gain=GAIN, leakiness=LEAKINESS):
    """x: (B, C_in, H, W) NCHW; w1: (C_out, C_in, 3, 3); w2: (C_out, C_out, 3, 3); b*: (C_out,)."""
    B, C_in, H, W = x.shape
    C_out = w1.shape[0]
    assert w1.shape == (C_out, C_in, 3, 3)
    assert w2.shape == (C_out, C_out, 3, 3)
    assert b1.shape == (C_out,) and b2.shape == (C_out,)
    assert H % 2 == 0 and W % 2 == 0

    scale1 = math.sqrt(gain / (C_in * 3 * 3))
    scale2 = math.sqrt(gain / (C_out * 3 * 3))

    # Wrapper-side layout plumbing only (no compute hoisted out of the kernel):
    #   NCHW -> NHWC so channels live on the lane dim, zero-pad the border for conv1,
    #   weights to tap-major (9, C_out, C_in), biases to (1, C_out), and a constant
    #   0/0.25 pooling matrix for the 2x2 average pool.
    x_nhwc = jnp.transpose(x, (0, 2, 3, 1))
    x_pad = jnp.pad(x_nhwc, ((0, 0), (1, 1), (1, 1), (0, 0)))
    w1_t = jnp.transpose(w1, (2, 3, 0, 1)).reshape(9, C_out, C_in)
    w2_t = jnp.transpose(w2, (2, 3, 0, 1)).reshape(9, C_out, C_out)
    b1_2d = b1.reshape(1, C_out)
    b2_2d = b2.reshape(1, C_out)

    Ho, Wo = H // 2, W // 2
    out_i = jnp.arange(Ho * Wo)[:, None]
    in_j = jnp.arange(H * W)[None, :]
    pool_mat = (((in_j // W) // 2 == out_i // Wo) &
                ((in_j % W) // 2 == out_i % Wo)).astype(jnp.float32) * 0.25

    kernel = functools.partial(
        _downsample_block_kernel,
        H=H, W=W, C_in=C_in, C_mid=C_out,
        scale1=scale1, scale2=scale2, leak=leakiness)

    out_nhwc = pl.pallas_call(
        kernel,
        out_shape=jax.ShapeDtypeStruct((B, Ho, Wo, C_out), x.dtype),
        grid_spec=pltpu.PrefetchScalarGridSpec(
            num_scalar_prefetch=0,
            grid=(B,),
            in_specs=[
                pl.BlockSpec((1, H + 2, W + 2, C_in), lambda b: (b, 0, 0, 0)),
                pl.BlockSpec((9, C_out, C_in), lambda b: (0, 0, 0)),
                pl.BlockSpec((1, C_out), lambda b: (0, 0)),
                pl.BlockSpec((9, C_out, C_out), lambda b: (0, 0, 0)),
                pl.BlockSpec((1, C_out), lambda b: (0, 0)),
                pl.BlockSpec((Ho * Wo, H * W), lambda b: (0, 0)),
            ],
            out_specs=pl.BlockSpec((1, Ho, Wo, C_out), lambda b: (b, 0, 0, 0)),
            scratch_shapes=[pltpu.VMEM((H + 2, W + 2, C_out), jnp.float32)],
        ),
        compiler_params=pltpu.CompilerParams(
            dimension_semantics=("parallel",),
            vmem_limit_bytes=32 * 1024 * 1024,
        ),
    )(x_pad, w1_t, b1_2d, w2_t, b2_2d, pool_mat)

    return jnp.transpose(out_nhwc, (0, 3, 1, 2))   # back to NCHW to match the PyTorch module


if __name__ == "__main__":
    key = jax.random.PRNGKey(0)
    k_x, k_w1, k_w2 = jax.random.split(key, 3)

    B, C_in, C_out, H, W = 2, 4, 8, 16, 16

    # Deterministic parameter init matching the module: weight ~ N(0, 1), bias = 0.
    x = jax.random.normal(k_x, (B, C_in, H, W), dtype=jnp.float32)
    w1 = jax.random.normal(k_w1, (C_out, C_in, 3, 3), dtype=jnp.float32)
    b1 = jnp.zeros((C_out,), jnp.float32)
    w2 = jax.random.normal(k_w2, (C_out, C_out, 3, 3), dtype=jnp.float32)
    b2 = jnp.zeros((C_out,), jnp.float32)

    y = downsample_block(x, w1, b1, w2, b2)
    y = jax.block_until_ready(y)

    # Pure-JAX reference with identical semantics (runtime weight scaling, lrelu, avgpool 2x2).
    def lrelu(v):
        return jnp.where(v > 0, v, LEAKINESS * v)

    def conv_ref(v, w, b, scale):
        out = lax.conv_general_dilated(
            v, w * scale, window_strides=(1, 1), padding=((1, 1), (1, 1)),
            dimension_numbers=("NCHW", "OIHW", "NCHW"),
            precision=lax.Precision.HIGHEST)
        return out + b.reshape(1, -1, 1, 1)

    s1 = math.sqrt(GAIN / (C_in * 9))
    s2 = math.sqrt(GAIN / (C_out * 9))
    r = lrelu(conv_ref(x, w1, b1, s1))
    r = lrelu(conv_ref(r, w2, b2, s2))
    r = r.reshape(B, C_out, H // 2, 2, W // 2, 2).mean(axis=(3, 5))

    assert y.shape == (B, C_out, H // 2, W // 2)
    err = float(jnp.max(jnp.abs(y - r)))
    assert err < 1e-4, f"max abs error {err}"

    print("KERNEL_OK")
</pallas_src>

<mosaic_0001>
module attributes {stable_mosaic.version = 11 : i64} {
  func.func @_downsample_block_kernel(%arg0: i32, %arg1: memref<1x18x18x4xf32, #tpu.memory_space<vmem>>, %arg2: memref<9x8x4xf32, #tpu.memory_space<vmem>>, %arg3: memref<1x8xf32, #tpu.memory_space<vmem>>, %arg4: memref<9x8x8xf32, #tpu.memory_space<vmem>>, %arg5: memref<1x8xf32, #tpu.memory_space<vmem>>, %arg6: memref<64x256xf32, #tpu.memory_space<vmem>>, %arg7: memref<1x8x8x8xf32, #tpu.memory_space<vmem>>, %arg8: memref<18x18x8xf32, #tpu.memory_space<vmem>>) attributes {dimension_semantics = [#tpu.dimension_semantics<parallel>], iteration_bounds = array<i64: 2>, scalar_prefetch = 0 : i64, scratch_operands = 1 : i64, tpu.core_type = #tpu.core_type<tc>, window_params = [{transform_indices = @transform_0, window_bounds = array<i64: 1, 18, 18, 4>}, {pipeline_mode = #tpu.pipeline_mode<synchronous>, transform_indices = @transform_1, window_bounds = array<i64: 9, 8, 4>}, {pipeline_mode = #tpu.pipeline_mode<synchronous>, transform_indices = @transform_2, window_bounds = array<i64: 1, 8>}, {pipeline_mode = #tpu.pipeline_mode<synchronous>, transform_indices = @transform_3, window_bounds = array<i64: 9, 8, 8>}, {pipeline_mode = #tpu.pipeline_mode<synchronous>, transform_indices = @transform_4, window_bounds = array<i64: 1, 8>}, {pipeline_mode = #tpu.pipeline_mode<synchronous>, transform_indices = @transform_5, window_bounds = array<i64: 64, 256>}, {transform_indices = @transform_6, window_bounds = array<i64: 1, 8, 8, 8>}]} {
    %cst = arith.constant 0.000000e+00 : f32
    %0 = vector.broadcast %cst : f32 to vector<256x8xf32>
    %c0 = arith.constant 0 : index
    %c0_0 = arith.constant 0 : index
    %c0_1 = arith.constant 0 : index
    %c0_2 = arith.constant 0 : index
    %1 = vector.load %arg1[%c0, %c0_0, %c0_1, %c0_2] : memref<1x18x18x4xf32, #tpu.memory_space<vmem>>, vector<1x16x16x4xf32>
    %2 = vector.shape_cast %1 : vector<1x16x16x4xf32> to vector<16x16x4xf32>
    %3 = vector.shape_cast %2 : vector<16x16x4xf32> to vector<256x4xf32>
    %c0_3 = arith.constant 0 : index
    %c0_4 = arith.constant 0 : index
    %c0_5 = arith.constant 0 : index
    %4 = vector.load %arg2[%c0_3, %c0_4, %c0_5] : memref<9x8x4xf32, #tpu.memory_space<vmem>>, vector<1x8x4xf32>
    %5 = vector.shape_cast %4 : vector<1x8x4xf32> to vector<8x4xf32>
    %cst_6 = arith.constant dense<0.000000e+00> : vector<256x8xf32>
    %6 = tpu.matmul %3, %5, %cst_6 {dimension_numbers = #tpu.dot_dimension_numbers<[1], [1], [0], [0], [0, 0, 1, 0], [], []>} : vector<256x4xf32>, vector<8x4xf32>, vector<256x8xf32> -> vector<256x8xf32>
    %7 = arith.addf %0, %6 : vector<256x8xf32>
    %c0_7 = arith.constant 0 : index
    %c0_8 = arith.constant 0 : index
    %c1 = arith.constant 1 : index
    %c0_9 = arith.constant 0 : index
    %8 = vector.load %arg1[%c0_7, %c0_8, %c1, %c0_9] : memref<1x18x18x4xf32, #tpu.memory_space<vmem>>, vector<1x16x16x4xf32>
    %9 = vector.shape_cast %8 : vector<1x16x16x4xf32> to vector<16x16x4xf32>
    %10 = vector.shape_cast %9 : vector<16x16x4xf32> to vector<256x4xf32>
    %c1_10 = arith.constant 1 : index
    %c0_11 = arith.constant 0 : index
    %c0_12 = arith.constant 0 : index
    %11 = vector.load %arg2[%c1_10, %c0_11, %c0_12] : memref<9x8x4xf32, #tpu.memory_space<vmem>>, vector<1x8x4xf32>
    %12 = vector.shape_cast %11 : vector<1x8x4xf32> to vector<8x4xf32>
    %cst_13 = arith.constant dense<0.000000e+00> : vector<256x8xf32>
    %13 = tpu.matmul %10, %12, %cst_13 {dimension_numbers = #tpu.dot_dimension_numbers<[1], [1], [0], [0], [0, 0, 1, 0], [], []>} : vector<256x4xf32>, vector<8x4xf32>, vector<256x8xf32> -> vector<256x8xf32>
    %14 = arith.addf %7, %13 : vector<256x8xf32>
    %c0_14 = arith.constant 0 : index
    %c0_15 = arith.constant 0 : index
    %c2 = arith.constant 2 : index
    %c0_16 = arith.constant 0 : index
    %15 = vector.load %arg1[%c0_14, %c0_15, %c2, %c0_16] : memref<1x18x18x4xf32, #tpu.memory_space<vmem>>, vector<1x16x16x4xf32>
    %16 = vector.shape_cast %15 : vector<1x16x16x4xf32> to vector<16x16x4xf32>
    %17 = vector.shape_cast %16 : vector<16x16x4xf32> to vector<256x4xf32>
    %c2_17 = arith.constant 2 : index
    %c0_18 = arith.constant 0 : index
    %c0_19 = arith.constant 0 : index
    %18 = vector.load %arg2[%c2_17, %c0_18, %c0_19] : memref<9x8x4xf32, #tpu.memory_space<vmem>>, vector<1x8x4xf32>
    %19 = vector.shape_cast %18 : vector<1x8x4xf32> to vector<8x4xf32>
    %cst_20 = arith.constant dense<0.000000e+00> : vector<256x8xf32>
    %20 = tpu.matmul %17, %19, %cst_20 {dimension_numbers = #tpu.dot_dimension_numbers<[1], [1], [0], [0], [0, 0, 1, 0], [], []>} : vector<256x4xf32>, vector<8x4xf32>, vector<256x8xf32> -> vector<256x8xf32>
    %21 = arith.addf %14, %20 : vector<256x8xf32>
    %c0_21 = arith.constant 0 : index
    %c1_22 = arith.constant 1 : index
    %c0_23 = arith.constant 0 : index
    %c0_24 = arith.constant 0 : index
    %22 = vector.load %arg1[%c0_21, %c1_22, %c0_23, %c0_24] : memref<1x18x18x4xf32, #tpu.memory_space<vmem>>, vector<1x16x16x4xf32>
    %23 = vector.shape_cast %22 : vector<1x16x16x4xf32> to vector<16x16x4xf32>
    %24 = vector.shape_cast %23 : vector<16x16x4xf32> to vector<256x4xf32>
    %c3 = arith.constant 3 : index
    %c0_25 = arith.constant 0 : index
    %c0_26 = arith.constant 0 : index
    %25 = vector.load %arg2[%c3, %c0_25, %c0_26] : memref<9x8x4xf32, #tpu.memory_space<vmem>>, vector<1x8x4xf32>
    %26 = vector.shape_cast %25 : vector<1x8x4xf32> to vector<8x4xf32>
    %cst_27 = arith.constant dense<0.000000e+00> : vector<256x8xf32>
    %27 = tpu.matmul %24, %26, %cst_27 {dimension_numbers = #tpu.dot_dimension_numbers<[1], [1], [0], [0], [0, 0, 1, 0], [], []>} : vector<256x4xf32>, vector<8x4xf32>, vector<256x8xf32> -> vector<256x8xf32>
    %28 = arith.addf %21, %27 : vector<256x8xf32>
    %c0_28 = arith.constant 0 : index
    %c1_29 = arith.constant 1 : index
    %c1_30 = arith.constant 1 : index
    %c0_31 = arith.constant 0 : index
    %29 = vector.load %arg1[%c0_28, %c1_29, %c1_30, %c0_31] : memref<1x18x18x4xf32, #tpu.memory_space<vmem>>, vector<1x16x16x4xf32>
    %30 = vector.shape_cast %29 : vector<1x16x16x4xf32> to vector<16x16x4xf32>
    %31 = vector.shape_cast %30 : vector<16x16x4xf32> to vector<256x4xf32>
    %c4 = arith.constant 4 : index
    %c0_32 = arith.constant 0 : index
    %c0_33 = arith.constant 0 : index
    %32 = vector.load %arg2[%c4, %c0_32, %c0_33] : memref<9x8x4xf32, #tpu.memory_space<vmem>>, vector<1x8x4xf32>
    %33 = vector.shape_cast %32 : vector<1x8x4xf32> to vector<8x4xf32>
    %cst_34 = arith.constant dense<0.000000e+00> : vector<256x8xf32>
    %34 = tpu.matmul %31, %33, %cst_34 {dimension_numbers = #tpu.dot_dimension_numbers<[1], [1], [0], [0], [0, 0, 1, 0], [], []>} : vector<256x4xf32>, vector<8x4xf32>, vector<256x8xf32> -> vector<256x8xf32>
    %35 = arith.addf %28, %34 : vector<256x8xf32>
    %c0_35 = arith.constant 0 : index
    %c1_36 = arith.constant 1 : index
    %c2_37 = arith.constant 2 : index
    %c0_38 = arith.constant 0 : index
    %36 = vector.load %arg1[%c0_35, %c1_36, %c2_37, %c0_38] : memref<1x18x18x4xf32, #tpu.memory_space<vmem>>, vector<1x16x16x4xf32>
    %37 = vector.shape_cast %36 : vector<1x16x16x4xf32> to vector<16x16x4xf32>
    %38 = vector.shape_cast %37 : vector<16x16x4xf32> to vector<256x4xf32>
    %c5 = arith.constant 5 : index
    %c0_39 = arith.constant 0 : index
    %c0_40 = arith.constant 0 : index
    %39 = vector.load %arg2[%c5, %c0_39, %c0_40] : memref<9x8x4xf32, #tpu.memory_space<vmem>>, vector<1x8x4xf32>
    %40 = vector.shape_cast %39 : vector<1x8x4xf32> to vector<8x4xf32>
    %cst_41 = arith.constant dense<0.000000e+00> : vector<256x8xf32>
    %41 = tpu.matmul %38, %40, %cst_41 {dimension_numbers = #tpu.dot_dimension_numbers<[1], [1], [0], [0], [0, 0, 1, 0], [], []>} : vector<256x4xf32>, vector<8x4xf32>, vector<256x8xf32> -> vector<256x8xf32>
    %42 = arith.addf %35, %41 : vector<256x8xf32>
    %c0_42 = arith.constant 0 : index
    %c2_43 = arith.constant 2 : index
    %c0_44 = arith.constant 0 : index
    %c0_45 = arith.constant 0 : index
    %43 = vector.load %arg1[%c0_42, %c2_43, %c0_44, %c0_45] : memref<1x18x18x4xf32, #tpu.memory_space<vmem>>, vector<1x16x16x4xf32>
    %44 = vector.shape_cast %43 : vector<1x16x16x4xf32> to vector<16x16x4xf32>
    %45 = vector.shape_cast %44 : vector<16x16x4xf32> to vector<256x4xf32>
    %c6 = arith.constant 6 : index
    %c0_46 = arith.constant 0 : index
    %c0_47 = arith.constant 0 : index
    %46 = vector.load %arg2[%c6, %c0_46, %c0_47] : memref<9x8x4xf32, #tpu.memory_space<vmem>>, vector<1x8x4xf32>
    %47 = vector.shape_cast %46 : vector<1x8x4xf32> to vector<8x4xf32>
    %cst_48 = arith.constant dense<0.000000e+00> : vector<256x8xf32>
    %48 = tpu.matmul %45, %47, %cst_48 {dimension_numbers = #tpu.dot_dimension_numbers<[1], [1], [0], [0], [0, 0, 1, 0], [], []>} : vector<256x4xf32>, vector<8x4xf32>, vector<256x8xf32> -> vector<256x8xf32>
    %49 = arith.addf %42, %48 : vector<256x8xf32>
    %c0_49 = arith.constant 0 : index
    %c2_50 = arith.constant 2 : index
    %c1_51 = arith.constant 1 : index
    %c0_52 = arith.constant 0 : index
    %50 = vector.load %arg1[%c0_49, %c2_50, %c1_51, %c0_52] : memref<1x18x18x4xf32, #tpu.memory_space<vmem>>, vector<1x16x16x4xf32>
    %51 = vector.shape_cast %50 : vector<1x16x16x4xf32> to vector<16x16x4xf32>
    %52 = vector.shape_cast %51 : vector<16x16x4xf32> to vector<256x4xf32>
    %c7 = arith.constant 7 : index
    %c0_53 = arith.constant 0 : index
    %c0_54 = arith.constant 0 : index
    %53 = vector.load %arg2[%c7, %c0_53, %c0_54] : memref<9x8x4xf32, #tpu.memory_space<vmem>>, vector<1x8x4xf32>
    %54 = vector.shape_cast %53 : vector<1x8x4xf32> to vector<8x4xf32>
    %cst_55 = arith.constant dense<0.000000e+00> : vector<256x8xf32>
    %55 = tpu.matmul %52, %54, %cst_55 {dimension_numbers = #tpu.dot_dimension_numbers<[1], [1], [0], [0], [0, 0, 1, 0], [], []>} : vector<256x4xf32>, vector<8x4xf32>, vector<256x8xf32> -> vector<256x8xf32>
    %56 = arith.addf %49, %55 : vector<256x8xf32>
    %c0_56 = arith.constant 0 : index
    %c2_57 = arith.constant 2 : index
    %c2_58 = arith.constant 2 : index
    %c0_59 = arith.constant 0 : index
    %57 = vector.load %arg1[%c0_56, %c2_57, %c2_58, %c0_59] : memref<1x18x18x4xf32, #tpu.memory_space<vmem>>, vector<1x16x16x4xf32>
    %58 = vector.shape_cast %57 : vector<1x16x16x4xf32> to vector<16x16x4xf32>
    %59 = vector.shape_cast %58 : vector<16x16x4xf32> to vector<256x4xf32>
    %c8 = arith.constant 8 : index
    %c0_60 = arith.constant 0 : index
    %c0_61 = arith.constant 0 : index
    %60 = vector.load %arg2[%c8, %c0_60, %c0_61] : memref<9x8x4xf32, #tpu.memory_space<vmem>>, vector<1x8x4xf32>
    %61 = vector.shape_cast %60 : vector<1x8x4xf32> to vector<8x4xf32>
    %cst_62 = arith.constant dense<0.000000e+00> : vector<256x8xf32>
    %62 = tpu.matmul %59, %61, %cst_62 {dimension_numbers = #tpu.dot_dimension_numbers<[1], [1], [0], [0], [0, 0, 1, 0], [], []>} : vector<256x4xf32>, vector<8x4xf32>, vector<256x8xf32> -> vector<256x8xf32>
    %63 = arith.addf %56, %62 : vector<256x8xf32>
    %cst_63 = arith.constant 7.453560e-02 : f32
    %64 = vector.broadcast %cst_63 : f32 to vector<256x8xf32>
    %65 = arith.mulf %63, %64 : vector<256x8xf32>
    %c0_64 = arith.constant 0 : index
    %c0_65 = arith.constant 0 : index
    %66 = vector.load %arg3[%c0_64, %c0_65] : memref<1x8xf32, #tpu.memory_space<vmem>>, vector<1x8xf32>
    %67 = vector.broadcast %66 : vector<1x8xf32> to vector<256x8xf32>
    %68 = arith.addf %65, %67 : vector<256x8xf32>
    %cst_66 = arith.constant 0.000000e+00 : f32
    %69 = vector.broadcast %cst_66 : f32 to vector<256x8xf32>
    %70 = arith.cmpf ogt, %68, %69 : vector<256x8xf32>
    %cst_67 = arith.constant 2.000000e-01 : f32
    %71 = vector.broadcast %cst_67 : f32 to vector<256x8xf32>
    %72 = arith.mulf %71, %68 : vector<256x8xf32>
    %73 = arith.select %70, %68, %72 : vector<256x8xi1>, vector<256x8xf32>
    %cst_68 = arith.constant 0.000000e+00 : f32
    %74 = vector.broadcast %cst_68 : f32 to vector<18x18x8xf32>
    %c0_69 = arith.constant 0 : index
    %c0_70 = arith.constant 0 : index
    %c0_71 = arith.constant 0 : index
    %75 = vector.load %arg8[%c0_69, %c0_70, %c0_71] : memref<18x18x8xf32, #tpu.memory_space<vmem>>, vector<18x18x8xf32>
    tpu.vector_store %arg8[%c0_69, %c0_70, %c0_71], %74 {strides = array<i32>} : memref<18x18x8xf32, #tpu.memory_space<vmem>>, vector<18x18x8xf32>,
    %76 = vector.shape_cast %73 : vector<256x8xf32> to vector<16x16x8xf32>
    %c1_72 = arith.constant 1 : index
    %c1_73 = arith.constant 1 : index
    %c0_74 = arith.constant 0 : index
    %77 = vector.load %arg8[%c1_72, %c1_73, %c0_74] : memref<18x18x8xf32, #tpu.memory_space<vmem>>, vector<16x16x8xf32>
    tpu.vector_store %arg8[%c1_72, %c1_73, %c0_74], %76 {strides = array<i32>} : memref<18x18x8xf32, #tpu.memory_space<vmem>>, vector<16x16x8xf32>,
    %cst_75 = arith.constant 0.000000e+00 : f32
    %78 = vector.broadcast %cst_75 : f32 to vector<256x8xf32>
    %c0_76 = arith.constant 0 : index
    %c0_77 = arith.constant 0 : index
    %c0_78 = arith.constant 0 : index
    %79 = vector.load %arg8[%c0_76, %c0_77, %c0_78] : memref<18x18x8xf32, #tpu.memory_space<vmem>>, vector<16x16x8xf32>
    %80 = vector.shape_cast %79 : vector<16x16x8xf32> to vector<256x8xf32>
    %c0_79 = arith.constant 0 : index
    %c0_80 = arith.constant 0 : index
    %c0_81 = arith.constant 0 : index
    %81 = vector.load %arg4[%c0_79, %c0_80, %c0_81] : memref<9x8x8xf32, #tpu.memory_space<vmem>>, vector<1x8x8xf32>
    %82 = vector.shape_cast %81 : vector<1x8x8xf32> to vector<8x8xf32>
    %cst_82 = arith.constant dense<0.000000e+00> : vector<256x8xf32>
    %83 = tpu.matmul %80, %82, %cst_82 {dimension_numbers = #tpu.dot_dimension_numbers<[1], [1], [0], [0], [0, 0, 1, 0], [], []>} : vector<256x8xf32>, vector<8x8xf32>, vector<256x8xf32> -> vector<256x8xf32>
    %84 = arith.addf %78, %83 : vector<256x8xf32>
    %c0_83 = arith.constant 0 : index
    %c1_84 = arith.constant 1 : index
    %c0_85 = arith.constant 0 : index
    %85 = vector.load %arg8[%c0_83, %c1_84, %c0_85] : memref<18x18x8xf32, #tpu.memory_space<vmem>>, vector<16x16x8xf32>
    %86 = vector.shape_cast %85 : vector<16x16x8xf32> to vector<256x8xf32>
    %c1_86 = arith.constant 1 : index
    %c0_87 = arith.constant 0 : index
    %c0_88 = arith.constant 0 : index
    %87 = vector.load %arg4[%c1_86, %c0_87, %c0_88] : memref<9x8x8xf32, #tpu.memory_space<vmem>>, vector<1x8x8xf32>
    %88 = vector.shape_cast %87 : vector<1x8x8xf32> to vector<8x8xf32>
    %cst_89 = arith.constant dense<0.000000e+00> : vector<256x8xf32>
    %89 = tpu.matmul %86, %88, %cst_89 {dimension_numbers = #tpu.dot_dimension_numbers<[1], [1], [0], [0], [0, 0, 1, 0], [], []>} : vector<256x8xf32>, vector<8x8xf32>, vector<256x8xf32> -> vector<256x8xf32>
    %90 = arith.addf %84, %89 : vector<256x8xf32>
    %c0_90 = arith.constant 0 : index
    %c2_91 = arith.constant 2 : index
    %c0_92 = arith.constant 0 : index
    %91 = vector.load %arg8[%c0_90, %c2_91, %c0_92] : memref<18x18x8xf32, #tpu.memory_space<vmem>>, vector<16x16x8xf32>
    %92 = vector.shape_cast %91 : vector<16x16x8xf32> to vector<256x8xf32>
    %c2_93 = arith.constant 2 : index
    %c0_94 = arith.constant 0 : index
    %c0_95 = arith.constant 0 : index
    %93 = vector.load %arg4[%c2_93, %c0_94, %c0_95] : memref<9x8x8xf32, #tpu.memory_space<vmem>>, vector<1x8x8xf32>
    %94 = vector.shape_cast %93 : vector<1x8x8xf32> to vector<8x8xf32>
    %cst_96 = arith.constant dense<0.000000e+00> : vector<256x8xf32>
    %95 = tpu.matmul %92, %94, %cst_96 {dimension_numbers = #tpu.dot_dimension_numbers<[1], [1], [0], [0], [0, 0, 1, 0], [], []>} : vector<256x8xf32>, vector<8x8xf32>, vector<256x8xf32> -> vector<256x8xf32>
    %96 = arith.addf %90, %95 : vector<256x8xf32>
    %c1_97 = arith.constant 1 : index
    %c0_98 = arith.constant 0 : index
    %c0_99 = arith.constant 0 : index
    %97 = vector.load %arg8[%c1_97, %c0_98, %c0_99] : memref<18x18x8xf32, #tpu.memory_space<vmem>>, vector<16x16x8xf32>
    %98 = vector.shape_cast %97 : vector<16x16x8xf32> to vector<256x8xf32>
    %c3_100 = arith.constant 3 : index
    %c0_101 = arith.constant 0 : index
    %c0_102 = arith.constant 0 : index
    %99 = vector.load %arg4[%c3_100, %c0_101, %c0_102] : memref<9x8x8xf32, #tpu.memory_space<vmem>>, vector<1x8x8xf32>
    %100 = vector.shape_cast %99 : vector<1x8x8xf32> to vector<8x8xf32>
    %cst_103 = arith.constant dense<0.000000e+00> : vector<256x8xf32>
    %101 = tpu.matmul %98, %100, %cst_103 {dimension_numbers = #tpu.dot_dimension_numbers<[1], [1], [0], [0], [0, 0, 1, 0], [], []>} : vector<256x8xf32>, vector<8x8xf32>, vector<256x8xf32> -> vector<256x8xf32>
    %102 = arith.addf %96, %101 : vector<256x8xf32>
    %c1_104 = arith.constant 1 : index
    %c1_105 = arith.constant 1 : index
    %c0_106 = arith.constant 0 : index
    %103 = vector.load %arg8[%c1_104, %c1_105, %c0_106] : memref<18x18x8xf32, #tpu.memory_space<vmem>>, vector<16x16x8xf32>
    %104 = vector.shape_cast %103 : vector<16x16x8xf32> to vector<256x8xf32>
    %c4_107 = arith.constant 4 : index
    %c0_108 = arith.constant 0 : index
    %c0_109 = arith.constant 0 : index
    %105 = vector.load %arg4[%c4_107, %c0_108, %c0_109] : memref<9x8x8xf32, #tpu.memory_space<vmem>>, vector<1x8x8xf32>
    %106 = vector.shape_cast %105 : vector<1x8x8xf32> to vector<8x8xf32>
    %cst_110 = arith.constant dense<0.000000e+00> : vector<256x8xf32>
    %107 = tpu.matmul %104, %106, %cst_110 {dimension_numbers = #tpu.dot_dimension_numbers<[1], [1], [0], [0], [0, 0, 1, 0], [], []>} : vector<256x8xf32>, vector<8x8xf32>, vector<256x8xf32> -> vector<256x8xf32>
    %108 = arith.addf %102, %107 : vector<256x8xf32>
    %c1_111 = arith.constant 1 : index
    %c2_112 = arith.constant 2 : index
    %c0_113 = arith.constant 0 : index
    %109 = vector.load %arg8[%c1_111, %c2_112, %c0_113] : memref<18x18x8xf32, #tpu.memory_space<vmem>>, vector<16x16x8xf32>
    %110 = vector.shape_cast %109 : vector<16x16x8xf32> to vector<256x8xf32>
    %c5_114 = arith.constant 5 : index
    %c0_115 = arith.constant 0 : index
    %c0_116 = arith.constant 0 : index
    %111 = vector.load %arg4[%c5_114, %c0_115, %c0_116] : memref<9x8x8xf32, #tpu.memory_space<vmem>>, vector<1x8x8xf32>
    %112 = vector.shape_cast %111 : vector<1x8x8xf32> to vector<8x8xf32>
    %cst_117 = arith.constant dense<0.000000e+00> : vector<256x8xf32>
    %113 = tpu.matmul %110, %112, %cst_117 {dimension_numbers = #tpu.dot_dimension_numbers<[1], [1], [0], [0], [0, 0, 1, 0], [], []>} : vector<256x8xf32>, vector<8x8xf32>, vector<256x8xf32> -> vector<256x8xf32>
    %114 = arith.addf %108, %113 : vector<256x8xf32>
    %c2_118 = arith.constant 2 : index
    %c0_119 = arith.constant 0 : index
    %c0_120 = arith.constant 0 : index
    %115 = vector.load %arg8[%c2_118, %c0_119, %c0_120] : memref<18x18x8xf32, #tpu.memory_space<vmem>>, vector<16x16x8xf32>
    %116 = vector.shape_cast %115 : vector<16x16x8xf32> to vector<256x8xf32>
    %c6_121 = arith.constant 6 : index
    %c0_122 = arith.constant 0 : index
    %c0_123 = arith.constant 0 : index
    %117 = vector.load %arg4[%c6_121, %c0_122, %c0_123] : memref<9x8x8xf32, #tpu.memory_space<vmem>>, vector<1x8x8xf32>
    %118 = vector.shape_cast %117 : vector<1x8x8xf32> to vector<8x8xf32>
    %cst_124 = arith.constant dense<0.000000e+00> : vector<256x8xf32>
    %119 = tpu.matmul %116, %118, %cst_124 {dimension_numbers = #tpu.dot_dimension_numbers<[1], [1], [0], [0], [0, 0, 1, 0], [], []>} : vector<256x8xf32>, vector<8x8xf32>, vector<256x8xf32> -> vector<256x8xf32>
    %120 = arith.addf %114, %119 : vector<256x8xf32>
    %c2_125 = arith.constant 2 : index
    %c1_126 = arith.constant 1 : index
    %c0_127 = arith.constant 0 : index
    %121 = vector.load %arg8[%c2_125, %c1_126, %c0_127] : memref<18x18x8xf32, #tpu.memory_space<vmem>>, vector<16x16x8xf32>
    %122 = vector.shape_cast %121 : vector<16x16x8xf32> to vector<256x8xf32>
    %c7_128 = arith.constant 7 : index
    %c0_129 = arith.constant 0 : index
    %c0_130 = arith.constant 0 : index
    %123 = vector.load %arg4[%c7_128, %c0_129, %c0_130] : memref<9x8x8xf32, #tpu.memory_space<vmem>>, vector<1x8x8xf32>
    %124 = vector.shape_cast %123 : vector<1x8x8xf32> to vector<8x8xf32>
    %cst_131 = arith.constant dense<0.000000e+00> : vector<256x8xf32>
    %125 = tpu.matmul %122, %124, %cst_131 {dimension_numbers = #tpu.dot_dimension_numbers<[1], [1], [0], [0], [0, 0, 1, 0], [], []>} : vector<256x8xf32>, vector<8x8xf32>, vector<256x8xf32> -> vector<256x8xf32>
    %126 = arith.addf %120, %125 : vector<256x8xf32>
    %c2_132 = arith.constant 2 : index
    %c2_133 = arith.constant 2 : index
    %c0_134 = arith.constant 0 : index
    %127 = vector.load %arg8[%c2_132, %c2_133, %c0_134] : memref<18x18x8xf32, #tpu.memory_space<vmem>>, vector<16x16x8xf32>
    %128 = vector.shape_cast %127 : vector<16x16x8xf32> to vector<256x8xf32>
    %c8_135 = arith.constant 8 : index
    %c0_136 = arith.constant 0 : index
    %c0_137 = arith.constant 0 : index
    %129 = vector.load %arg4[%c8_135, %c0_136, %c0_137] : memref<9x8x8xf32, #tpu.memory_space<vmem>>, vector<1x8x8xf32>
    %130 = vector.shape_cast %129 : vector<1x8x8xf32> to vector<8x8xf32>
    %cst_138 = arith.constant dense<0.000000e+00> : vector<256x8xf32>
    %131 = tpu.matmul %128, %130, %cst_138 {dimension_numbers = #tpu.dot_dimension_numbers<[1], [1], [0], [0], [0, 0, 1, 0], [], []>} : vector<256x8xf32>, vector<8x8xf32>, vector<256x8xf32> -> vector<256x8xf32>
    %132 = arith.addf %126, %131 : vector<256x8xf32>
    %cst_139 = arith.constant 0.0527046286 : f32
    %133 = vector.broadcast %cst_139 : f32 to vector<256x8xf32>
    %134 = arith.mulf %132, %133 : vector<256x8xf32>
    %c0_140 = arith.constant 0 : index
    %c0_141 = arith.constant 0 : index
    %135 = vector.load %arg5[%c0_140, %c0_141] : memref<1x8xf32, #tpu.memory_space<vmem>>, vector<1x8xf32>
    %136 = vector.broadcast %135 : vector<1x8xf32> to vector<256x8xf32>
    %137 = arith.addf %134, %136 : vector<256x8xf32>
    %cst_142 = arith.constant 0.000000e+00 : f32
    %138 = vector.broadcast %cst_142 : f32 to vector<256x8xf32>
    %139 = arith.cmpf ogt, %137, %138 : vector<256x8xf32>
    %cst_143 = arith.constant 2.000000e-01 : f32
    %140 = vector.broadcast %cst_143 : f32 to vector<256x8xf32>
    %141 = arith.mulf %140, %137 : vector<256x8xf32>
    %142 = arith.select %139, %137, %141 : vector<256x8xi1>, vector<256x8xf32>
    %c0_144 = arith.constant 0 : index
    %c0_145 = arith.constant 0 : index
    %143 = vector.load %arg6[%c0_144, %c0_145] : memref<64x256xf32, #tpu.memory_space<vmem>>, vector<64x256xf32>
    %cst_146 = arith.constant dense<0.000000e+00> : vector<64x8xf32>
    %144 = tpu.matmul %143, %142, %cst_146 {dimension_numbers = #tpu.dot_dimension_numbers<[1], [0], [0], [1], [0, 0, 1, 1], [], []>} : vector<64x256xf32>, vector<256x8xf32>, vector<64x8xf32> -> vector<64x8xf32>
    %145 = vector.shape_cast %144 : vector<64x8xf32> to vector<8x8x8xf32>
    %c0_147 = arith.constant 0 : index
    %c0_148 = arith.constant 0 : index
    %c0_149 = arith.constant 0 : index
    %c0_150 = arith.constant 0 : index
    %146 = vector.load %arg7[%c0_147, %c0_148, %c0_149, %c0_150] : memref<1x8x8x8xf32, #tpu.memory_space<vmem>>, vector<1x8x8x8xf32>
    %147 = vector.shape_cast %146 : vector<1x8x8x8xf32> to vector<8x8x8xf32>
    %148 = vector.shape_cast %145 : vector<8x8x8xf32> to vector<1x8x8x8xf32>
    tpu.vector_store %arg7[%c0_147, %c0_148, %c0_149, %c0_150], %148 {strides = array<i32>} : memref<1x8x8x8xf32, #tpu.memory_space<vmem>>, vector<1x8x8x8xf32>,
    return
  }
  func.func @transform_0(%arg0: i32) -> (i32, i32, i32, i32) {
    %c0_i32 = arith.constant 0 : i32
    %c0_i32_0 = arith.constant 0 : i32
    %c0_i32_1 = arith.constant 0 : i32
    %c0_i32_2 = arith.constant 0 : i32
    return %arg0, %c0_i32, %c0_i32_0, %c0_i32_1 : i32, i32, i32, i32
  }
  func.func @transform_1(%arg0: i32) -> (i32, i32, i32) {
    %c0_i32 = arith.constant 0 : i32
    %c0_i32_0 = arith.constant 0 : i32
    %c0_i32_1 = arith.constant 0 : i32
    %c0_i32_2 = arith.constant 0 : i32
    return %c0_i32, %c0_i32_0, %c0_i32_1 : i32, i32, i32
  }
  func.func @transform_2(%arg0: i32) -> (i32, i32) {
    %c0_i32 = arith.constant 0 : i32
    %c0_i32_0 = arith.constant 0 : i32
    %c0_i32_1 = arith.constant 0 : i32
    return %c0_i32, %c0_i32_0 : i32, i32
  }
  func.func @transform_3(%arg0: i32) -> (i32, i32, i32) {
    %c0_i32 = arith.constant 0 : i32
    %c0_i32_0 = arith.constant 0 : i32
    %c0_i32_1 = arith.constant 0 : i32
    %c0_i32_2 = arith.constant 0 : i32
    return %c0_i32, %c0_i32_0, %c0_i32_1 : i32, i32, i32
  }
  func.func @transform_4(%arg0: i32) -> (i32, i32) {
    %c0_i32 = arith.constant 0 : i32
    %c0_i32_0 = arith.constant 0 : i32
    %c0_i32_1 = arith.constant 0 : i32
    return %c0_i32, %c0_i32_0 : i32, i32
  }
  func.func @transform_5(%arg0: i32) -> (i32, i32) {
    %c0_i32 = arith.constant 0 : i32
    %c0_i32_0 = arith.constant 0 : i32
    %c0_i32_1 = arith.constant 0 : i32
    return %c0_i32, %c0_i32_0 : i32, i32
  }
  func.func @transform_6(%arg0: i32) -> (i32, i32, i32, i32) {
    %c0_i32 = arith.constant 0 : i32
    %c0_i32_0 = arith.constant 0 : i32
    %c0_i32_1 = arith.constant 0 : i32
    %c0_i32_2 = arith.constant 0 : i32
    return %arg0, %c0_i32, %c0_i32_0, %c0_i32_1 : i32, i32, i32, i32
  }
}

</mosaic_0001>

<bundles_post_ra>
// kernel: tpu_custom_call.1
= control target key start
LH: loop header
LB: loop body
LE: loop exit
PB: predicated region body
PF: predicated region fallthrough
CT: control target
= control target key end

     0   :  { %11 = vsyncpa [#allocation4], 0  ;;  %s13728_s0 = inlined_call_operand.vmem [shape: f32[2,18,18,4], index: 0, kind: input, shape index: {}]   ;;  %s13729_s1 = inlined_call_operand.vmem [shape: f32[9,8,4], index: 1, kind: input, shape index: {}]   ;;  %s13730_s2 = inlined_call_operand.vmem [shape: f32[1,8], index: 2, kind: input, shape index: {}]   ;;  %s13731_s3 = inlined_call_operand.vmem [shape: f32[9,8,8], index: 3, kind: input, shape index: {}]   ;;  %s13732_s4 = inlined_call_operand.vmem [shape: f32[1,8], index: 4, kind: input, shape index: {}]   ;;  %s13733_s5 = inlined_call_operand.vmem [shape: f32[64,256], index: 5, kind: input, shape index: {}]   ;;  %s13734_s6 = inlined_call_operand.hbm [shape: f32[2,8,8,8], index: 6, kind: output, shape index: {}]  }
   0x1   :  { %13 = vsyncpa [#allocation4 + $0x1], 0  ;;  %s10285_s21 = smov 0   ;;  %s10287_s22 = smov 0  }
   0x2   :  { %s10289_s23 = smov 0   ;;  %s10291_s24 = smov 0  }
   0x3 LB: > { %s10306_s25 = sadd.s32 4294967295, %s10244_s24   ;;  %s7772_s26 = sadd.s32 4294967294, %s10244_s24   ;;  %s10244_s24 = sphi %s10291_s24, %s14166_s24   ;;  %s10240_s23 = sphi %s10289_s23, %s14165_s23   ;;  %s10236_s22 = sphi %s10287_s22, %s14164_s22   ;;  %s10232_s21 = sphi %s10285_s21, %s14163_s21  }
   0x4   : > { %s10310_s27 = sadd.s32 1, %s10244_s24   ;;  %s157_s28 = sadd.s32 1, %s10240_s23 }
   0x5   : > { %s154_s29 = ssub.s32 %s10244_s24, %s10310_s27  ;;  %p167_p0 = scmp.ne.s32.totalorder %s10240_s23, %s10236_s22 }
   0x6   : > { %p155_p1 = scmp.eq.s32.totalorder %s154_s29, 0  ;;  %p168_p2 = scmp.eq.s32.totalorder %s10306_s25, 1 }
   0x7   : > { %p173_p3 = scmp.ne.s32.totalorder %s10236_s22, %s10232_s21  ;;  %p174_p4 = scmp.eq.s32.totalorder %s7772_s26, 1 }
   0x8   : > { %s10321_s30 = scalar_select %p155_p1, %s10240_s23, %s157_s28  }
   0x9   : > { %p10323_p5 = por %p168_p2, %p167_p0  ;;  %p10327_p6 = por %p174_p4, %p173_p3 }
   0xa   : > { %p7775_p7 = scmp.ge.s32.totalorder %s10244_s24, 1  ;;  %p215_p8 = scmp.lt.s32.totalorder %s10244_s24, 3 }
   0xc   : > { %p216_p9 = pnand %p7775_p7, %p215_p8 }
   0xe   : > { %219 = sbr.rel (%p216_p9) target bundleno = 1284 (0x504), region = 44 }
  0x13   : > { %v7778_v0 = vld [vmem:[%s13729_s1 + $0x8] sm:$0xff]  ;;  %vm317_vm0 = vcmask 31744   ;;  %p245_p10 = scmp.lt.s32.totalorder %s10306_s25, 1  ;;  %v282_v1 = vld [vmem:[%s13729_s1] sm:$0xff]  ;;  %v7845_v2 = vld [vmem:[%s13729_s1 + $0x10] sm:$0xff]  ;;  %vm3865_vm1 = vcmask 64512  }
  0x14   : > { %9238 = vmatprep.subr.msk.mxu0 %vm317_vm0, %v7778_v0  ;;  %10138 = vmatprep.subr.msk.mxu1 %vm317_vm0, %v7778_v0  ;;  %v7911_v9 = vld [vmem:[%s13729_s1 + $0x18] sm:$0xff]  ;;  %v10381_v10 = vld [vmem:[%s13729_s1 + $0x20] sm:$0xff]  ;;  %v10542_v43 = vld [vmem:[%s13729_s1 + $0x28] sm:$0xff]  ;;  %vm3868_vm2 = vcmask 58368   ;;  %s242_s13 = sand.u32 1, %s10236_s22   ;;  %s10247_s28 = smov [#allocation3]  }
  0x15   : > { %9239 = vmatpush3.xpose.msk.msra.mxu0 %vm317_vm0, %v7778_v0  ;;  %10139 = vmatpush3.xpose.msk.msra.mxu1 %vm317_vm0, %v7778_v0  ;;  %s246_s15 = scalar_select %p245_p10, %s10306_s25, 1  ;;  %v10627_v60 = vld [vmem:[%s13729_s1 + $0x30] sm:$0xff] }
  0x16   : > { %9288 = vmatprep.subr.msk.mxu1 %vm317_vm0, %v282_v1  ;;  %9338 = vmatprep.subr.msk.mxu0 %vm317_vm0, %v7845_v2  ;;  %s7776_s14 = sshll.u32 %s242_s13, 6  ;;  %s10188_s29 = sshll.u32 %s10247_s28, 4  ;;  %s10189_s29 = int_to_ptr.vmem [resolvable:$false] %s10188_s29 }
  0x17   : > { %s10140_s16 = smul.u32 432, %s246_s15  ;;  %s13659_s15 = scalar_lea.vmem [#allocation3], %s7776_s14 }
  0x18   : > { %s7710_s17 = sshll.u32 %s13659_s15, 4  ;;  %s10190_s9 = scalar_lea.vmem %s10189_s29, 2048  ;;  %s13682_s17 = int_to_ptr.vmem [resolvable:$true] %s7710_s17 }
  0x19   : > { %s10353_s19 = scalar_lea.vmem %s13728_s0, %s10140_s16  ;;  %s8587_s16 = sshll.u32 %s10306_s25, 10 }
  0x1a   : > { %v283_v3 = vld [vmem:[%s10353_s19 + $0x1] sm:$0xff]  ;;  %v284_v5 = vld [vmem:[%s10353_s19 + $0x9] sm:$0xff]  ;;  %v10367_v7 = vld [vmem:[%s10353_s19 + $0x19] sm:$0xff]  ;;  %s13680_s20 = scalar_lea.hbm %s13734_s6, %s8587_s16  ;;  %s13688_s25 = scalar_lea.sflag [#allocation4], %s242_s13 }
  0x1b   : > { %v10357_v4 = vld [vmem:[%s10353_s19 + $0x121] sm:$0xff]  ;;  %9240 = vmatprep.mubr.msk.f32.mxu0 %vm317_vm0, %v283_v3  ;;  %v10364_v6 = vld [vmem:[%s10353_s19 + $0x129] sm:$0xff]  ;;  %v10370_v8 = vld [vmem:[%s10353_s19 + $0x139] sm:$0xff]  ;;  %s10184_s26 = scalar_lea.vmem %s13682_s17, 1024  ;;  %p10191_p0 = scmp.lt.s32.totalorder %s13682_s17, %s10189_s29 }
  0x1c   : > { %13810 = vst [vmem:[#allocation6_spill] sm:$0xff] %v10357_v4  ;;  %9276 = vmatprep.mubr.msk.f32.mxu1 %vm317_vm0, %v10357_v4  ;;  %13811 = vst [vmem:[#allocation7_spill] sm:$0xff] %v10364_v6  ;;  %9241 = vmatmul.mubr.msk.f32.vlgmr.msra.gmra.mxu0 %vm317_vm0, %v284_v5  ;;  %v10388_v11 = vld [vmem:[%s10353_s19 + $0x21] sm:$0xff]  ;;  %v10394_v13 = vld [vmem:[%s10353_s19 + $0x31] sm:$0xff]  ;;  %p10185_p11 = scmp.ne.s32.totalorder %s13682_s17, %s10184_s26  ;;  %p10192_p1 = scmp.lt.s32.totalorder %s10190_s9, %s10184_s26 }
  0x1d   : > { %13812 = vst [vmem:[#allocation8_spill] sm:$0xff] %v10370_v8  ;;  %9277 = vmatmul.mubr.msk.f32.vlgmr.msra.gmra.mxu1 %vm317_vm0, %v10364_v6  ;;  %9243 = vmatprep.mubr.msk.f32.mxu0 %vm317_vm0, %v10367_v7  ;;  %v10391_v12 = vld [vmem:[%s10353_s19 + $0x141] sm:$0xff]  ;;  %v10397_v14 = vld [vmem:[%s10353_s19 + $0x151] sm:$0xff]  ;;  %v10413_v15 = vld [vmem:[%s10353_s19 + $0x39] sm:$0xff] }
  0x1e   : > { %9279 = vmatprep.mubr.msk.f32.mxu1 %vm317_vm0, %v10370_v8  ;;  %13813 = vst [vmem:[#allocation9_spill] sm:$0xff] %v10391_v12  ;;  %13814 = vst [vmem:[#allocation10_spill] sm:$0xff] %v10397_v14  ;;  %9289 = vmatpush3.xpose.msk.msra.mxu1 %vm317_vm0, %v282_v1  ;;  %v10416_v16 = vld [vmem:[%s10353_s19 + $0x159] sm:$0xff]  ;;  %v10419_v17 = vld [vmem:[%s10353_s19 + $0x49] sm:$0xff]  ;;  %p10186_p12 = pnand %p10185_p11, %p10323_p5  ;;  %p10193_p2 = por %p10192_p1, %p10191_p0 }
  0x1f   : > { %9339 = vmatpush3.xpose.msk.msra.mxu0 %vm317_vm0, %v7845_v2  ;;  %9388 = vmatprep.subr.msk.mxu1 %vm317_vm0, %v7911_v9  ;;  %13815 = vst [vmem:[#allocation11_spill] sm:$0xff] %v10416_v16  ;;  %v10422_v18 = vld [vmem:[%s10353_s19 + $0x169] sm:$0xff]  ;;  %v10433_v19 = vld [vmem:[%s10353_s19 + $0x51] sm:$0xff]  ;;  %v10439_v21 = vld [vmem:[%s10353_s19 + $0x61] sm:$0xff] }
  0x20   : > { %9438 = vmatprep.subr.msk.mxu0 %vm317_vm0, %v10381_v10  ;;  %9244 = vmatmul.mubr.msk.f32.gmra.mxu0 %vm317_vm0, %v10388_v11  ;;  %13816 = vst [vmem:[#allocation12_spill] sm:$0xff] %v10422_v18  ;;  %v10436_v20 = vld [vmem:[%s10353_s19 + $0x171] sm:$0xff]  ;;  %v250_v22 = vld [vmem:[%s10353_s19] sm:$0xff]  ;;  %v10450_v23 = vld [vmem:[%s10353_s19 + $0x69] sm:$0xff]  ;;  %p10187_p13 = pneg %p10186_p12 }
  0x21   : > { %9280 = vmatmul.mubr.msk.f32.gmra.mxu1 %vm317_vm0, %v10391_v12  ;;  %9246 = vmatprep.mubr.msk.f32.mxu0 %vm317_vm0, %v10394_v13  ;;  %13817 = vst [vmem:[#allocation13_spill] sm:$0xff] %v10436_v20  ;;  %v251_v24 = vld [vmem:[%s10353_s19 + $0x8] sm:$0xff]  ;;  %v10454_v25 = vld [vmem:[%s10353_s19 + $0x79] sm:$0xff]  ;;  %v10473_v29 = vld [vmem:[%s10353_s19 + $0x91] sm:$0xff] }
  0x22   : > { %9282 = vmatprep.mubr.msk.f32.mxu1 %vm317_vm0, %v10397_v14  ;;  %v10457_v26 = vld [vmem:[%s10353_s19 + $0x18] sm:$0xff]  ;;  %v10467_v27 = vld [vmem:[%s10353_s19 + $0x81] sm:$0xff]  ;;  %v10476_v30 = vld [vmem:[%s10353_s19 + $0x30] sm:$0xff]  ;;  %p10194_p3 = pnand %p10193_p2, %p10187_p13 }
  0x23   : > { %v10470_v28 = vld [vmem:[%s10353_s19 + $0x20] sm:$0xff]  ;;  %v10491_v32 = vld [vmem:[%s10353_s19 + $0x38] sm:$0xff]  ;;  %v10494_v33 = vld [vmem:[%s10353_s19 + $0xa9] sm:$0xff] }
  0x24   : > { %9247 = vmatmul.mubr.msk.f32.gmra.mxu0 %vm317_vm0, %v10413_v15  ;;  %v10488_v31 = vld [vmem:[%s10353_s19 + $0x99] sm:$0xff]  ;;  %v10497_v34 = vld [vmem:[%s10353_s19 + $0x48] sm:$0xff]  ;;  %v10508_v35 = vld [vmem:[%s10353_s19 + $0xb1] sm:$0xff] }
  0x25   : > { %9283 = vmatmul.mubr.msk.f32.gmra.mxu1 %vm317_vm0, %v10416_v16  ;;  %9249 = vmatprep.mubr.msk.f32.mxu0 %vm317_vm0, %v10419_v17  ;;  %13818 = vst [vmem:[#allocation14_spill] sm:$0xff] %v10497_v34  ;;  %v10511_v36 = vld [vmem:[%s10353_s19 + $0x50] sm:$0xff]  ;;  %v10514_v37 = vld [vmem:[%s10353_s19 + $0xc1] sm:$0xff]  ;;  %v10534_v41 = vld [vmem:[%s10353_s19 + $0xd9] sm:$0xff] }
  0x26   : > { %9285 = vmatprep.mubr.msk.f32.mxu1 %vm317_vm0, %v10422_v18  ;;  %v10517_v38 = vld [vmem:[%s10353_s19 + $0x60] sm:$0xff]  ;;  %v10528_v39 = vld [vmem:[%s10353_s19 + $0xc9] sm:$0xff]  ;;  %v10537_v42 = vld [vmem:[%s10353_s19 + $0x78] sm:$0xff] }
  0x27   : > { %13819 = vst [vmem:[#allocation15_spill] sm:$0xff] %v10517_v38  ;;  %v10531_v40 = vld [vmem:[%s10353_s19 + $0x68] sm:$0xff]  ;;  %13820 = vst [vmem:[#allocation16_spill] sm:$0xff] %v10537_v42  ;;  %v10558_v45 = vld [vmem:[%s10353_s19 + $0x80] sm:$0xff] }
  0x28   : > { %9250 = vmatmul.mubr.msk.f32.gmra.mxu0 %vm317_vm0, %v10433_v19  ;;  %v10555_v44 = vld [vmem:[%s10353_s19 + $0xe1] sm:$0xff]  ;;  %13821 = vst [vmem:[#allocation17_spill] sm:$0xff] %v10558_v45  ;;  %v10561_v46 = vld [vmem:[%s10353_s19 + $0xf1] sm:$0xff]  ;;  %v10575_v48 = vld [vmem:[%s10353_s19 + $0xf9] sm:$0xff] }
  0x29   : > { %9286 = vmatmul.mubr.msk.f32.gmra.mxu1 %vm317_vm0, %v10436_v20  ;;  %9252 = vmatprep.mubr.msk.f32.mxu0 %vm317_vm0, %v10439_v21  ;;  %v10564_v47 = vld [vmem:[%s10353_s19 + $0x90] sm:$0xff]  ;;  %v10578_v49 = vld [vmem:[%s10353_s19 + $0x98] sm:$0xff]  ;;  %v10584_v51 = vld [vmem:[%s10353_s19 + $0xa8] sm:$0xff] }
  0x2a   : > { %9290 = vmatprep.mubr.msk.f32.mxu1 %vm317_vm0, %v250_v22  ;;  %v10581_v50 = vld [vmem:[%s10353_s19 + $0x109] sm:$0xff]  ;;  %v10595_v52 = vld [vmem:[%s10353_s19 + $0x111] sm:$0xff]  ;;  %v10601_v54 = vld [vmem:[%s10353_s19 + $0xc0] sm:$0xff] }
  0x2b   : > { %13822 = vst [vmem:[#allocation18_spill] sm:$0xff] %v10581_v50  ;;  %13823 = vst [vmem:[#allocation19_spill] sm:$0xff] %v10595_v52  ;;  %v10598_v53 = vld [vmem:[%s10353_s19 + $0xb0] sm:$0xff]  ;;  %v966_v55 = vld [vmem:[%s10353_s19 + $0x2] sm:$0xff] }
  0x2c   : > { %9253 = vmatmul.mubr.msk.f32.gmra.mxu0 %vm317_vm0, %v10450_v23  ;;  %13824 = vst [vmem:[#allocation20_spill] sm:$0xff] %v10601_v54  ;;  %v10612_v56 = vld [vmem:[%s10353_s19 + $0xc8] sm:$0xff]  ;;  %v10616_v58 = vld [vmem:[%s10353_s19 + $0xd8] sm:$0xff]  ;;  %v10634_v61 = vld [vmem:[%s10353_s19 + $0xe0] sm:$0xff] }
  0x2d   : > { %9291 = vmatmul.mubr.msk.f32.vlgmr.msra.gmra.mxu1 %vm317_vm0, %v251_v24  ;;  %9255 = vmatprep.mubr.msk.f32.mxu0 %vm317_vm0, %v10454_v25  ;;  %v967_v57 = vld [vmem:[%s10353_s19 + $0xa] sm:$0xff]  ;;  %v10619_v59 = vld [vmem:[%s10353_s19 + $0x1a] sm:$0xff]  ;;  %v10637_v62 = vld [vmem:[%s10353_s19 + $0x22] sm:$0xff] }
  0x2e   : > { %9293 = vmatprep.mubr.msk.f32.mxu1 %vm317_vm0, %v10457_v26  ;;  %9389 = vmatpush3.xpose.msk.msra.mxu1 %vm317_vm0, %v7911_v9  ;;  %v10640_v63 = vld [vmem:[%s10353_s19 + $0xf0] sm:$0xff]  ;;  %v10658_v1 = vld [vmem:[%s10353_s19 + $0xf8] sm:$0xff]  ;;  %v10664_v3 = vld [vmem:[%s10353_s19 + $0x108] sm:$0xff] }
  0x2f   : > { %9488 = vmatprep.subr.msk.mxu1 %vm317_vm0, %v10542_v43  ;;  %v10643_v0 = vld [vmem:[%s10353_s19 + $0x32] sm:$0xff]  ;;  %v10661_v2 = vld [vmem:[%s10353_s19 + $0x3a] sm:$0xff]  ;;  %v10667_v5 = vld [vmem:[%s10353_s19 + $0x4a] sm:$0xff] }
  0x30   : > { %9256 = vmatmul.mubr.msk.f32.gmra.mxu0 %vm317_vm0, %v10467_v27  ;;  %13825 = vst [vmem:[#allocation21_spill] sm:$0xff] %v10667_v5  ;;  %v10678_v9 = vld [vmem:[%s10353_s19 + $0x110] sm:$0xff]  ;;  %v10684_v22 = vld [vmem:[%s10353_s19 + $0x120] sm:$0xff]  ;;  %v10704_v20 = vld [vmem:[%s10353_s19 + $0x138] sm:$0xff] }
  0x31   : > { %9294 = vmatmul.mubr.msk.f32.gmra.mxu1 %vm317_vm0, %v10470_v28  ;;  %9258 = vmatprep.mubr.msk.f32.mxu0 %vm317_vm0, %v10473_v29  ;;  %v10687_v24 = vld [vmem:[%s10353_s19 + $0x62] sm:$0xff]  ;;  %v10707_v18 = vld [vmem:[%s10353_s19 + $0x7a] sm:$0xff]  ;;  %v10724_v12 = vld [vmem:[%s10353_s19 + $0x150] sm:$0xff] }
  0x32   : > { %9296 = vmatprep.mubr.msk.f32.mxu1 %vm317_vm0, %v10476_v30  ;;  %13827 = vst [vmem:[#allocation23_spill] sm:$0xff] %v10687_v24  ;;  %13829 = vst [vmem:[#allocation25_spill] sm:$0xff] %v10707_v18  ;;  %v10718_v16 = vld [vmem:[%s10353_s19 + $0x140] sm:$0xff]  ;;  %v10727_v8 = vld [vmem:[%s10353_s19 + $0x92] sm:$0xff] }
  0x33   : > { %v10721_v14 = vld [vmem:[%s10353_s19 + $0x82] sm:$0xff]  ;;  %13831 = vst [vmem:[#allocation27_spill] sm:$0xff] %v10727_v8 }
  0x34   : > { %9259 = vmatmul.mubr.msk.f32.gmra.mxu0 %vm317_vm0, %v10488_v31  ;;  %13830 = vst [vmem:[#allocation26_spill] sm:$0xff] %v10721_v14  ;;  %v10744_v6 = vld [vmem:[%s10353_s19 + $0x168] sm:$0xff] }
  0x35   : > { %9297 = vmatmul.mubr.msk.f32.gmra.mxu1 %vm317_vm0, %v10491_v32  ;;  %9261 = vmatprep.mubr.msk.f32.mxu0 %vm317_vm0, %v10494_v33  ;;  %v10764_v4 = vld [vmem:[%s10353_s19 + $0xc2] sm:$0xff] }
  0x36   : > { %9299 = vmatprep.mubr.msk.f32.mxu1 %vm317_vm0, %v10497_v34  ;;  %13835 = vst [vmem:[#allocation31_spill] sm:$0xff] %v10764_v4 }
  0x38   : > { %9262 = vmatmul.mubr.msk.f32.gmra.mxu0 %vm317_vm0, %v10508_v35 }
  0x39   : > { %9300 = vmatmul.mubr.msk.f32.gmra.mxu1 %vm317_vm0, %v10511_v36  ;;  %9264 = vmatprep.mubr.msk.f32.mxu0 %vm317_vm0, %v10514_v37 }
  0x3a   : > { %9302 = vmatprep.mubr.msk.f32.mxu1 %vm317_vm0, %v10517_v38 }
  0x3c   : > { %9265 = vmatmul.mubr.msk.f32.gmra.mxu0 %vm317_vm0, %v10528_v39 }
  0x3d   : > { %9303 = vmatmul.mubr.msk.f32.gmra.mxu1 %vm317_vm0, %v10531_v40  ;;  %9267 = vmatprep.mubr.msk.f32.mxu0 %vm317_vm0, %v10534_v41 }
  0x3e   : > { %9305 = vmatprep.mubr.msk.f32.mxu1 %vm317_vm0, %v10537_v42 }
  0x40   : > { %9268 = vmatmul.mubr.msk.f32.gmra.mxu0 %vm317_vm0, %v10555_v44 }
  0x41   : > { %9306 = vmatmul.mubr.msk.f32.gmra.mxu1 %vm317_vm0, %v10558_v45  ;;  %9270 = vmatprep.mubr.msk.f32.mxu0 %vm317_vm0, %v10561_v46 }
  0x42   : > { %9308 = vmatprep.mubr.msk.f32.mxu1 %vm317_vm0, %v10564_v47 }
  0x44   : > { %9271 = vmatmul.mubr.msk.f32.gmra.mxu0 %vm317_vm0, %v10575_v48 }
  0x45   : > { %9309 = vmatmul.mubr.msk.f32.gmra.mxu1 %vm317_vm0, %v10578_v49  ;;  %9273 = vmatprep.mubr.msk.f32.mxu0 %vm317_vm0, %v10581_v50 }
  0x46   : > { %9311 = vmatprep.mubr.msk.f32.mxu1 %vm317_vm0, %v10584_v51 }
  0x48   : > { %9274 = vmatmul.mubr.msk.f32.gmra.mxu0 %vm317_vm0, %v10595_v52 }
  0x49   : > { %9312 = vmatmul.mubr.msk.f32.gmra.mxu1 %vm317_vm0, %v10598_v53  ;;  %9340 = vmatprep.mubr.msk.f32.mxu0 %vm317_vm0, %v966_v55  ;;  %v10698_v55 = vld [vmem:[%s10353_s19 + $0x128] sm:$0xff] }
  0x4a   : > { %9314 = vmatprep.mubr.msk.f32.mxu1 %vm317_vm0, %v10601_v54 }
  0x4c   : > { %9341 = vmatmul.mubr.msk.f32.vlgmr.msra.gmra.mxu0 %vm317_vm0, %v967_v57  ;;  %v10701_v57 = vld [vmem:[%s10353_s19 + $0x6a] sm:$0xff] }
  0x4d   : > { %9315 = vmatmul.mubr.msk.f32.gmra.mxu1 %vm317_vm0, %v10612_v56  ;;  %9343 = vmatprep.mubr.msk.f32.mxu0 %vm317_vm0, %v10619_v59  ;;  %13828 = vst [vmem:[#allocation24_spill] sm:$0xff] %v10701_v57 }
  0x4e   : > { %9317 = vmatprep.mubr.msk.f32.mxu1 %vm317_vm0, %v10616_v58  ;;  %9439 = vmatpush3.xpose.msk.msra.mxu0 %vm317_vm0, %v10381_v10  ;;  %v10681_v10 = vld [vmem:[%s10353_s19 + $0x52] sm:$0xff] }
  0x4f   : > { %9538 = vmatprep.subr.msk.mxu0 %vm317_vm0, %v10627_v60  ;;  %13826 = vst [vmem:[#allocation22_spill] sm:$0xff] %v10681_v10 }
  0x50   : > { %9344 = vmatmul.mubr.msk.f32.gmra.mxu0 %vm317_vm0, %v10637_v62 }
  0x51   : > { %9318 = vmatmul.mubr.msk.f32.gmra.mxu1 %vm317_vm0, %v10634_v61  ;;  %9346 = vmatprep.mubr.msk.f32.mxu0 %vm317_vm0, %v10643_v0 }
  0x52   : > { %9320 = vmatprep.mubr.msk.f32.mxu1 %vm317_vm0, %v10640_v63 }
  0x54   : > { %9347 = vmatmul.mubr.msk.f32.gmra.mxu0 %vm317_vm0, %v10661_v2 }
  0x55   : > { %9321 = vmatmul.mubr.msk.f32.gmra.mxu1 %vm317_vm0, %v10658_v1  ;;  %9349 = vmatprep.mubr.msk.f32.mxu0 %vm317_vm0, %v10667_v5 }
  0x56   : > { %9323 = vmatprep.mubr.msk.f32.mxu1 %vm317_vm0, %v10664_v3 }
  0x58   : > { %9350 = vmatmul.mubr.msk.f32.gmra.mxu0 %vm317_vm0, %v10681_v10 }
  0x59   : > { %9324 = vmatmul.mubr.msk.f32.gmra.mxu1 %vm317_vm0, %v10678_v9  ;;  %9352 = vmatprep.mubr.msk.f32.mxu0 %vm317_vm0, %v10687_v24  ;;  %v10747_v24 = vld [vmem:[%s10353_s19 + $0xaa] sm:$0xff] }
  0x5a   : > { %9326 = vmatprep.mubr.msk.f32.mxu1 %vm317_vm0, %v10684_v22  ;;  %13833 = vst [vmem:[#allocation29_spill] sm:$0xff] %v10747_v24 }
  0x5c   : > { %9353 = vmatmul.mubr.msk.f32.gmra.mxu0 %vm317_vm0, %v10701_v57  ;;  %v10741_v57 = vld [vmem:[%s10353_s19 + $0x9a] sm:$0xff] }
  0x5d   : > { %9327 = vmatmul.mubr.msk.f32.gmra.mxu1 %vm317_vm0, %v10698_v55  ;;  %9355 = vmatprep.mubr.msk.f32.mxu0 %vm317_vm0, %v10707_v18  ;;  %v10738_v18 = vld [vmem:[%s10353_s19 + $0x158] sm:$0xff]  ;;  %13832 = vst [vmem:[#allocation28_spill] sm:$0xff] %v10741_v57 }
  0x5e   : > { %9329 = vmatprep.mubr.msk.f32.mxu1 %vm317_vm0, %v10704_v20 }
  0x60   : > { %9356 = vmatmul.mubr.msk.f32.gmra.mxu0 %vm317_vm0, %v10721_v14  ;;  %v10761_v14 = vld [vmem:[%s10353_s19 + $0xb2] sm:$0xff] }
  0x61   : > { %9330 = vmatmul.mubr.msk.f32.gmra.mxu1 %vm317_vm0, %v10718_v16  ;;  %9358 = vmatprep.mubr.msk.f32.mxu0 %vm317_vm0, %v10727_v8  ;;  %v10758_v8 = vld [vmem:[%s10353_s19 + $0x170] sm:$0xff]  ;;  %13834 = vst [vmem:[#allocation30_spill] sm:$0xff] %v10761_v14 }
  0x62   : > { %9332 = vmatprep.mubr.msk.f32.mxu1 %vm317_vm0, %v10724_v12 }
  0x64   : > { %9359 = vmatmul.mubr.msk.f32.gmra.mxu0 %vm317_vm0, %v10741_v57  ;;  %v10778_v57 = vld [vmem:[%s10353_s19 + $0xda] sm:$0xff] }
  0x65   : > { %9333 = vmatmul.mubr.msk.f32.gmra.mxu1 %vm317_vm0, %v10738_v18  ;;  %9361 = vmatprep.mubr.msk.f32.mxu0 %vm317_vm0, %v10747_v24  ;;  %v10775_v24 = vld [vmem:[%s10353_s19 + $0xca] sm:$0xff] }
  0x66   : > { %9335 = vmatprep.mubr.msk.f32.mxu1 %vm317_vm0, %v10744_v6 }
  0x68   : > { %9362 = vmatmul.mubr.msk.f32.gmra.mxu0 %vm317_vm0, %v10761_v14  ;;  %v10787_v14 = vld [vmem:[%s13729_s1 + $0x38] sm:$0xff] }
  0x69   : > { %9336 = vmatmul.mubr.msk.f32.gmra.mxu1 %vm317_vm0, %v10758_v8  ;;  %9364 = vmatprep.mubr.msk.f32.mxu0 %vm317_vm0, %v10764_v4  ;;  %v10797_v4 = vld [vmem:[%s10353_s19 + $0xf2] sm:$0xff] }
  0x6a   : > { %9390 = vmatprep.mubr.msk.f32.mxu1 %vm317_vm0, %v10457_v26  ;;  %v10794_v26 = vld [vmem:[%s10353_s19 + $0xe2] sm:$0xff]  ;;  %13837 = vst [vmem:[#allocation33_spill] sm:$0xff] %v10797_v4 }
  0x6b   : > { %13836 = vst [vmem:[#allocation32_spill] sm:$0xff] %v10794_v26 }
  0x6c   : > { %9365 = vmatmul.mubr.msk.f32.gmra.mxu0 %vm317_vm0, %v10775_v24 }
  0x6d   : > { %9391 = vmatmul.mubr.msk.f32.vlgmr.msra.gmra.mxu1 %vm317_vm0, %v10470_v28  ;;  %9367 = vmatprep.mubr.msk.f32.mxu0 %vm317_vm0, %v10778_v57  ;;  %v10812_v28 = vld [vmem:[%s10353_s19 + $0xfa] sm:$0xff] }
  0x6e   : > { %9393 = vmatprep.mubr.msk.f32.mxu1 %vm317_vm0, %v10476_v30  ;;  %9489 = vmatpush3.xpose.msk.msra.mxu1 %vm317_vm0, %v10542_v43  ;;  %v10815_v43 = vld [vmem:[%s10353_s19 + $0x10a] sm:$0xff] }
  0x6f   : > { %9588 = vmatprep.subr.msk.mxu1 %vm317_vm0, %v10787_v14  ;;  %13838 = vst [vmem:[#allocation34_spill] sm:$0xff] %v10815_v43 }
  0x70   : > { %9368 = vmatmul.mubr.msk.f32.gmra.mxu0 %vm317_vm0, %v10794_v26 }
  0x71   : > { %9394 = vmatmul.mubr.msk.f32.gmra.mxu1 %vm317_vm0, %v10491_v32  ;;  %9370 = vmatprep.mubr.msk.f32.mxu0 %vm317_vm0, %v10797_v4  ;;  %v10826_v4 = vld [vmem:[%s10353_s19 + $0x112] sm:$0xff] }
  0x72   : > { %9396 = vmatprep.mubr.msk.f32.mxu1 %vm317_vm0, %v10497_v34  ;;  %v10829_v34 = vld [vmem:[%s10353_s19 + $0x122] sm:$0xff] }
  0x73   : > { %13839 = vst [vmem:[#allocation35_spill] sm:$0xff] %v10829_v34 }
  0x74   : > { %9371 = vmatmul.mubr.msk.f32.gmra.mxu0 %vm317_vm0, %v10812_v28 }
  0x75   : > { %9397 = vmatmul.mubr.msk.f32.gmra.mxu1 %vm317_vm0, %v10511_v36  ;;  %9373 = vmatprep.mubr.msk.f32.mxu0 %vm317_vm0, %v10815_v43  ;;  %v10840_v43 = vld [vmem:[%s10353_s19 + $0x12a] sm:$0xff] }
  0x76   : > { %9399 = vmatprep.mubr.msk.f32.mxu1 %vm317_vm0, %v10517_v38  ;;  %v10843_v38 = vld [vmem:[%s10353_s19 + $0x13a] sm:$0xff] }
  0x77   : > { %13840 = vst [vmem:[#allocation36_spill] sm:$0xff] %v10843_v38 }
  0x78   : > { %9374 = vmatmul.mubr.msk.f32.gmra.mxu0 %vm317_vm0, %v10826_v4 }
  0x79   : > { %9400 = vmatmul.mubr.msk.f32.gmra.mxu1 %vm317_vm0, %v10531_v40  ;;  %9376 = vmatprep.mubr.msk.f32.mxu0 %vm317_vm0, %v10829_v34  ;;  %v10854_v34 = vld [vmem:[%s10353_s19 + $0x142] sm:$0xff] }
  0x7a   : > { %9402 = vmatprep.mubr.msk.f32.mxu1 %vm317_vm0, %v10537_v42  ;;  %v10857_v42 = vld [vmem:[%s10353_s19 + $0x152] sm:$0xff] }
  0x7b   : > { %13841 = vst [vmem:[#allocation37_spill] sm:$0xff] %v10857_v42 }
  0x7c   : > { %9377 = vmatmul.mubr.msk.f32.gmra.mxu0 %vm317_vm0, %v10840_v43 }
  0x7d   : > { %9403 = vmatmul.mubr.msk.f32.gmra.mxu1 %vm317_vm0, %v10558_v45  ;;  %9379 = vmatprep.mubr.msk.f32.mxu0 %vm317_vm0, %v10843_v38  ;;  %v10868_v38 = vld [vmem:[%s10353_s19 + $0x15a] sm:$0xff]  ;;  %v10871_v45 = vld [vmem:[%s10353_s19 + $0x16a] sm:$0xff] }
  0x7e   : > { %9405 = vmatprep.mubr.msk.f32.mxu1 %vm317_vm0, %v10564_v47 }
  0x80   : > { %9380 = vmatmul.mubr.msk.f32.gmra.mxu0 %vm317_vm0, %v10854_v34 }
  0x81   : > { %9406 = vmatmul.mubr.msk.f32.gmra.mxu1 %vm317_vm0, %v10578_v49  ;;  %9382 = vmatprep.mubr.msk.f32.mxu0 %vm317_vm0, %v10857_v42  ;;  %v10882_v42 = vld [vmem:[%s10353_s19 + $0x172] sm:$0xff] }
  0x82   : > { %9408 = vmatprep.mubr.msk.f32.mxu1 %vm317_vm0, %v10584_v51 }
  0x84   : > { %9383 = vmatmul.mubr.msk.f32.gmra.mxu0 %vm317_vm0, %v10868_v38 }
  0x85   : > { %9409 = vmatmul.mubr.msk.f32.gmra.mxu1 %vm317_vm0, %v10598_v53  ;;  %9385 = vmatprep.mubr.msk.f32.mxu0 %vm317_vm0, %v10871_v45 }
  0x86   : > { %9411 = vmatprep.mubr.msk.f32.mxu1 %vm317_vm0, %v10601_v54  ;;  %v10899_v54 = vld [vmem:[%s13729_s1 + $0x40] sm:$0xff] }
  0x88   : > { %9386 = vmatmul.mubr.msk.f32.gmra.mxu0 %vm317_vm0, %v10882_v42 }
  0x89   : > { %9412 = vmatmul.mubr.msk.f32.gmra.mxu1 %vm317_vm0, %v10612_v56  ;;  %9440 = vmatprep.mubr.msk.f32.mxu0 %vm317_vm0, %v10367_v7  ;;  %v10950_v7 = vld [vmem:[%s10353_s19 + $0x180] sm:$0xff] }
  0x8a   : > { %9414 = vmatprep.mubr.msk.f32.mxu1 %vm317_vm0, %v10616_v58 }
  0x8c   : > { %9441 = vmatmul.mubr.msk.f32.vlgmr.msra.gmra.mxu0 %vm317_vm0, %v10388_v11  ;;  %v10961_v11 = vld [vmem:[%s10353_s19 + $0x188] sm:$0xff] }
  0x8d   : > { %9415 = vmatmul.mubr.msk.f32.gmra.mxu1 %vm317_vm0, %v10634_v61  ;;  %9443 = vmatprep.mubr.msk.f32.mxu0 %vm317_vm0, %v10394_v13 }
  0x8e   : > { %9417 = vmatprep.mubr.msk.f32.mxu1 %vm317_vm0, %v10640_v63  ;;  %9539 = vmatpush3.xpose.msk.msra.mxu0 %vm317_vm0, %v10627_v60  ;;  %v13844_v60 = vld [vmem:[#allocation7_spill] sm:$0xff] }
  0x8f   : > { %9638 = vmatprep.subr.msk.mxu0 %vm317_vm0, %v10899_v54 }
  0x90   : > { %9444 = vmatmul.mubr.msk.f32.gmra.mxu0 %vm317_vm0, %v10413_v15 }
  0x91   : > { %9418 = vmatmul.mubr.msk.f32.gmra.mxu1 %vm317_vm0, %v10658_v1  ;;  %9446 = vmatprep.mubr.msk.f32.mxu0 %vm317_vm0, %v10419_v17 }
  0x92   : > { %9420 = vmatprep.mubr.msk.f32.mxu1 %vm317_vm0, %v10664_v3 }
  0x94   : > { %9447 = vmatmul.mubr.msk.f32.gmra.mxu0 %vm317_vm0, %v10433_v19 }
  0x95   : > { %9421 = vmatmul.mubr.msk.f32.gmra.mxu1 %vm317_vm0, %v10678_v9  ;;  %9449 = vmatprep.mubr.msk.f32.mxu0 %vm317_vm0, %v10439_v21 }
  0x96   : > { %9423 = vmatprep.mubr.msk.f32.mxu1 %vm317_vm0, %v10684_v22 }
  0x98   : > { %9450 = vmatmul.mubr.msk.f32.gmra.mxu0 %vm317_vm0, %v10450_v23 }
  0x99   : > { %9424 = vmatmul.mubr.msk.f32.gmra.mxu1 %vm317_vm0, %v10698_v55  ;;  %9452 = vmatprep.mubr.msk.f32.mxu0 %vm317_vm0, %v10454_v25 }
  0x9a   : > { %9426 = vmatprep.mubr.msk.f32.mxu1 %vm317_vm0, %v10704_v20 }
  0x9c   : > { %9453 = vmatmul.mubr.msk.f32.gmra.mxu0 %vm317_vm0, %v10467_v27 }
  0x9d   : > { %9427 = vmatmul.mubr.msk.f32.gmra.mxu1 %vm317_vm0, %v10718_v16  ;;  %9455 = vmatprep.mubr.msk.f32.mxu0 %vm317_vm0, %v10473_v29 }
  0x9e   : > { %9429 = vmatprep.mubr.msk.f32.mxu1 %vm317_vm0, %v10724_v12 }
  0xa0   : > { %9456 = vmatmul.mubr.msk.f32.gmra.mxu0 %vm317_vm0, %v10488_v31 }
  0xa1   : > { %9430 = vmatmul.mubr.msk.f32.gmra.mxu1 %vm317_vm0, %v10738_v18  ;;  %9458 = vmatprep.mubr.msk.f32.mxu0 %vm317_vm0, %v10494_v33 }
  0xa2   : > { %9432 = vmatprep.mubr.msk.f32.mxu1 %vm317_vm0, %v10744_v6 }
  0xa4   : > { %9459 = vmatmul.mubr.msk.f32.gmra.mxu0 %vm317_vm0, %v10508_v35 }
  0xa5   : > { %9433 = vmatmul.mubr.msk.f32.gmra.mxu1 %vm317_vm0, %v10758_v8  ;;  %9461 = vmatprep.mubr.msk.f32.mxu0 %vm317_vm0, %v10514_v37 }
  0xa6   : > { %9435 = vmatprep.mubr.msk.f32.mxu1 %vm317_vm0, %v10950_v7 }
  0xa8   : > { %9462 = vmatmul.mubr.msk.f32.gmra.mxu0 %vm317_vm0, %v10528_v39 }
  0xa9   : > { %9436 = vmatmul.mubr.msk.f32.gmra.mxu1 %vm317_vm0, %v10961_v11  ;;  %9464 = vmatprep.mubr.msk.f32.mxu0 %vm317_vm0, %v10534_v41 }
  0xaa   : > { %9490 = vmatprep.mubr.msk.f32.mxu1 %vm317_vm0, %v10619_v59  ;;  %v13843_v59 = vld [vmem:[#allocation23_spill] sm:$0xff] }
  0xac   : > { %9465 = vmatmul.mubr.msk.f32.gmra.mxu0 %vm317_vm0, %v10555_v44 }
  0xad   : > { %9491 = vmatmul.mubr.msk.f32.vlgmr.msra.gmra.mxu1 %vm317_vm0, %v10637_v62  ;;  %9467 = vmatprep.mubr.msk.f32.mxu0 %vm317_vm0, %v10561_v46  ;;  %v13845_v62 = vld [vmem:[#allocation24_spill] sm:$0xff] }
  0xae   : > { %9493 = vmatprep.mubr.msk.f32.mxu1 %vm317_vm0, %v10643_v0  ;;  %9589 = vmatpush3.xpose.msk.msra.mxu1 %vm317_vm0, %v10787_v14  ;;  %v13842_v14 = vld [vmem:[#allocation6_spill] sm:$0xff] }
  0xb0   : > { %9468 = vmatmul.mubr.msk.f32.gmra.mxu0 %vm317_vm0, %v10575_v48 }
  0xb1   : > { %9494 = vmatmul.mubr.msk.f32.gmra.mxu1 %vm317_vm0, %v10661_v2  ;;  %9470 = vmatprep.mubr.msk.f32.mxu0 %vm317_vm0, %v10581_v50  ;;  %v13853_v50 = vld [vmem:[#allocation28_spill] sm:$0xff] }
  0xb2   : > { %9496 = vmatprep.mubr.msk.f32.mxu1 %vm317_vm0, %v10667_v5  ;;  %v13846_v5 = vld [vmem:[#allocation8_spill] sm:$0xff] }
  0xb4   : > { %9471 = vmatmul.mubr.msk.f32.gmra.mxu0 %vm317_vm0, %v10595_v52  ;;  %v13847_v52 = vld [vmem:[#allocation25_spill] sm:$0xff] }
  0xb5   : > { %9497 = vmatmul.mubr.msk.f32.gmra.mxu1 %vm317_vm0, %v10681_v10  ;;  %9473 = vmatprep.mubr.msk.f32.mxu0 %vm317_vm0, %v13842_v14  ;;  %v13848_v10 = vld [vmem:[#allocation9_spill] sm:$0xff]  ;;  %v13849_v14 = vld [vmem:[#allocation26_spill] sm:$0xff] }
  0xb6   : > { %9499 = vmatprep.mubr.msk.f32.mxu1 %vm317_vm0, %v13843_v59  ;;  %v13850_v59 = vld [vmem:[#allocation10_spill] sm:$0xff] }
  0xb8   : > { %9474 = vmatmul.mubr.msk.f32.gmra.mxu0 %vm317_vm0, %v13844_v60  ;;  %v13851_v60 = vld [vmem:[#allocation27_spill] sm:$0xff] }
  0xb9   : > { %9500 = vmatmul.mubr.msk.f32.gmra.mxu1 %vm317_vm0, %v13845_v62  ;;  %9476 = vmatprep.mubr.msk.f32.mxu0 %vm317_vm0, %v13846_v5  ;;  %v13852_v62 = vld [vmem:[#allocation11_spill] sm:$0xff]  ;;  %v13854_v5 = vld [vmem:[#allocation12_spill] sm:$0xff] }
  0xba   : > { %9502 = vmatprep.mubr.msk.f32.mxu1 %vm317_vm0, %v13847_v52  ;;  %v13855_v52 = vld [vmem:[#allocation29_spill] sm:$0xff] }
  0xbc   : > { %9477 = vmatmul.mubr.msk.f32.gmra.mxu0 %vm317_vm0, %v13848_v10  ;;  %v11022_v10 = vld [vmem:[%s10353_s19 + $0x181] sm:$0xff] }
  0xbd   : > { %9503 = vmatmul.mubr.msk.f32.gmra.mxu1 %vm317_vm0, %v13849_v14  ;;  %9479 = vmatprep.mubr.msk.f32.mxu0 %vm317_vm0, %v13850_v59  ;;  %v13856_v14 = vld [vmem:[#allocation13_spill] sm:$0xff]  ;;  %v13857_v59 = vld [vmem:[#allocation30_spill] sm:$0xff] }
  0xbe   : > { %9505 = vmatprep.mubr.msk.f32.mxu1 %vm317_vm0, %v13851_v60 }
  0xc0   : > { %9480 = vmatmul.mubr.msk.f32.gmra.mxu0 %vm317_vm0, %v13852_v62  ;;  %v13858_v62 = vld [vmem:[#allocation31_spill] sm:$0xff] }
  0xc1   : > { %9506 = vmatmul.mubr.msk.f32.gmra.mxu1 %vm317_vm0, %v13853_v50  ;;  %9482 = vmatprep.mubr.msk.f32.mxu0 %vm317_vm0, %v13854_v5  ;;  %v11033_v50 = vld [vmem:[%s10353_s19 + $0x189] sm:$0xff] }
  0xc2   : > { %9508 = vmatprep.mubr.msk.f32.mxu1 %vm317_vm0, %v13855_v52  ;;  %v13860_v5 = vld [vmem:[#allocation14_spill] sm:$0xff] }
  0xc4   : > { %9483 = vmatmul.mubr.msk.f32.gmra.mxu0 %vm317_vm0, %v13856_v14  ;;  %v13859_v14 = vld [vmem:[#allocation33_spill] sm:$0xff] }
  0xc5   : > { %9509 = vmatmul.mubr.msk.f32.gmra.mxu1 %vm317_vm0, %v13857_v59  ;;  %9485 = vmatprep.mubr.msk.f32.mxu0 %vm317_vm0, %v11022_v10 }
  0xc6   : > { %9511 = vmatprep.mubr.msk.f32.mxu1 %vm317_vm0, %v13858_v62 }
  0xc8   : > { %9486 = vmatmul.mubr.msk.f32.gmra.mxu0 %vm317_vm0, %v11033_v50 }
  0xc9   : > { %9512 = vmatmul.mubr.msk.f32.gmra.mxu1 %vm317_vm0, %v10775_v24  ;;  %9540 = vmatprep.mubr.msk.f32.mxu0 %vm317_vm0, %v10476_v30  ;;  %v13861_v30 = vld [vmem:[#allocation34_spill] sm:$0xff] }
  0xca   : > { %9514 = vmatprep.mubr.msk.f32.mxu1 %vm317_vm0, %v10778_v57 }
  0xcc   : > { %9541 = vmatmul.mubr.msk.f32.vlgmr.msra.gmra.mxu0 %vm317_vm0, %v10491_v32  ;;  %v13863_v32 = vld [vmem:[#allocation35_spill] sm:$0xff] }
  0xcd   : > { %9515 = vmatmul.mubr.msk.f32.gmra.mxu1 %vm317_vm0, %v10794_v26  ;;  %9543 = vmatprep.mubr.msk.f32.mxu0 %vm317_vm0, %v13860_v5  ;;  %v13862_v26 = vld [vmem:[#allocation15_spill] sm:$0xff]  ;;  %v13866_v5 = vld [vmem:[#allocation36_spill] sm:$0xff] }
  0xce   : > { %9517 = vmatprep.mubr.msk.f32.mxu1 %vm317_vm0, %v13859_v14  ;;  %9639 = vmatpush3.xpose.msk.msra.mxu0 %vm317_vm0, %v10899_v54  ;;  %v13864_v54 = vld [vmem:[#allocation16_spill] sm:$0xff] }
  0xd0   : > { %9544 = vmatmul.mubr.msk.f32.gmra.mxu0 %vm317_vm0, %v10511_v36  ;;  %v13865_v36 = vld [vmem:[#allocation17_spill] sm:$0xff] }
  0xd1   : > { %9518 = vmatmul.mubr.msk.f32.gmra.mxu1 %vm317_vm0, %v10812_v28  ;;  %9546 = vmatprep.mubr.msk.f32.mxu0 %vm317_vm0, %v13862_v26  ;;  %v13867_v26 = vld [vmem:[#allocation37_spill] sm:$0xff] }
  0xd2   : > { %9520 = vmatprep.mubr.msk.f32.mxu1 %vm317_vm0, %v13861_v30 }
  0xd4   : > { %9547 = vmatmul.mubr.msk.f32.gmra.mxu0 %vm317_vm0, %v10531_v40 }
  0xd5   : > { %9521 = vmatmul.mubr.msk.f32.gmra.mxu1 %vm317_vm0, %v10826_v4  ;;  %9549 = vmatprep.mubr.msk.f32.mxu0 %vm317_vm0, %v13864_v54 }
  0xd6   : > { %9523 = vmatprep.mubr.msk.f32.mxu1 %vm317_vm0, %v13863_v32 }
  0xd8   : > { %9550 = vmatmul.mubr.msk.f32.gmra.mxu0 %vm317_vm0, %v13865_v36  ;;  %v11102_v36 = vld [vmem:[%s10353_s19 + $0x182] sm:$0xff] }
  0xd9   : > { %9524 = vmatmul.mubr.msk.f32.gmra.mxu1 %vm317_vm0, %v10840_v43  ;;  %9552 = vmatprep.mubr.msk.f32.mxu0 %vm317_vm0, %v10564_v47 }
  0xda   : > { %9526 = vmatprep.mubr.msk.f32.mxu1 %vm317_vm0, %v13866_v5 }
  0xdc   : > { %v9242_v4 = vpop.f32.mrf.mxu0  ;;  %9553 = vmatmul.mubr.msk.f32.gmra.mxu0 %vm317_vm0, %v10578_v49 }
  0xdd   : > { %v11077_v40 = vpop.f32.mrf.mxu1  ;;  %9527 = vmatmul.mubr.msk.f32.gmra.mxu1 %vm317_vm0, %v10854_v34  ;;  %9555 = vmatprep.mubr.msk.f32.mxu0 %vm317_vm0, %v10584_v51  ;;  %v13869_v34 = vld [vmem:[#allocation20_spill] sm:$0xff] }
  0xde   : > { %9529 = vmatprep.mubr.msk.f32.mxu1 %vm317_vm0, %v13867_v26  ;;  %v483_v43 = vpop.f32.mrf.mxu0 }
  0xdf   : > { %v11087_v32 = vpop.f32.mrf.mxu1 }
  0xe0   : > { %13868 = vst [vmem:[#allocation6_spill] sm:$0xff] %v11087_v32  ;;  %v9245_v47 = vpop.f32.mrf.mxu0  ;;  %9556 = vmatmul.mubr.msk.f32.gmra.mxu0 %vm317_vm0, %v10598_v53 }
  0xe1   : > { %v11089_v54 = vpop.f32.mrf.mxu1  ;;  %9530 = vmatmul.mubr.msk.f32.gmra.mxu1 %vm317_vm0, %v10868_v38  ;;  %9558 = vmatprep.mubr.msk.f32.mxu0 %vm317_vm0, %v13869_v34  ;;  %v11115_v38 = vld [vmem:[%s10353_s19 + $0x18a] sm:$0xff] }
  0xe2   : > { %9532 = vmatprep.mubr.msk.f32.mxu1 %vm317_vm0, %v10871_v45  ;;  %v493_v49 = vpop.f32.mrf.mxu0  ;;  %13871 = vst [vmem:[#allocation8_spill] sm:$0xff] %v11115_v38 }
  0xe3   : > { %v11099_v51 = vpop.f32.mrf.mxu1 }
  0xe4   : > { %13870 = vst [vmem:[#allocation7_spill] sm:$0xff] %v11099_v51  ;;  %v9248_v5 = vpop.f32.mrf.mxu0  ;;  %9559 = vmatmul.mubr.msk.f32.gmra.mxu0 %vm317_vm0, %v10612_v56 }
  0xe5   : > { %v11104_v26 = vpop.f32.mrf.mxu1  ;;  %9533 = vmatmul.mubr.msk.f32.gmra.mxu1 %vm317_vm0, %v10882_v42  ;;  %9561 = vmatprep.mubr.msk.f32.mxu0 %vm317_vm0, %v10616_v58 }
  0xe6   : > { %9535 = vmatprep.mubr.msk.f32.mxu1 %vm317_vm0, %v11102_v36  ;;  %v503_v45 = vpop.f32.mrf.mxu0 }
  0xe7   : > { %v11117_v53 = vpop.f32.mrf.mxu1 }
  0xe8   : > { %13872 = vst [vmem:[#allocation9_spill] sm:$0xff] %v11117_v53  ;;  %v9251_v34 = vpop.f32.mrf.mxu0  ;;  %9562 = vmatmul.mubr.msk.f32.gmra.mxu0 %vm317_vm0, %v10634_v61 }
  0xe9   : > { %v11119_v51 = vpop.f32.mrf.mxu1  ;;  %9536 = vmatmul.mubr.msk.f32.gmra.mxu1 %vm317_vm0, %v11115_v38  ;;  %9564 = vmatprep.mubr.msk.f32.mxu0 %vm317_vm0, %v10640_v63 }
  0xea   : > { %9590 = vmatprep.mubr.msk.f32.mxu1 %vm317_vm0, %v10394_v13  ;;  %v513_v42 = vpop.f32.mrf.mxu0 }
  0xeb   : > { %v11129_v56 = vpop.f32.mrf.mxu1 }
  0xec   : > { %13873 = vst [vmem:[#allocation10_spill] sm:$0xff] %v11129_v56  ;;  %v9254_v58 = vpop.f32.mrf.mxu0  ;;  %9565 = vmatmul.mubr.msk.f32.gmra.mxu0 %vm317_vm0, %v10658_v1 }
  0xed   : > { %v9292_v53 = vpop.f32.mrf.mxu1  ;;  %9591 = vmatmul.mubr.msk.f32.vlgmr.msra.gmra.mxu1 %vm317_vm0, %v10413_v15  ;;  %9567 = vmatprep.mubr.msk.f32.mxu0 %vm317_vm0, %v10664_v3 }
  0xee   : > { %v11135_v32 = vadd.f32 %v9292_v53, %v9242_v4  ;;  %9593 = vmatprep.mubr.msk.f32.mxu1 %vm317_vm0, %v10419_v17  ;;  %v523_v13 = vpop.f32.mrf.mxu0 }
  0xef   : > { %v807_v61 = vpop.f32.mrf.mxu1 }
  0xf0   : > { %v11141_v63 = vadd.f32 %v807_v61, %v483_v43  ;;  %v9257_v56 = vpop.f32.mrf.mxu0  ;;  %9568 = vmatmul.mubr.msk.f32.gmra.mxu0 %vm317_vm0, %v10678_v9 }
  0xf1   : > { %v9295_v38 = vpop.f32.mrf.mxu1  ;;  %9594 = vmatmul.mubr.msk.f32.gmra.mxu1 %vm317_vm0, %v10433_v19  ;;  %9570 = vmatprep.mubr.msk.f32.mxu0 %vm317_vm0, %v10684_v22 }
  0xf2   : > { %v11147_v15 = vadd.f32 %v9295_v38, %v9245_v47  ;;  %9596 = vmatprep.mubr.msk.f32.mxu1 %vm317_vm0, %v10439_v21  ;;  %v533_v17 = vpop.f32.mrf.mxu0 }
  0xf3   : > { %v817_v1 = vpop.f32.mrf.mxu1 }
  0xf4   : > { %v11153_v3 = vadd.f32 %v817_v1, %v493_v49  ;;  %v9260_v4 = vpop.f32.mrf.mxu0  ;;  %9571 = vmatmul.mubr.msk.f32.gmra.mxu0 %vm317_vm0, %v10698_v55 }
  0xf5   : > { %v9298_v43 = vpop.f32.mrf.mxu1  ;;  %9597 = vmatmul.mubr.msk.f32.gmra.mxu1 %vm317_vm0, %v10450_v23  ;;  %9573 = vmatprep.mubr.msk.f32.mxu0 %vm317_vm0, %v10704_v20 }
  0xf6   : > { %v11159_v19 = vadd.f32 %v9298_v43, %v9248_v5  ;;  %9599 = vmatprep.mubr.msk.f32.mxu1 %vm317_vm0, %v10454_v25  ;;  %v543_v21 = vpop.f32.mrf.mxu0  ;;  %v13875_v43 = vld [vmem:[#allocation21_spill] sm:$0xff] }
  0xf7   : > { %v827_v9 = vpop.f32.mrf.mxu1 }
  0xf8   : > { %v11165_v22 = vadd.f32 %v827_v9, %v503_v45  ;;  %v9263_v47 = vpop.f32.mrf.mxu0  ;;  %9574 = vmatmul.mubr.msk.f32.gmra.mxu0 %vm317_vm0, %v10718_v16 }
  0xf9   : > { %v9301_v49 = vpop.f32.mrf.mxu1  ;;  %9600 = vmatmul.mubr.msk.f32.gmra.mxu1 %vm317_vm0, %v10467_v27  ;;  %9576 = vmatprep.mubr.msk.f32.mxu0 %vm317_vm0, %v10724_v12 }
  0xfa   : > { %v11171_v23 = vadd.f32 %v9301_v49, %v9251_v34  ;;  %9602 = vmatprep.mubr.msk.f32.mxu1 %vm317_vm0, %v10473_v29  ;;  %v553_v20 = vpop.f32.mrf.mxu0 }
  0xfb   : > { %v837_v25 = vpop.f32.mrf.mxu1 }
  0xfc   : > { %v11177_v55 = vadd.f32 %v837_v25, %v513_v42  ;;  %v9266_v5 = vpop.f32.mrf.mxu0  ;;  %9577 = vmatmul.mubr.msk.f32.gmra.mxu0 %vm317_vm0, %v10738_v18 }
  0xfd   : > { %v9304_v38 = vpop.f32.mrf.mxu1  ;;  %9603 = vmatmul.mubr.msk.f32.gmra.mxu1 %vm317_vm0, %v10488_v31  ;;  %9579 = vmatprep.mubr.msk.f32.mxu0 %vm317_vm0, %v10744_v6 }
  0xfe   : > { %v11183_v16 = vadd.f32 %v9304_v38, %v9254_v58  ;;  %9605 = vmatprep.mubr.msk.f32.mxu1 %vm317_vm0, %v10494_v33  ;;  %v11189_v12 = vpop.f32.mrf.mxu0  ;;  %v8107_v33 = vld [vmem:[%s10353_s19 + $0x198] sm:$0xff] }
  0xff   : > { %v847_v27 = vpop.f32.mrf.mxu1  ;;  %v13878_v38 = vld [vmem:[#allocation23_spill] sm:$0xff] }
 0x100   : > { %v11191_v29 = vadd.f32 %v847_v27, %v523_v13  ;;  %v9269_v45 = vpop.f32.mrf.mxu0  ;;  %9580 = vmatmul.mubr.msk.f32.gmra.mxu0 %vm317_vm0, %v10758_v8 }
 0x101   : > { %v9307_v53 = vpop.f32.mrf.mxu1  ;;  %9606 = vmatmul.mubr.msk.f32.gmra.mxu1 %vm317_vm0, %v10508_v35  ;;  %9582 = vmatprep.mubr.msk.f32.mxu0 %vm317_vm0, %v10950_v7 }
 0x102   : > { %v11197_v18 = vadd.f32 %v9307_v53, %v9257_v56  ;;  %9608 = vmatprep.mubr.msk.f32.mxu1 %vm317_vm0, %v10514_v37  ;;  %v11203_v6 = vpop.f32.mrf.mxu0  ;;  %v8108_v37 = vld [vmem:[%s10353_s19 + $0x1a0] sm:$0xff] }
 0x103   : > { %v857_v31 = vpop.f32.mrf.mxu1 }
 0x104   : > { %v11206_v34 = vadd.f32 %v857_v31, %v533_v17  ;;  %v9272_v42 = vpop.f32.mrf.mxu0  ;;  %9583 = vmatmul.mubr.msk.f32.gmra.mxu0 %vm317_vm0, %v10961_v11  ;;  %v8165_v31 = vld [vmem:[%s10353_s19 + $0x139] sm:$0xff] }
 0x105   : > { %v9310_v8 = vpop.f32.mrf.mxu1  ;;  %9609 = vmatmul.mubr.msk.f32.gmra.mxu1 %vm317_vm0, %v10528_v39  ;;  %9585 = vmatprep.mubr.msk.f32.mxu0 %vm317_vm0, %v8107_v33 }
 0x106   : > { %v11212_v35 = vadd.f32 %v9310_v8, %v9260_v4  ;;  %9611 = vmatprep.mubr.msk.f32.mxu1 %vm317_vm0, %v10534_v41  ;;  %v11218_v7 = vpop.f32.mrf.mxu0 }
 0x107   : > { %v867_v56 = vpop.f32.mrf.mxu1 }
 0x108   : > { %v11220_v58 = vadd.f32 %v867_v56, %v543_v21  ;;  %v9275_v13 = vpop.f32.mrf.mxu0  ;;  %9586 = vmatmul.mubr.msk.f32.gmra.mxu0 %vm317_vm0, %v8108_v37 }
 0x109   : > { %v9313_v61 = vpop.f32.mrf.mxu1  ;;  %9612 = vmatmul.mubr.msk.f32.gmra.mxu1 %vm317_vm0, %v10555_v44  ;;  %9640 = vmatprep.mubr.msk.f32.mxu0 %vm317_vm0, %v10643_v0  ;;  %v13874_v0 = vld [vmem:[#allocation18_spill] sm:$0xff] }
 0x10a   : > { %v11225_v39 = vadd.f32 %v9313_v61, %v9263_v47  ;;  %9614 = vmatprep.mubr.msk.f32.mxu1 %vm317_vm0, %v10561_v46  ;;  %v11231_v41 = vpop.f32.mrf.mxu0  ;;  %v13880_v61 = vld [vmem:[#allocation25_spill] sm:$0xff] }
 0x10b   : > { %v877_v11 = vpop.f32.mrf.mxu1 }
 0x10c   : > { %v11233_v17 = vadd.f32 %v877_v11, %v553_v20  ;;  %v9342_v4 = vpop.f32.mrf.mxu0  ;;  %9641 = vmatmul.mubr.msk.f32.vlgmr.msra.gmra.mxu0 %vm317_vm0, %v10661_v2  ;;  %v13876_v20 = vld [vmem:[#allocation19_spill] sm:$0xff] }
 0x10d   : > { %v9316_v1 = vpop.f32.mrf.mxu1  ;;  %9615 = vmatmul.mubr.msk.f32.gmra.mxu1 %vm317_vm0, %v10575_v48  ;;  %v11242_v46 = vadd.f32 %v9342_v4, %v11135_v32  ;;  %9643 = vmatprep.mubr.msk.f32.mxu0 %vm317_vm0, %v13875_v43  ;;  %v8163_v48 = vld [vmem:[%s10353_s19 + $0x121] sm:$0xff]  ;;  %v13877_v32 = vld [vmem:[#allocation22_spill] sm:$0xff] }
 0x10e   : > { %v11239_v44 = vadd.f32 %v9316_v1, %v9266_v5  ;;  %9617 = vmatprep.mubr.msk.f32.mxu1 %vm317_vm0, %v13874_v0  ;;  %v1165_v9 = vpop.f32.mrf.mxu0  ;;  %v8167_v4 = vld [vmem:[%s10353_s19 + $0x151] sm:$0xff] }
 0x10f   : > { %v11248_v21 = vpop.f32.mrf.mxu1  ;;  %v11252_v47 = vadd.f32 %v1165_v9, %v11141_v63  ;;  %v8164_v63 = vld [vmem:[%s10353_s19 + $0x129] sm:$0xff] }
 0x110   : > { %v9345_v49 = vpop.f32.mrf.mxu0  ;;  %9644 = vmatmul.mubr.msk.f32.gmra.mxu0 %vm317_vm0, %v13877_v32 }
 0x111   : > { %v9319_v2 = vpop.f32.mrf.mxu1  ;;  %9618 = vmatmul.mubr.msk.f32.gmra.mxu1 %vm317_vm0, %v13876_v20  ;;  %v11261_v5 = vadd.f32 %v9345_v49, %v11147_v15  ;;  %9646 = vmatprep.mubr.msk.f32.mxu0 %vm317_vm0, %v13878_v38  ;;  %v13879_v15 = vld [vmem:[#allocation24_spill] sm:$0xff]  ;;  %v8169_v20 = vld [vmem:[%s10353_s19 + $0x169] sm:$0xff] }
 0x112   : > { %v11258_v25 = vadd.f32 %v9319_v2, %v9269_v45  ;;  %9620 = vmatprep.mubr.msk.f32.mxu1 %vm317_vm0, %v8163_v48  ;;  %v1175_v53 = vpop.f32.mrf.mxu0 }
 0x113   : > { %v11267_v27 = vpop.f32.mrf.mxu1  ;;  %v11271_v33 = vadd.f32 %v1175_v53, %v11153_v3  ;;  %v8166_v3 = vld [vmem:[%s10353_s19 + $0x141] sm:$0xff] }
 0x114   : > { %v9348_v8 = vpop.f32.mrf.mxu0  ;;  %9647 = vmatmul.mubr.msk.f32.gmra.mxu0 %vm317_vm0, %v13879_v15 }
 0x115   : > { %v9322_v45 = vpop.f32.mrf.mxu1  ;;  %9621 = vmatmul.mubr.msk.f32.gmra.mxu1 %vm317_vm0, %v8164_v63  ;;  %v11279_v56 = vadd.f32 %v9348_v8, %v11159_v19  ;;  %9649 = vmatprep.mubr.msk.f32.mxu0 %vm317_vm0, %v13880_v61  ;;  %v13881_v19 = vld [vmem:[#allocation26_spill] sm:$0xff]  ;;  %v8173_v61 = vld [vmem:[%s10353_s19 + $0x199] sm:$0xff] }
 0x116   : > { %v11276_v37 = vadd.f32 %v9322_v45, %v9272_v42  ;;  %9623 = vmatprep.mubr.msk.f32.mxu1 %vm317_vm0, %v8165_v31  ;;  %v1185_v1 = vpop.f32.mrf.mxu0 }
 0x117   : > { %v11285_v11 = vpop.f32.mrf.mxu1  ;;  %v11289_v0 = vadd.f32 %v1185_v1, %v11165_v22  ;;  %v8168_v22 = vld [vmem:[%s10353_s19 + $0x159] sm:$0xff] }
 0x118   : > { %v9351_v43 = vpop.f32.mrf.mxu0  ;;  %9650 = vmatmul.mubr.msk.f32.gmra.mxu0 %vm317_vm0, %v13881_v19 }
 0x119   : > { %v9325_v42 = vpop.f32.mrf.mxu1  ;;  %9624 = vmatmul.mubr.msk.f32.gmra.mxu1 %vm317_vm0, %v8166_v3  ;;  %v11297_v48 = vadd.f32 %v9351_v43, %v11171_v23  ;;  %9652 = vmatprep.mubr.msk.f32.mxu0 %vm317_vm0, %v13851_v60  ;;  %v13882_v23 = vld [vmem:[#allocation28_spill] sm:$0xff] }
 0x11a   : > { %v11294_v9 = vadd.f32 %v9325_v42, %v9275_v13  ;;  %9626 = vmatprep.mubr.msk.f32.mxu1 %vm317_vm0, %v8167_v4  ;;  %v1195_v49 = vpop.f32.mrf.mxu0 }
 0x11b   : > { %v11303_v2 = vpop.f32.mrf.mxu1  ;;  %v11307_v32 = vadd.f32 %v1195_v49, %v11177_v55  ;;  %v8170_v55 = vld [vmem:[%s10353_s19 + $0x171] sm:$0xff] }
 0x11c   : > { %v9354_v13 = vpop.f32.mrf.mxu0  ;;  %9653 = vmatmul.mubr.msk.f32.gmra.mxu0 %vm317_vm0, %v13882_v23 }
 0x11d   : > { %v9328_v38 = vpop.f32.mrf.mxu1  ;;  %9627 = vmatmul.mubr.msk.f32.gmra.mxu1 %vm317_vm0, %v8168_v22  ;;  %v11316_v60 = vadd.f32 %v9354_v13, %v11183_v16  ;;  %9655 = vmatprep.mubr.msk.f32.mxu0 %vm317_vm0, %v13855_v52 }
 0x11e   : > { %v11313_v63 = vadd.f32 %v9328_v38, %v11077_v40  ;;  %9629 = vmatprep.mubr.msk.f32.mxu1 %vm317_vm0, %v8169_v20  ;;  %v1205_v31 = vpop.f32.mrf.mxu0  ;;  %v8229_v38 = vld [vmem:[%s10353_s19 + $0x122] sm:$0xff] }
 0x11f   : > { %v11322_v53 = vpop.f32.mrf.mxu1  ;;  %v11325_v45 = vadd.f32 %v1205_v31, %v11191_v29 }
 0x120   : > { %v9357_v15 = vpop.f32.mrf.mxu0  ;;  %9656 = vmatmul.mubr.msk.f32.gmra.mxu0 %vm317_vm0, %v13857_v59 }
 0x121   : > { %v9331_v8 = vpop.f32.mrf.mxu1  ;;  %9630 = vmatmul.mubr.msk.f32.gmra.mxu1 %vm317_vm0, %v8170_v55  ;;  %v11334_v52 = vadd.f32 %v9357_v15, %v11197_v18  ;;  %9658 = vmatprep.mubr.msk.f32.mxu0 %vm317_vm0, %v13858_v62  ;;  %v8174_v18 = vld [vmem:[%s10353_s19 + $0x1a1] sm:$0xff] }
 0x122   : > { %v11331_v40 = vadd.f32 %v9331_v8, %v11089_v54  ;;  %9632 = vmatprep.mubr.msk.f32.mxu1 %vm317_vm0, %v11022_v10  ;;  %v1215_v29 = vpop.f32.mrf.mxu0  ;;  %v8231_v55 = vld [vmem:[%s10353_s19 + $0x13a] sm:$0xff]  ;;  %v8232_v15 = vld [vmem:[%s10353_s19 + $0x142] sm:$0xff] }
 0x123   : > { %v11340_v16 = vpop.f32.mrf.mxu1  ;;  %v11344_v3 = vadd.f32 %v1215_v29, %v11206_v34 }
 0x124   : > { %v9360_v54 = vpop.f32.mrf.mxu0  ;;  %9659 = vmatmul.mubr.msk.f32.gmra.mxu0 %vm317_vm0, %v10775_v24 }
 0x125   : > { %v9334_v59 = vpop.f32.mrf.mxu1  ;;  %9633 = vmatmul.mubr.msk.f32.gmra.mxu1 %vm317_vm0, %v11033_v50  ;;  %v11354_v62 = vadd.f32 %v9360_v54, %v11212_v35  ;;  %9661 = vmatprep.mubr.msk.f32.mxu0 %vm317_vm0, %v10778_v57 }
 0x126   : > { %v11351_v10 = vadd.f32 %v9334_v59, %v11104_v26  ;;  %9635 = vmatprep.mubr.msk.f32.mxu1 %vm317_vm0, %v8173_v61  ;;  %v1225_v1 = vpop.f32.mrf.mxu0  ;;  %v13883_v26 = vld [vmem:[#allocation32_spill] sm:$0xff]  ;;  %v8233_v59 = vld [vmem:[%s10353_s19 + $0x152] sm:$0xff] }
 0x127   : > { %v11360_v34 = vpop.f32.mrf.mxu1  ;;  %v11363_v50 = vadd.f32 %v1225_v1, %v11220_v58 }
 0x128   : > { %v9363_v24 = vpop.f32.mrf.mxu0  ;;  %9662 = vmatmul.mubr.msk.f32.gmra.mxu0 %vm317_vm0, %v13883_v26  ;;  %v8235_v26 = vld [vmem:[%s10353_s19 + $0x16a] sm:$0xff] }
 0x129   : > { %v9337_v4 = vpop.f32.mrf.mxu1  ;;  %9636 = vmatmul.mubr.msk.f32.gmra.mxu1 %vm317_vm0, %v8174_v18  ;;  %v11372_v57 = vadd.f32 %v9363_v24, %v11225_v39  ;;  %9664 = vmatprep.mubr.msk.f32.mxu0 %vm317_vm0, %v13859_v14 }
 0x12a   : > { %v11369_v35 = vadd.f32 %v9337_v4, %v11119_v51  ;;  %v1235_v42 = vpop.f32.mrf.mxu0  ;;  %v888_v51 = vadd.f32 %v11248_v21, %v11189_v12 }
 0x12b   : > { %v11376_v58 = vpop.f32.mrf.mxu1  ;;  %v11379_v43 = vadd.f32 %v1235_v42, %v11233_v17  ;;  %v8228_v17 = vld [vmem:[%s10353_s19 + $0x112] sm:$0xff] }
 0x12c   : > { %v9366_v19 = vpop.f32.mrf.mxu0  ;;  %9665 = vmatmul.mubr.msk.f32.gmra.mxu0 %vm317_vm0, %v10812_v28 }
 0x12d   : > { %v9392_v22 = vpop.f32.mrf.mxu1  ;;  %v11386_v39 = vadd.f32 %v9366_v19, %v11239_v44  ;;  %9667 = vmatprep.mubr.msk.f32.mxu0 %vm317_vm0, %v13861_v30  ;;  %v8230_v30 = vld [vmem:[%s10353_s19 + $0x12a] sm:$0xff] }
 0x12e   : > { %v11389_v14 = vadd.f32 %v9392_v22, %v11242_v46  ;;  %v1245_v49 = vpop.f32.mrf.mxu0 }
 0x12f   : > { %v11394_v20 = vpop.f32.mrf.mxu1  ;;  %v11397_v28 = vadd.f32 %v1245_v49, %v888_v51  ;;  %v8276_v51 = vld [vmem:[%s13731_s3 + $0x8] sm:$0xff] }
 0x130   : > { %v9369_v13 = vpop.f32.mrf.mxu0  ;;  %9668 = vmatmul.mubr.msk.f32.gmra.mxu0 %vm317_vm0, %v8228_v17  ;;  %9688 = vmatprep.subr.msk.mxu1 %vm3865_vm1, %v8276_v51 }
 0x131   : > { %v9395_v12 = vpop.f32.mrf.mxu1  ;;  %v11401_v44 = vadd.f32 %v9369_v13, %v11258_v25  ;;  %9670 = vmatprep.mubr.msk.f32.mxu0 %vm317_vm0, %v8229_v38  ;;  %9689 = vmatpush3.xpose.msk.msra.mxu1 %vm3865_vm1, %v8276_v51 }
 0x132   : > { %v11404_v46 = vadd.f32 %v9395_v12, %v11261_v5  ;;  %v11408_v21 = vpop.f32.mrf.mxu0 }
 0x133   : > { %v11410_v23 = vpop.f32.mrf.mxu1 }
 0x134   : > { %v9372_v31 = vpop.f32.mrf.mxu0  ;;  %9671 = vmatmul.mubr.msk.f32.gmra.mxu0 %vm317_vm0, %v8230_v30 }
 0x135   : > { %v9398_v8 = vpop.f32.mrf.mxu1  ;;  %v11415_v25 = vadd.f32 %v9372_v31, %v11276_v37  ;;  %9673 = vmatprep.mubr.msk.f32.mxu0 %vm317_vm0, %v8231_v55  ;;  %v8239_v55 = vld [vmem:[%s10353_s19 + $0x19a] sm:$0xff] }
 0x136   : > { %v11418_v5 = vadd.f32 %v9398_v8, %v11279_v56  ;;  %v11422_v29 = vpop.f32.mrf.mxu0  ;;  %v8234_v56 = vld [vmem:[%s10353_s19 + $0x15a] sm:$0xff] }
 0x137   : > { %v11424_v61 = vpop.f32.mrf.mxu1 }
 0x138   : > { %v9375_v54 = vpop.f32.mrf.mxu0  ;;  %9674 = vmatmul.mubr.msk.f32.gmra.mxu0 %vm317_vm0, %v8232_v15  ;;  %v13884_v15 = vld [vmem:[#allocation8_spill] sm:$0xff] }
 0x139   : > { %v9401_v18 = vpop.f32.mrf.mxu1  ;;  %v11429_v37 = vadd.f32 %v9375_v54, %v11294_v9  ;;  %9676 = vmatprep.mubr.msk.f32.mxu0 %vm317_vm0, %v8233_v59 }
 0x13a   : > { %v11432_v1 = vadd.f32 %v9401_v18, %v11297_v48  ;;  %v11436_v4 = vpop.f32.mrf.mxu0  ;;  %v8236_v48 = vld [vmem:[%s10353_s19 + $0x172] sm:$0xff] }
 0x13b   : > { %v11438_v24 = vpop.f32.mrf.mxu1 }
 0x13c   : > { %v9378_v42 = vpop.f32.mrf.mxu0  ;;  %9677 = vmatmul.mubr.msk.f32.gmra.mxu0 %vm317_vm0, %v8234_v56 }
 0x13d   : > { %v9404_v19 = vpop.f32.mrf.mxu1  ;;  %v11443_v22 = vadd.f32 %v9378_v42, %v11313_v63  ;;  %9679 = vmatprep.mubr.msk.f32.mxu0 %vm317_vm0, %v8235_v26 }
 0x13e   : > { %v11446_v9 = vadd.f32 %v9404_v19, %v11316_v60  ;;  %v11453_v17 = vpop.f32.mrf.mxu0 }
 0x13f   : > { %v11455_v49 = vpop.f32.mrf.mxu1 }
 0x140   : > { %v9381_v63 = vpop.f32.mrf.mxu0  ;;  %9680 = vmatmul.mubr.msk.f32.gmra.mxu0 %vm317_vm0, %v8236_v48 }
 0x141   : > { %v9407_v60 = vpop.f32.mrf.mxu1  ;;  %v11461_v38 = vadd.f32 %v9381_v63, %v11331_v40  ;;  %9682 = vmatprep.mubr.msk.f32.mxu0 %vm317_vm0, %v11102_v36 }
 0x142   : > { %v11464_v13 = vadd.f32 %v9407_v60, %v11334_v52  ;;  %v11468_v12 = vpop.f32.mrf.mxu0  ;;  %v8240_v52 = vld [vmem:[%s10353_s19 + $0x1a2] sm:$0xff] }
 0x143   : > { %v11470_v30 = vpop.f32.mrf.mxu1 }
 0x144   : > { %v9384_v31 = vpop.f32.mrf.mxu0  ;;  %9683 = vmatmul.mubr.msk.f32.gmra.mxu0 %vm317_vm0, %v13884_v15 }
 0x145   : > { %v9410_v8 = vpop.f32.mrf.mxu1  ;;  %v11476_v59 = vadd.f32 %v9384_v31, %v11351_v10  ;;  %9685 = vmatprep.mubr.msk.f32.mxu0 %vm317_vm0, %v8239_v55 }
 0x146   : > { %v11479_v40 = vadd.f32 %v9410_v8, %v11354_v62  ;;  %v11483_v36 = vpop.f32.mrf.mxu0 }
 0x147   : > { %v11485_v54 = vpop.f32.mrf.mxu1 }
 0x148   : > { %v9387_v18 = vpop.f32.mrf.mxu0  ;;  %9686 = vmatmul.mubr.msk.f32.gmra.mxu0 %vm317_vm0, %v8240_v52 }
 0x149   : > { %v9413_v56 = vpop.f32.mrf.mxu1  ;;  %v11489_v26 = vadd.f32 %v9387_v18, %v11369_v35 }
 0x14a   : > { %v11492_v10 = vadd.f32 %v9413_v56, %v11372_v57  ;;  %v11494_v42 = vpop.f32.mrf.mxu0 }
 0x14b   : > { %v11496_v62 = vpop.f32.mrf.mxu1 }
 0x14c   : > { %v9442_v48 = vpop.f32.mrf.mxu0 }
 0x14d   : > { %v9416_v19 = vpop.f32.mrf.mxu1  ;;  %v11502_v63 = vadd.f32 %v9442_v48, %v11389_v14  ;;  %v3986_v48 = vld [vmem:[%s13731_s3] sm:$0xff] }
 0x14e   : > { %v11499_v51 = vadd.f32 %v9416_v19, %v11386_v39  ;;  %v11506_v55 = vpop.f32.mrf.mxu0  ;;  %v10246_v39 = vmov 0.0   ;;  %9738 = vmatprep.subr.msk.mxu0 %vm3865_vm1, %v3986_v48 }
 0x14f   : > { %13885 = vst [vmem:[#allocation27_spill] sm:$0xff] %v11502_v63  ;;  %v11504_v60 = vpop.f32.mrf.mxu1  ;;  %3871 = vst.msk [vmem:[#allocation2 + $0x20] sm:$0xff] %vm3865_vm1, %v10246_v39  ;;  %9739 = vmatpush3.xpose.msk.msra.mxu0 %vm3865_vm1, %v3986_v48 }
 0x150   : > { %v9445_v31 = vpop.f32.mrf.mxu0  ;;  %3866 = vst.msk [vmem:[#allocation2] sm:$0xff] %vm3865_vm1, %v10246_v39  ;;  %3867 = vst.msk [vmem:[#allocation2 + $0x8] sm:$0xff] %vm3865_vm1, %v10246_v39 }
 0x151   : > { %v9419_v35 = vpop.f32.mrf.mxu1  ;;  %v11512_v8 = vadd.f32 %v9445_v31, %v11404_v46  ;;  %3870 = vst.msk [vmem:[#allocation2 + $0x18] sm:$0xff] %vm3865_vm1, %v10246_v39  ;;  %3873 = vst.msk [vmem:[#allocation2 + $0x30] sm:$0xff] %vm3865_vm1, %v10246_v39 }
 0x152   : > { %v11509_v57 = vadd.f32 %v9419_v35, %v11401_v44  ;;  %v11516_v52 = vpop.f32.mrf.mxu0  ;;  %3874 = vst.msk [vmem:[#allocation2 + $0x38] sm:$0xff] %vm3865_vm1, %v10246_v39  ;;  %3876 = vst.msk [vmem:[#allocation2 + $0x48] sm:$0xff] %vm3865_vm1, %v10246_v39 }
 0x153   : > { %13886 = vst [vmem:[#allocation11_spill] sm:$0xff] %v11512_v8  ;;  %v11514_v15 = vpop.f32.mrf.mxu1  ;;  %3877 = vst.msk [vmem:[#allocation2 + $0x50] sm:$0xff] %vm3865_vm1, %v10246_v39 }
 0x154   : > { %3879 = vst.msk [vmem:[#allocation2 + $0x60] sm:$0xff] %vm3865_vm1, %v10246_v39  ;;  %3880 = vst.msk [vmem:[#allocation2 + $0x68] sm:$0xff] %vm3865_vm1, %v10246_v39  ;;  %v9448_v44 = vpop.f32.mrf.mxu0 }
 0x155   : > { %3882 = vst.msk [vmem:[#allocation2 + $0x78] sm:$0xff] %vm3865_vm1, %v10246_v39  ;;  %3883 = vst.msk [vmem:[#allocation2 + $0x80] sm:$0xff] %vm3865_vm1, %v10246_v39  ;;  %v9422_v14 = vpop.f32.mrf.mxu1  ;;  %v11574_v18 = vadd.f32 %v9448_v44, %v11418_v5 }
 0x156   : > { %3885 = vst.msk [vmem:[#allocation2 + $0x90] sm:$0xff] %vm3865_vm1, %v10246_v39  ;;  %3886 = vst.msk [vmem:[#allocation2 + $0x98] sm:$0xff] %vm3865_vm1, %v10246_v39  ;;  %v1736_v46 = vadd.f32 %v9422_v14, %v11415_v25  ;;  %v11578_v19 = vpop.f32.mrf.mxu0 }
 0x157   : > { %3888 = vst.msk [vmem:[#allocation2 + $0xa8] sm:$0xff] %vm3865_vm1, %v10246_v39  ;;  %3889 = vst.msk [vmem:[#allocation2 + $0xb0] sm:$0xff] %vm3865_vm1, %v10246_v39  ;;  %v11576_v56 = vpop.f32.mrf.mxu1  ;;  %v3987_v14 = vld [vmem:[#allocation2 + $0x1] sm:$0xff] }
 0x158   : > { %3891 = vst.msk [vmem:[#allocation2 + $0xc0] sm:$0xff] %vm3865_vm1, %v10246_v39  ;;  %3892 = vst.msk [vmem:[#allocation2 + $0xc8] sm:$0xff] %vm3865_vm1, %v10246_v39  ;;  %v9451_v31 = vpop.f32.mrf.mxu0  ;;  %v3954_v44 = vld [vmem:[#allocation2] sm:$0xff]  ;;  %9690 = vmatprep.mubr.msk.f32.mxu1 %vm3865_vm1, %v3987_v14  ;;  %v3955_v63 = vld [vmem:[#allocation2 + $0x8] sm:$0xff] }
 0x159   : > { %3894 = vst.msk [vmem:[#allocation2 + $0xd8] sm:$0xff] %vm3865_vm1, %v10246_v39  ;;  %3895 = vst.msk [vmem:[#allocation2 + $0xe0] sm:$0xff] %vm3865_vm1, %v10246_v39  ;;  %v9425_v35 = vpop.f32.mrf.mxu1  ;;  %v11586_v8 = vadd.f32 %v9451_v31, %v11432_v1  ;;  %9740 = vmatprep.mubr.msk.f32.mxu0 %vm3865_vm1, %v3954_v44 }
 0x15a   : > { %3897 = vst.msk [vmem:[#allocation2 + $0xf0] sm:$0xff] %vm3865_vm1, %v10246_v39  ;;  %3898 = vst.msk [vmem:[#allocation2 + $0xf8] sm:$0xff] %vm3865_vm1, %v10246_v39  ;;  %v11591_v5 = vpop.f32.mrf.mxu0  ;;  %9741 = vmatmul.mubr.msk.f32.vlgmr.msra.gmra.mxu0 %vm3865_vm1, %v3955_v63 }
 0x15b   : > { %3900 = vst.msk [vmem:[#allocation2 + $0x108] sm:$0xff] %vm3865_vm1, %v10246_v39  ;;  %3901 = vst.msk [vmem:[#allocation2 + $0x110] sm:$0xff] %vm3865_vm1, %v10246_v39  ;;  %v11589_v25 = vpop.f32.mrf.mxu1 }
 0x15c   : > { %3903 = vst.msk [vmem:[#allocation2 + $0x120] sm:$0xff] %vm3865_vm1, %v10246_v39  ;;  %3904 = vst.msk [vmem:[#allocation2 + $0x128] sm:$0xff] %vm3865_vm1, %v10246_v39 }
 0x15d   : > { %3906 = vst.msk [vmem:[#allocation2 + $0x138] sm:$0xff] %vm3865_vm1, %v10246_v39  ;;  %3907 = vst.msk [vmem:[#allocation2 + $0x140] sm:$0xff] %vm3865_vm1, %v10246_v39 }
 0x15e   : > { %3909 = vst.msk [vmem:[#allocation2 + $0x150] sm:$0xff] %vm3865_vm1, %v10246_v39  ;;  %3910 = vst.msk [vmem:[#allocation2 + $0x158] sm:$0xff] %vm3865_vm1, %v10246_v39 }
 0x15f   : > { %3912 = vst.msk [vmem:[#allocation2 + $0x168] sm:$0xff] %vm3865_vm1, %v10246_v39  ;;  %3913 = vst.msk [vmem:[#allocation2 + $0x170] sm:$0xff] %vm3865_vm1, %v10246_v39 }
 0x160   : > { %3915 = vst.msk [vmem:[#allocation2 + $0x180] sm:$0xff] %vm3865_vm1, %v10246_v39  ;;  %3916 = vst.msk [vmem:[#allocation2 + $0x188] sm:$0xff] %vm3865_vm1, %v10246_v39 }
 0x161   : > { %3918 = vst.msk [vmem:[#allocation2 + $0x198] sm:$0xff] %vm3865_vm1, %v10246_v39  ;;  %3919 = vst.msk [vmem:[#allocation2 + $0x1a0] sm:$0xff] %vm3865_vm1, %v10246_v39 }
 0x162   : > { %3872 = vst.msk [vmem:[#allocation2 + $0x28] sm:$0x3] %vm3868_vm2, %v10246_v39  ;;  %3869 = vst.msk [vmem:[#allocation2 + $0x10] sm:$0x3] %vm3868_vm2, %v10246_v39 }
 0x163   : > { %3875 = vst.msk [vmem:[#allocation2 + $0x40] sm:$0x3] %vm3868_vm2, %v10246_v39  ;;  %3878 = vst.msk [vmem:[#allocation2 + $0x58] sm:$0x3] %vm3868_vm2, %v10246_v39 }
 0x164   : > { %3881 = vst.msk [vmem:[#allocation2 + $0x70] sm:$0x3] %vm3868_vm2, %v10246_v39  ;;  %3884 = vst.msk [vmem:[#allocation2 + $0x88] sm:$0x3] %vm3868_vm2, %v10246_v39 }
 0x165   : > { %3887 = vst.msk [vmem:[#allocation2 + $0xa0] sm:$0x3] %vm3868_vm2, %v10246_v39  ;;  %3890 = vst.msk [vmem:[#allocation2 + $0xb8] sm:$0x3] %vm3868_vm2, %v10246_v39 }
 0x166   : > { %3893 = vst.msk [vmem:[#allocation2 + $0xd0] sm:$0x3] %vm3868_vm2, %v10246_v39  ;;  %3896 = vst.msk [vmem:[#allocation2 + $0xe8] sm:$0x3] %vm3868_vm2, %v10246_v39 }
 0x167   : > { %3899 = vst.msk [vmem:[#allocation2 + $0x100] sm:$0x3] %vm3868_vm2, %v10246_v39  ;;  %3902 = vst.msk [vmem:[#allocation2 + $0x118] sm:$0x3] %vm3868_vm2, %v10246_v39 }
 0x168   : > { %3905 = vst.msk [vmem:[#allocation2 + $0x130] sm:$0x3] %vm3868_vm2, %v10246_v39  ;;  %3908 = vst.msk [vmem:[#allocation2 + $0x148] sm:$0x3] %vm3868_vm2, %v10246_v39 }
 0x169   : > { %3911 = vst.msk [vmem:[#allocation2 + $0x160] sm:$0x3] %vm3868_vm2, %v10246_v39  ;;  %3914 = vst.msk [vmem:[#allocation2 + $0x178] sm:$0x3] %vm3868_vm2, %v10246_v39 }
 0x16a   : > { %3917 = vst.msk [vmem:[#allocation2 + $0x190] sm:$0x3] %vm3868_vm2, %v10246_v39  ;;  %3920 = vst.msk [vmem:[#allocation2 + $0x1a8] sm:$0x3] %vm3868_vm2, %v10246_v39  ;;  %v1738_v39 = vadd.f32 %v9425_v35, %v11429_v37 }
 0x16b   : > { %13887 = vst [vmem:[#allocation12_spill] sm:$0xff] %v11574_v18  ;;  %13888 = vst [vmem:[#allocation29_spill] sm:$0xff] %v11576_v56  ;;  %v3988_v18 = vld [vmem:[#allocation2 + $0x9] sm:$0xff]  ;;  %v9454_v56 = vpop.f32.mrf.mxu0 }
 0x16c   : > { %13889 = vst [vmem:[#allocation13_spill] sm:$0xff] %v11578_v19  ;;  %13890 = vst [vmem:[#allocation30_spill] sm:$0xff] %v11586_v8  ;;  %v9428_v19 = vpop.f32.mrf.mxu1  ;;  %9691 = vmatmul.mubr.msk.f32.vlgmr.msra.gmra.mxu1 %vm3865_vm1, %v3988_v18  ;;  %v11599_v1 = vadd.f32 %v9454_v56, %v11446_v9 }
 0x16d   : > { %13891 = vst [vmem:[#allocation31_spill] sm:$0xff] %v11591_v5  ;;  %v1740_v37 = vadd.f32 %v9428_v19, %v11443_v22  ;;  %v11603_v35 = vpop.f32.mrf.mxu0 }
 0x16e   : > { %13892 = vst [vmem:[#allocation33_spill] sm:$0xff] %v11599_v1  ;;  %v11601_v48 = vpop.f32.mrf.mxu1  ;;  %13893 = vst [vmem:[#allocation14_spill] sm:$0xff] %v11603_v35 }
 0x16f   : > { %v9457_v14 = vpop.f32.mrf.mxu0 }
 0x170   : > { %v9431_v31 = vpop.f32.mrf.mxu1  ;;  %v11607_v8 = vadd.f32 %v9457_v14, %v11464_v13 }
 0x171   : > { %v1742_v44 = vadd.f32 %v9431_v31, %v11461_v38  ;;  %v11611_v18 = vpop.f32.mrf.mxu0 }
 0x172   : > { %13894 = vst [vmem:[#allocation34_spill] sm:$0xff] %v11607_v8  ;;  %v11609_v5 = vpop.f32.mrf.mxu1  ;;  %13895 = vst [vmem:[#allocation15_spill] sm:$0xff] %v11611_v18 }
 0x173   : > { %v9460_v22 = vpop.f32.mrf.mxu0 }
 0x174   : > { %v9434_v63 = vpop.f32.mrf.mxu1  ;;  %v11615_v56 = vadd.f32 %v9460_v22, %v11479_v40 }
 0x175   : > { %v1744_v9 = vadd.f32 %v9434_v63, %v11476_v59  ;;  %v11619_v1 = vpop.f32.mrf.mxu0 }
 0x176   : > { %13896 = vst [vmem:[#allocation35_spill] sm:$0xff] %v11615_v56  ;;  %v11617_v19 = vpop.f32.mrf.mxu1  ;;  %13897 = vst [vmem:[#allocation16_spill] sm:$0xff] %v11619_v1 }
 0x177   : > { %v9463_v38 = vpop.f32.mrf.mxu0 }
 0x178   : > { %v9437_v35 = vpop.f32.mrf.mxu1  ;;  %v11623_v31 = vadd.f32 %v9463_v38, %v11492_v10 }
 0x179   : > { %v1746_v13 = vadd.f32 %v9437_v35, %v11489_v26  ;;  %v11627_v8 = vpop.f32.mrf.mxu0 }
 0x17a   : > { %13898 = vst [vmem:[#allocation17_spill] sm:$0xff] %v11623_v31  ;;  %v11625_v14 = vpop.f32.mrf.mxu1 }
 0x17b   : > { %v9466_v18 = vpop.f32.mrf.mxu0 }
 0x17c   : > { %v11629_v59 = vpop.f32.mrf.mxu1  ;;  %v11632_v40 = vadd.f32 %v9466_v18, %v11499_v51 }
 0x17d   : > { %13899 = vst [vmem:[#allocation36_spill] sm:$0xff] %v11629_v59  ;;  %v11634_v63 = vpop.f32.mrf.mxu0 }
 0x17e   : > { %13900 = vst [vmem:[#allocation37_spill] sm:$0xff] %v11632_v40  ;;  %v11636_v22 = vpop.f32.mrf.mxu1 }
 0x17f   : > { %13901 = vst [vmem:[#allocation20_spill] sm:$0xff] %v11636_v22  ;;  %v9469_v56 = vpop.f32.mrf.mxu0 }
 0x180   : > { %v11638_v1 = vpop.f32.mrf.mxu1  ;;  %v11641_v26 = vadd.f32 %v9469_v56, %v11509_v57 }
 0x181   : > { %13902 = vst [vmem:[#allocation18_spill] sm:$0xff] %v11638_v1  ;;  %v11643_v10 = vpop.f32.mrf.mxu0 }
 0x182   : > { %13903 = vst [vmem:[#allocation21_spill] sm:$0xff] %v11641_v26  ;;  %13904 = vst [vmem:[#allocation19_spill] sm:$0xff] %v11643_v10  ;;  %v11645_v35 = vpop.f32.mrf.mxu1 }
 0x183   : > { %13905 = vst [vmem:[#allocation22_spill] sm:$0xff] %v11645_v35  ;;  %v9472_v38 = vpop.f32.mrf.mxu0 }
 0x184   : > { %v11647_v31 = vpop.f32.mrf.mxu1  ;;  %v11649_v59 = vadd.f32 %v9472_v38, %v1736_v46 }
 0x185   : > { %v11651_v51 = vpop.f32.mrf.mxu0 }
 0x186   : > { %13906 = vst [vmem:[#allocation23_spill] sm:$0xff] %v11649_v59  ;;  %13907 = vst [vmem:[#allocation24_spill] sm:$0xff] %v11651_v51  ;;  %v11653_v18 = vpop.f32.mrf.mxu1 }
 0x187   : > { %13908 = vst [vmem:[#allocation25_spill] sm:$0xff] %v11653_v18  ;;  %v9475_v40 = vpop.f32.mrf.mxu0 }
 0x188   : > { %v11655_v22 = vpop.f32.mrf.mxu1  ;;  %v11657_v1 = vadd.f32 %v9475_v40, %v1738_v39 }
 0x189   : > { %v11659_v57 = vpop.f32.mrf.mxu0 }
 0x18a   : > { %13909 = vst [vmem:[#allocation26_spill] sm:$0xff] %v11657_v1  ;;  %13910 = vst [vmem:[#allocation28_spill] sm:$0xff] %v11659_v57  ;;  %v11661_v56 = vpop.f32.mrf.mxu1 }
 0x18b   : > { %13911 = vst [vmem:[#allocation32_spill] sm:$0xff] %v11661_v56  ;;  %v9478_v26 = vpop.f32.mrf.mxu0 }
 0x18c   : > { %v11663_v35 = vpop.f32.mrf.mxu1  ;;  %v11665_v10 = vadd.f32 %v9478_v26, %v1740_v37 }
 0x18d   : > { %v11667_v46 = vpop.f32.mrf.mxu0 }
 0x18e   : > { %13912 = vst [vmem:[#allocation8_spill] sm:$0xff] %v11665_v10  ;;  %v11669_v38 = vpop.f32.mrf.mxu1  ;;  %v8343_v10 = vld [vmem:[%s13731_s3 + $0x10] sm:$0xff] }
 0x18f   : > { %v9481_v59 = vpop.f32.mrf.mxu0  ;;  %9788 = vmatprep.subr.msk.mxu1 %vm3865_vm1, %v8343_v10 }
 0x190   : > { %v11671_v18 = vpop.f32.mrf.mxu1  ;;  %v11673_v51 = vadd.f32 %v9481_v59, %v1742_v44  ;;  %9789 = vmatpush3.xpose.msk.msra.mxu1 %vm3865_vm1, %v8343_v10 }
 0x191   : > { %v11675_v39 = vpop.f32.mrf.mxu0 }
 0x192   : > { %13913 = vst [vmem:[#allocation38_spill] sm:$0xff] %v11673_v51  ;;  %13914 = vst [vmem:[#allocation39_spill] sm:$0xff] %v11675_v39  ;;  %v11677_v40 = vpop.f32.mrf.mxu1 }
 0x193   : > { %13915 = vst [vmem:[#allocation40_spill] sm:$0xff] %v11677_v40  ;;  %v9484_v1 = vpop.f32.mrf.mxu0 }
 0x194   : > { %v11679_v56 = vpop.f32.mrf.mxu1  ;;  %v11681_v57 = vadd.f32 %v9484_v1, %v1744_v9 }
 0x195   : > { %13916 = vst [vmem:[#allocation41_spill] sm:$0xff] %v11679_v56  ;;  %v11683_v37 = vpop.f32.mrf.mxu0 }
 0x196   : > { %13917 = vst [vmem:[#allocation42_spill] sm:$0xff] %v11681_v57  ;;  %13918 = vst [vmem:[#allocation43_spill] sm:$0xff] %v11683_v37  ;;  %v11685_v26 = vpop.f32.mrf.mxu1 }
 0x197   : > { %13919 = vst [vmem:[#allocation44_spill] sm:$0xff] %v11685_v26  ;;  %v9487_v44 = vpop.f32.mrf.mxu0 }
 0x198   : > { %v11691_v59 = vpop.f32.mrf.mxu1  ;;  %v11694_v51 = vadd.f32 %v9487_v44, %v1746_v13 }
 0x199   : > { %13920 = vst [vmem:[#allocation45_spill] sm:$0xff] %v11691_v59  ;;  %v11696_v56 = vpop.f32.mrf.mxu0 }
 0x19a   : > { %13921 = vst [vmem:[#allocation46_spill] sm:$0xff] %v11694_v51  ;;  %v11698_v1 = vpop.f32.mrf.mxu1 }
 0x19b   : > { %13922 = vst [vmem:[#allocation47_spill] sm:$0xff] %v11698_v1  ;;  %v11702_v57 = vpop.f32.mrf.mxu0 }
 0x19c   : > { %v11700_v9 = vpop.f32.mrf.mxu1 }
 0x19d   : > { %13923 = vst [vmem:[#allocation48_spill] sm:$0xff] %v11700_v9  ;;  %v11706_v37 = vpop.f32.mrf.mxu0 }
 0x19e   : > { %v11704_v26 = vpop.f32.mrf.mxu1  ;;  %13925 = vst [vmem:[#allocation50_spill] sm:$0xff] %v11706_v37 }
 0x19f   : > { %13924 = vst [vmem:[#allocation49_spill] sm:$0xff] %v11704_v26  ;;  %v11710_v39 = vpop.f32.mrf.mxu0 }
 0x1a0   : > { %v11708_v40 = vpop.f32.mrf.mxu1  ;;  %13927 = vst [vmem:[#allocation52_spill] sm:$0xff] %v11710_v39  ;;  %v8377_v39 = vld [vmem:[%s13731_s3 + $0x18] sm:$0xff] }
 0x1a1   : > { %13926 = vst [vmem:[#allocation51_spill] sm:$0xff] %v11708_v40  ;;  %v11714_v13 = vpop.f32.mrf.mxu0  ;;  %9838 = vmatprep.subr.msk.mxu0 %vm3865_vm1, %v8377_v39 }
 0x1a2   : > { %v11712_v59 = vpop.f32.mrf.mxu1  ;;  %13929 = vst [vmem:[#allocation54_spill] sm:$0xff] %v11714_v13  ;;  %9839 = vmatpush3.xpose.msk.msra.mxu0 %vm3865_vm1, %v8377_v39 }
 0x1a3   : > { %13928 = vst [vmem:[#allocation53_spill] sm:$0xff] %v11712_v59  ;;  %v11718_v44 = vpop.f32.mrf.mxu0 }
 0x1a4   : > { %v11716_v10 = vpop.f32.mrf.mxu1  ;;  %13931 = vst [vmem:[#allocation56_spill] sm:$0xff] %v11718_v44 }
 0x1a5   : > { %13930 = vst [vmem:[#allocation55_spill] sm:$0xff] %v11716_v10  ;;  %v11722_v9 = vpop.f32.mrf.mxu0 }
 0x1a6   : > { %v11720_v51 = vpop.f32.mrf.mxu1  ;;  %13933 = vst [vmem:[#allocation58_spill] sm:$0xff] %v11722_v9 }
 0x1a7   : > { %13932 = vst [vmem:[#allocation57_spill] sm:$0xff] %v11720_v51  ;;  %v11726_v26 = vpop.f32.mrf.mxu0 }
 0x1a8   : > { %v11724_v1 = vpop.f32.mrf.mxu1  ;;  %13935 = vst [vmem:[#allocation60_spill] sm:$0xff] %v11726_v26 }
 0x1a9   : > { %13934 = vst [vmem:[#allocation59_spill] sm:$0xff] %v11724_v1  ;;  %v11733_v59 = vpop.f32.mrf.mxu0 }
 0x1aa   : > { %v11731_v40 = vpop.f32.mrf.mxu1  ;;  %13937 = vst [vmem:[#allocation62_spill] sm:$0xff] %v11733_v59 }
 0x1ab   : > { %13936 = vst [vmem:[#allocation61_spill] sm:$0xff] %v11731_v40  ;;  %v11739_v51 = vpop.f32.mrf.mxu0 }
 0x1ac   : > { %v11737_v44 = vpop.f32.mrf.mxu1  ;;  %13939 = vst [vmem:[#allocation64_spill] sm:$0xff] %v11739_v51 }
 0x1ad   : > { %13938 = vst [vmem:[#allocation63_spill] sm:$0xff] %v11737_v44  ;;  %v11743_v1 = vpop.f32.mrf.mxu0 }
 0x1ae   : > { %v11741_v9 = vpop.f32.mrf.mxu1  ;;  %13941 = vst [vmem:[#allocation66_spill] sm:$0xff] %v11743_v1 }
 0x1af   : > { %13940 = vst [vmem:[#allocation65_spill] sm:$0xff] %v11741_v9  ;;  %v11747_v10 = vpop.f32.mrf.mxu0 }
 0x1b0   : > { %v11745_v26 = vpop.f32.mrf.mxu1  ;;  %13943 = vst [vmem:[#allocation68_spill] sm:$0xff] %v11747_v10 }
 0x1b1   : > { %13942 = vst [vmem:[#allocation67_spill] sm:$0xff] %v11745_v26  ;;  %v11751_v40 = vpop.f32.mrf.mxu0 }
 0x1b2   : > { %v11749_v13 = vpop.f32.mrf.mxu1  ;;  %13945 = vst [vmem:[#allocation70_spill] sm:$0xff] %v11751_v40 }
 0x1b3   : > { %13944 = vst [vmem:[#allocation69_spill] sm:$0xff] %v11749_v13  ;;  %v11755_v37 = vpop.f32.mrf.mxu0 }
 0x1b4   : > { %v11753_v59 = vpop.f32.mrf.mxu1  ;;  %13947 = vst [vmem:[#allocation72_spill] sm:$0xff] %v11755_v37 }
 0x1b5   : > { %13946 = vst [vmem:[#allocation71_spill] sm:$0xff] %v11753_v59  ;;  %v11759_v44 = vpop.f32.mrf.mxu0 }
 0x1b6   : > { %v11757_v39 = vpop.f32.mrf.mxu1  ;;  %13949 = vst [vmem:[#allocation74_spill] sm:$0xff] %v11759_v44 }
 0x1b7   : > { %13948 = vst [vmem:[#allocation73_spill] sm:$0xff] %v11757_v39  ;;  %v11763_v9 = vpop.f32.mrf.mxu0 }
 0x1b8   : > { %v11761_v51 = vpop.f32.mrf.mxu1  ;;  %13951 = vst [vmem:[#allocation76_spill] sm:$0xff] %v11763_v9 }
 0x1b9   : > { %13950 = vst [vmem:[#allocation75_spill] sm:$0xff] %v11761_v51  ;;  %v11767_v26 = vpop.f32.mrf.mxu0 }
 0x1ba   : > { %v11765_v1 = vpop.f32.mrf.mxu1  ;;  %13953 = vst [vmem:[#allocation78_spill] sm:$0xff] %v11767_v26 }
 0x1bb   : > { %13952 = vst [vmem:[#allocation77_spill] sm:$0xff] %v11765_v1  ;;  %v11769_v10 = vpop.f32.mrf.mxu0 }
 0x1bc   : > { %13954 = vst [vmem:[#allocation79_spill] sm:$0xff] %v11769_v10  ;;  %v11771_v13 = vpop.f32.mrf.mxu1 }
 0x1bd   : > { %13955 = vst [vmem:[#allocation80_spill] sm:$0xff] %v11771_v13  ;;  %v11773_v40 = vpop.f32.mrf.mxu0 }
 0x1be   : > { %13956 = vst [vmem:[#allocation81_spill] sm:$0xff] %v11773_v40  ;;  %v11775_v59 = vpop.f32.mrf.mxu1 }
 0x1bf   : > { %13957 = vst [vmem:[#allocation82_spill] sm:$0xff] %v11775_v59  ;;  %v11777_v37 = vpop.f32.mrf.mxu0 }
 0x1c0   : > { %13958 = vst [vmem:[#allocation83_spill] sm:$0xff] %v11777_v37  ;;  %v11779_v39 = vpop.f32.mrf.mxu1 }
 0x1c1   : > { %13959 = vst [vmem:[#allocation84_spill] sm:$0xff] %v11779_v39  ;;  %v11781_v44 = vpop.f32.mrf.mxu0 }
 0x1c2   : > { %13960 = vst [vmem:[#allocation85_spill] sm:$0xff] %v11781_v44  ;;  %v11783_v51 = vpop.f32.mrf.mxu1  ;;  %v898_v44 = vadd.f32 %v11267_v27, %v11203_v6  ;;  %v13973_v6 = vld [vmem:[#allocation10_spill] sm:$0xff] }
 0x1c3   : > { %13961 = vst [vmem:[#allocation86_spill] sm:$0xff] %v11783_v51  ;;  %v11785_v9 = vpop.f32.mrf.mxu0  ;;  %v13971_v51 = vld [vmem:[#allocation7_spill] sm:$0xff]  ;;  %v958_v27 = vadd.f32 %v11376_v58, %v13973_v6 }
 0x1c4   : > { %13962 = vst [vmem:[#allocation87_spill] sm:$0xff] %v11785_v9  ;;  %v11787_v1 = vpop.f32.mrf.mxu1  ;;  %v908_v9 = vadd.f32 %v11285_v11, %v11218_v7  ;;  %v1715_v7 = vadd.f32 %v11394_v20, %v11252_v47  ;;  %v1717_v11 = vadd.f32 %v11410_v23, %v11271_v33  ;;  %v8411_v47 = vld [vmem:[%s13731_s3 + $0x20] sm:$0xff]  ;;  %v1723_v20 = vadd.f32 %v11455_v49, %v11325_v45  ;;  %v13980_v6 = vld [vmem:[#allocation27_spill] sm:$0xff] }
 0x1c5   : > { %13963 = vst [vmem:[#allocation88_spill] sm:$0xff] %v11787_v1  ;;  %v11789_v26 = vpop.f32.mrf.mxu0  ;;  %v918_v1 = vadd.f32 %v11303_v2, %v11231_v41  ;;  %v1342_v41 = vadd.f32 %v11408_v21, %v898_v44  ;;  %v1725_v21 = vadd.f32 %v11470_v30, %v11344_v3  ;;  %9888 = vmatprep.subr.msk.mxu1 %vm3865_vm1, %v8411_v47  ;;  %v13975_v30 = vld [vmem:[#allocation13_spill] sm:$0xff]  ;;  %v13987_v47 = vld [vmem:[#allocation12_spill] sm:$0xff] }
 0x1c6   : > { %13964 = vst [vmem:[#allocation89_spill] sm:$0xff] %v11789_v26  ;;  %v11791_v10 = vpop.f32.mrf.mxu1  ;;  %v13970_v26 = vld [vmem:[#allocation6_spill] sm:$0xff]  ;;  %v1344_v2 = vadd.f32 %v11422_v29, %v908_v9  ;;  %v1727_v23 = vadd.f32 %v11485_v54, %v11363_v50  ;;  %v1354_v29 = vadd.f32 %v11494_v42, %v958_v27  ;;  %v2105_v3 = vadd.f32 %v11506_v55, %v1715_v7 }
 0x1c7   : > { %13965 = vst [vmem:[#allocation90_spill] sm:$0xff] %v11791_v10  ;;  %v11793_v13 = vpop.f32.mrf.mxu0  ;;  %v928_v10 = vadd.f32 %v11322_v53, %v13970_v26  ;;  %v1719_v53 = vadd.f32 %v11424_v61, %v11289_v0  ;;  %v1729_v61 = vadd.f32 %v11496_v62, %v11379_v43  ;;  %v2107_v49 = vadd.f32 %v11516_v52, %v1717_v11  ;;  %v13976_v43 = vld [vmem:[#allocation31_spill] sm:$0xff] }
 0x1c8   : > { %13966 = vst [vmem:[#allocation91_spill] sm:$0xff] %v11793_v13  ;;  %v11795_v40 = vpop.f32.mrf.mxu1  ;;  %v938_v13 = vadd.f32 %v11340_v16, %v13971_v51  ;;  %v1346_v16 = vadd.f32 %v11436_v4, %v918_v1  ;;  %v13978_v26 = vld [vmem:[#allocation15_spill] sm:$0xff]  ;;  %v13979_v1 = vld [vmem:[#allocation16_spill] sm:$0xff] }
 0x1c9   : > { %13967 = vst [vmem:[#allocation92_spill] sm:$0xff] %v11795_v40  ;;  %v11797_v59 = vpop.f32.mrf.mxu0  ;;  %v13972_v40 = vld [vmem:[#allocation9_spill] sm:$0xff]  ;;  %v1348_v33 = vadd.f32 %v11453_v17, %v928_v10  ;;  %v1733_v17 = vadd.f32 %v11514_v15, %v1342_v41  ;;  %v2115_v52 = vadd.f32 %v13978_v26, %v1725_v21  ;;  %v2117_v9 = vadd.f32 %v13979_v1, %v1727_v23  ;;  %v13983_v11 = vld [vmem:[#allocation11_spill] sm:$0xff]  ;;  %v13991_v23 = vld [vmem:[#allocation30_spill] sm:$0xff] }
 0x1ca   : > { %13968 = vst [vmem:[#allocation93_spill] sm:$0xff] %v11797_v59  ;;  %v11799_v37 = vpop.f32.mrf.mxu1  ;;  %v948_v59 = vadd.f32 %v11360_v34, %v13972_v40  ;;  %v1721_v34 = vadd.f32 %v11438_v24, %v11307_v32  ;;  %v1350_v0 = vadd.f32 %v11468_v12, %v938_v13  ;;  %v1731_v24 = vadd.f32 %v11504_v60, %v11397_v28  ;;  %v13974_v12 = vld [vmem:[#allocation29_spill] sm:$0xff]  ;;  %v13977_v60 = vld [vmem:[#allocation14_spill] sm:$0xff]  ;;  %v13997_v26 = vld [vmem:[#allocation39_spill] sm:$0xff] }
 0x1cb   : > { %13969 = vst [vmem:[#allocation94_spill] sm:$0xff] %v11799_v37  ;;  %v11813_v39 = vpop.f32.mrf.mxu0  ;;  %v1735_v50 = vadd.f32 %v13974_v12, %v1344_v2  ;;  %v1737_v54 = vadd.f32 %v11589_v25, %v1346_v16  ;;  %v1739_v28 = vadd.f32 %v11601_v48, %v1348_v33  ;;  %v2113_v55 = vadd.f32 %v13977_v60, %v1723_v20  ;;  %v13981_v48 = vld [vmem:[#allocation36_spill] sm:$0xff]  ;;  %v13984_v2 = vld [vmem:[#allocation18_spill] sm:$0xff]  ;;  %v13994_v12 = vld [vmem:[#allocation33_spill] sm:$0xff] }
 0x1cc   : > { %v11815_v37 = vpop.f32.mrf.mxu1  ;;  %v1352_v32 = vadd.f32 %v11483_v36, %v948_v59  ;;  %v2109_v36 = vadd.f32 %v13975_v30, %v1719_v53  ;;  %v2111_v42 = vadd.f32 %v13976_v43, %v1721_v34  ;;  %v1741_v15 = vadd.f32 %v11609_v5, %v1350_v0  ;;  %v13982_v5 = vld [vmem:[#allocation20_spill] sm:$0xff]  ;;  %v13985_v53 = vld [vmem:[#allocation19_spill] sm:$0xff]  ;;  %v13986_v34 = vld [vmem:[#allocation22_spill] sm:$0xff] }
 0x1cd   : > { %v11830_v51 = vpop.f32.mrf.mxu0  ;;  %v1745_v25 = vadd.f32 %v11625_v14, %v1354_v29  ;;  %v2119_v13 = vadd.f32 %v11627_v8, %v1729_v61  ;;  %v2496_v27 = vadd.f32 %v13981_v48, %v13980_v6  ;;  %v2121_v7 = vadd.f32 %v11634_v63, %v1731_v24  ;;  %v13988_v33 = vld [vmem:[#allocation24_spill] sm:$0xff]  ;;  %v13995_v30 = vld [vmem:[#allocation34_spill] sm:$0xff]  ;;  %v13999_v6 = vld [vmem:[#allocation35_spill] sm:$0xff] }
 0x1ce   : > { %v11832_v58 = vpop.f32.mrf.mxu1  ;;  %v1743_v59 = vadd.f32 %v11617_v19, %v1352_v32  ;;  %v2495_v41 = vadd.f32 %v13982_v5, %v2105_v3  ;;  %v2498_v19 = vadd.f32 %v13984_v2, %v13983_v11  ;;  %v2123_v16 = vadd.f32 %v13985_v53, %v1733_v17  ;;  %v13990_v32 = vld [vmem:[#allocation25_spill] sm:$0xff]  ;;  %v13992_v61 = vld [vmem:[#allocation28_spill] sm:$0xff]  ;;  %v14007_v53 = vld [vmem:[#allocation47_spill] sm:$0xff] }
 0x1cf   : > { %v11850_v4 = vpop.f32.mrf.mxu0  ;;  %v2497_v14 = vadd.f32 %v13986_v34, %v2107_v49  ;;  %v2500_v8 = vadd.f32 %v11647_v31, %v13987_v47  ;;  %v2125_v20 = vadd.f32 %v13988_v33, %v1735_v50  ;;  %v2499_v63 = vadd.f32 %v13990_v32, %v2109_v36  ;;  %v13993_v3 = vld [vmem:[#allocation32_spill] sm:$0xff]  ;;  %v14004_v5 = vld [vmem:[#allocation45_spill] sm:$0xff] }
 0x1d0   : > { %v11852_v45 = vpop.f32.mrf.mxu1  ;;  %v2502_v29 = vadd.f32 %v11655_v22, %v13991_v23  ;;  %v2127_v24 = vadd.f32 %v13992_v61, %v1737_v54  ;;  %v2501_v17 = vadd.f32 %v13993_v3, %v2111_v42  ;;  %v2504_v49 = vadd.f32 %v11663_v35, %v13994_v12  ;;  %v13998_v1 = vld [vmem:[#allocation40_spill] sm:$0xff]  ;;  %v14000_v42 = vld [vmem:[#allocation41_spill] sm:$0xff] }
 0x1d1   : > { %v11863_v62 = vpop.f32.mrf.mxu0  ;;  %v2129_v31 = vadd.f32 %v11667_v46, %v1739_v28  ;;  %v2503_v50 = vadd.f32 %v11669_v38, %v2113_v55  ;;  %v2506_v43 = vadd.f32 %v11671_v18, %v13995_v30  ;;  %v2131_v22 = vadd.f32 %v13997_v26, %v1741_v15  ;;  %v14001_v46 = vld [vmem:[#allocation43_spill] sm:$0xff]  ;;  %v14002_v38 = vld [vmem:[#allocation44_spill] sm:$0xff]  ;;  %v14003_v18 = vld [vmem:[#allocation17_spill] sm:$0xff] }
 0x1d2   : > { %v11865_v40 = vpop.f32.mrf.mxu1  ;;  %v2505_v54 = vadd.f32 %v13998_v1, %v2115_v52  ;;  %v11913_v48 = vadd.f32 %v14000_v42, %v13999_v6  ;;  %v2887_v35 = vadd.f32 %v11702_v57, %v2496_v27  ;;  %v11917_v28 = vadd.f32 %v14001_v46, %v1743_v59  ;;  %v14008_v57 = vld [vmem:[#allocation37_spill] sm:$0xff]  ;;  %v14009_v59 = vld [vmem:[#allocation48_spill] sm:$0xff]  ;;  %v14017_v42 = vld [vmem:[#allocation54_spill] sm:$0xff] }
 0x1d3   : > { %v11875_v10 = vpop.f32.mrf.mxu0  ;;  %v11920_v55 = vadd.f32 %v14002_v38, %v2117_v9  ;;  %v11924_v11 = vadd.f32 %v14004_v5, %v14003_v18  ;;  %v11927_v15 = vadd.f32 %v11696_v56, %v1745_v25  ;;  %v11934_v34 = vadd.f32 %v14007_v53, %v2119_v13  ;;  %v14010_v9 = vld [vmem:[#allocation50_spill] sm:$0xff]  ;;  %v14011_v33 = vld [vmem:[#allocation80_spill] sm:$0xff]  ;;  %v14012_v23 = vld [vmem:[#allocation49_spill] sm:$0xff] }
 0x1d4   : > { %v11877_v44 = vpop.f32.mrf.mxu1  ;;  %v11938_v27 = vadd.f32 %v14009_v59, %v14008_v57  ;;  %v2886_v47 = vadd.f32 %v14010_v9, %v2495_v41  ;;  %v3277_v32 = vadd.f32 %v14011_v33, %v2887_v35  ;;  %v11943_v61 = vadd.f32 %v14012_v23, %v2121_v7  ;;  %v14013_v56 = vld [vmem:[#allocation21_spill] sm:$0xff]  ;;  %v14014_v25 = vld [vmem:[#allocation51_spill] sm:$0xff]  ;;  %v14015_v12 = vld [vmem:[#allocation52_spill] sm:$0xff] }
 0x1d5   : > { %v11890_v0 = vpop.f32.mrf.mxu0  ;;  %14005 = vst [vmem:[#allocation9_spill] sm:$0xff] %v11927_v15  ;;  %v11947_v3 = vadd.f32 %v14014_v25, %v14013_v56  ;;  %v2889_v30 = vadd.f32 %v14015_v12, %v2498_v19  ;;  %v14016_v26 = vld [vmem:[#allocation53_spill] sm:$0xff]  ;;  %v2888_v46 = vadd.f32 %v14017_v42, %v2497_v14  ;;  %v14018_v41 = vld [vmem:[#allocation23_spill] sm:$0xff]  ;;  %v14020_v7 = vld [vmem:[#allocation82_spill] sm:$0xff] }
 0x1d6   : > { %13989 = vst [vmem:[#allocation6_spill] sm:$0xff] %v11890_v0  ;;  %v11892_v21 = vpop.f32.mrf.mxu1  ;;  %v11951_v13 = vadd.f32 %v14016_v26, %v2123_v16  ;;  %v14019_v38 = vld [vmem:[#allocation55_spill] sm:$0xff]  ;;  %v3276_v18 = vadd.f32 %v14020_v7, %v2886_v47  ;;  %v14021_v53 = vld [vmem:[#allocation56_spill] sm:$0xff]  ;;  %v14022_v59 = vld [vmem:[#allocation57_spill] sm:$0xff] }
 0x1d7   : > { %v11905_v60 = vpop.f32.mrf.mxu0  ;;  %v11958_v35 = vadd.f32 %v14019_v38, %v14018_v41  ;;  %v2891_v57 = vadd.f32 %v14021_v53, %v2500_v8  ;;  %v11963_v9 = vadd.f32 %v14022_v59, %v2125_v20  ;;  %v14023_v19 = vld [vmem:[#allocation58_spill] sm:$0xff]  ;;  %v14025_v23 = vld [vmem:[#allocation59_spill] sm:$0xff]  ;;  %v11973_v14 = vld [vmem:[%s13730_s2] ss:$0 sm:$0xff] }
 0x1d8   : > { %13996 = vst [vmem:[#allocation7_spill] sm:$0xff] %v11905_v60  ;;  %v11907_v36 = vpop.f32.mrf.mxu1  ;;  %v2890_v16 = vadd.f32 %v14023_v19, %v2499_v63  ;;  %v14024_v33 = vld [vmem:[#allocation26_spill] sm:$0xff]  ;;  %v14026_v12 = vld [vmem:[#allocation60_spill] sm:$0xff]  ;;  %v14028_v42 = vld [vmem:[#allocation61_spill] sm:$0xff] }
 0x1d9   : > { %v11929_v52 = vpop.f32.mrf.mxu0  ;;  %v11968_v56 = vadd.f32 %v14025_v23, %v14024_v33  ;;  %v2893_v47 = vadd.f32 %v14026_v12, %v2502_v29  ;;  %v11980_v63 = vadd.f32 %v14028_v42, %v2127_v24  ;;  %v14029_v41 = vld [vmem:[#allocation62_spill] sm:$0xff]  ;;  %v14030_v7 = vld [vmem:[#allocation8_spill] sm:$0xff]  ;;  %v14031_v53 = vld [vmem:[#allocation63_spill] sm:$0xff] }
 0x1da   : > { %14006 = vst [vmem:[#allocation10_spill] sm:$0xff] %v11929_v52  ;;  %v11931_v2 = vpop.f32.mrf.mxu1  ;;  %v2892_v38 = vadd.f32 %v14029_v41, %v2501_v17  ;;  %v11985_v59 = vadd.f32 %v14031_v53, %v14030_v7  ;;  %v14032_v19 = vld [vmem:[#allocation64_spill] sm:$0xff]  ;;  %v14033_v52 = vld [vmem:[#allocation65_spill] sm:$0xff]  ;;  %v14035_v24 = vld [vmem:[#allocation38_spill] sm:$0xff] }
 0x1db   : > { %v9642_v6 = vpop.f32.mrf.mxu0  ;;  %v2895_v33 = vadd.f32 %v14032_v19, %v2504_v49  ;;  %v11989_v29 = vadd.f32 %v14033_v52, %v2129_v31  ;;  %v14037_v42 = vld [vmem:[#allocation68_spill] sm:$0xff]  ;;  %v14038_v7 = vld [vmem:[#allocation86_spill] sm:$0xff] }
 0x1dc   : > { %v11953_v1 = vpop.f32.mrf.mxu1  ;;  %v3667_v5 = vadd.f32 %v9642_v6, %v3277_v32  ;;  %v14027_v32 = vld [vmem:[#allocation84_spill] sm:$0xff]  ;;  %v12000_v41 = vadd.f32 %v14037_v42, %v2506_v43  ;;  %v3278_v49 = vadd.f32 %v14038_v7, %v2888_v46  ;;  %v14040_v19 = vld [vmem:[#allocation70_spill] sm:$0xff] }
 0x1dd   : > { %v3507_v25 = vpop.f32.mrf.mxu0  ;;  %v3279_v26 = vadd.f32 %v14027_v32, %v2889_v30  ;;  %v14036_v32 = vld [vmem:[#allocation67_spill] sm:$0xff]  ;;  %v14042_v60 = vld [vmem:[#allocation42_spill] sm:$0xff] }
 0x1de   : > { %v3699_v8 = vmul.f32 0.0745356, %v3667_v5  ;;  %v11977_v6 = vpop.f32.mrf.mxu1  ;;  %v3666_v20 = vadd.f32 %v3507_v25, %v3276_v18  ;;  %v14034_v18 = vld [vmem:[#allocation66_spill] sm:$0xff]  ;;  %v11997_v17 = vadd.f32 %v14036_v32, %v14035_v24 }
 0x1df   : > { %v9645_v23 = vpop.f32.mrf.mxu0  ;;  %v11993_v25 = vadd.f32 %v14034_v18, %v2503_v50  ;;  %v14041_v18 = vld [vmem:[#allocation88_spill] sm:$0xff] }
 0x1e0   : > { %v3738_v30 = vadd.f32 %v11973_v14, %v3699_v8  ;;  %v3698_v5 = vmul.f32 0.0745356, %v3666_v20  ;;  %v3669_v12 = vadd.f32 %v9645_v23, %v3279_v26  ;;  %v12004_v8 = vpop.f32.mrf.mxu1  ;;  %v14039_v20 = vld [vmem:[#allocation69_spill] sm:$0xff]  ;;  %v12010_v23 = vadd.f32 %v14040_v19, %v2505_v54  ;;  %v14045_v19 = vld [vmem:[#allocation92_spill] sm:$0xff] }
 0x1e1   : > { %v3517_v53 = vpop.f32.mrf.mxu0  ;;  %v12007_v50 = vadd.f32 %v14039_v20, %v2131_v22  ;;  %v3281_v24 = vadd.f32 %v14041_v18, %v2891_v57  ;;  %v3283_v57 = vadd.f32 %v14045_v19, %v2893_v47  ;;  %v14048_v47 = vld [vmem:[#allocation94_spill] sm:$0xff] }
 0x1e2   : > { %vm3770_vm3 = vcmp.gt.f32.partialorder %v3738_v30, 0.0  ;;  %v3802_v31 = vmul.f32 0.2, %v3738_v30  ;;  %v3737_v52 = vadd.f32 %v11973_v14, %v3698_v5  ;;  %v3701_v26 = vmul.f32 0.0745356, %v3669_v12  ;;  %v14043_v5 = vld [vmem:[#allocation71_spill] sm:$0xff] }
 0x1e3   : > { %v3668_v43 = vadd.f32 %v3517_v53, %v3278_v49  ;;  %v9648_v32 = vpop.f32.mrf.mxu0  ;;  %v12016_v15 = vadd.f32 %v14043_v5, %v14042_v60  ;;  %v14044_v12 = vld [vmem:[#allocation90_spill] sm:$0xff]  ;;  %v12021_v53 = vpop.f32.mrf.mxu1 }
 0x1e4   : > { %v3834_v42 = vsel %vm3770_vm3, %v3738_v30, %v3802_v31  ;;  %vm3769_vm4 = vcmp.gt.f32.partialorder %v3737_v52, 0.0  ;;  %v3801_v46 = vmul.f32 0.2, %v3737_v52  ;;  %v3740_v7 = vadd.f32 %v11973_v14, %v3701_v26  ;;  %v14046_v31 = vld [vmem:[#allocation72_spill] sm:$0xff] }
 0x1e5   : > { %v3280_v0 = vadd.f32 %v14044_v12, %v2890_v16  ;;  %3923 = vst.msk [vmem:[#allocation2 + $0x21] sm:$0xff] %vm3865_vm1, %v3834_v42  ;;  %v3700_v22 = vmul.f32 0.0745356, %v3668_v43  ;;  %v3671_v54 = vadd.f32 %v9648_v32, %v3281_v24  ;;  %v3527_v20 = vpop.f32.mrf.mxu0  ;;  %v12025_v26 = vadd.f32 %v14046_v31, %v11913_v48  ;;  %v14047_v24 = vld [vmem:[#allocation73_spill] sm:$0xff] }
 0x1e6   : > { %v3833_v49 = vsel %vm3769_vm4, %v3737_v52, %v3801_v46  ;;  %vm3772_vm5 = vcmp.gt.f32.partialorder %v3740_v7, 0.0  ;;  %v3804_v30 = vmul.f32 0.2, %v3740_v7  ;;  %v12031_v32 = vadd.f32 %v14047_v24, %v11917_v28  ;;  %v14049_v28 = vld [vmem:[#allocation74_spill] sm:$0xff] }
 0x1e7   : > { %3922 = vst.msk [vmem:[#allocation2 + $0x19] sm:$0xff] %vm3865_vm1, %v3833_v49  ;;  %v3739_v60 = vadd.f32 %v11973_v14, %v3700_v22  ;;  %v3703_v16 = vmul.f32 0.0745356, %v3671_v54  ;;  %v3670_v18 = vadd.f32 %v3527_v20, %v3280_v0  ;;  %v9651_v43 = vpop.f32.mrf.mxu0  ;;  %v3282_v52 = vadd.f32 %v14048_v47, %v2892_v38  ;;  %v12039_v0 = vld [vmem:[%s13731_s3 + $0x28] sm:$0xff] }
 0x1e8   : > { %v3836_v42 = vsel %vm3772_vm5, %v3740_v7, %v3804_v30  ;;  %v3673_v46 = vadd.f32 %v9651_v43, %v3283_v57  ;;  %v12043_v22 = vadd.f32 %v14049_v28, %v11920_v55  ;;  %v3285_v38 = vadd.f32 %v11815_v37, %v2895_v33  ;;  %v12046_v7 = vpop.f32.mrf.mxu1  ;;  %9938 = vmatprep.subr.msk.mxu0 %vm3865_vm1, %v12039_v0 }
 0x1e9   : > { %3925 = vst.msk [vmem:[#allocation2 + $0x39] sm:$0xff] %vm3865_vm1, %v3836_v42  ;;  %vm3771_vm6 = vcmp.gt.f32.partialorder %v3739_v60, 0.0  ;;  %v3803_v48 = vmul.f32 0.2, %v3739_v60  ;;  %v3742_v5 = vadd.f32 %v11973_v14, %v3703_v16  ;;  %v3702_v12 = vmul.f32 0.0745356, %v3670_v18  ;;  %v3537_v19 = vpop.f32.mrf.mxu0 }
 0x1ea   : > { %v3705_v54 = vmul.f32 0.0745356, %v3673_v46  ;;  %v3672_v20 = vadd.f32 %v3537_v19, %v3282_v52  ;;  %v14050_v16 = vld [vmem:[#allocation76_spill] sm:$0xff]  ;;  %v3284_v43 = vadd.f32 %v11832_v58, %v11993_v25  ;;  %v12060_v52 = vpop.f32.mrf.mxu1  ;;  %v3287_v58 = vadd.f32 %v11852_v45, %v12000_v41  ;;  %v14052_v45 = vld [vmem:[#allocation79_spill] sm:$0xff] }
 0x1eb   : > { %v3835_v57 = vsel %vm3771_vm6, %v3739_v60, %v3803_v48  ;;  %vm3774_vm7 = vcmp.gt.f32.partialorder %v3742_v5, 0.0  ;;  %v3806_v49 = vmul.f32 0.2, %v3742_v5  ;;  %v3741_v30 = vadd.f32 %v11973_v14, %v3702_v12  ;;  %v9654_v31 = vpop.f32.mrf.mxu0  ;;  %v14051_v12 = vld [vmem:[#allocation78_spill] sm:$0xff] }
 0x1ec   : > { %v12053_v18 = vadd.f32 %v14050_v16, %v11924_v11  ;;  %3924 = vst.msk [vmem:[#allocation2 + $0x31] sm:$0xff] %vm3865_vm1, %v3835_v57  ;;  %v3744_v37 = vadd.f32 %v11973_v14, %v3705_v54  ;;  %v3704_v55 = vmul.f32 0.0745356, %v3672_v20  ;;  %v3675_v33 = vadd.f32 %v9654_v31, %v3285_v38  ;;  %v12075_v54 = vld [vmem:[#allocation2 + $0x21] sm:$0xff] }
 0x1ed   : > { %v3838_v24 = vsel %vm3774_vm7, %v3742_v5, %v3806_v49  ;;  %vm3773_vm8 = vcmp.gt.f32.partialorder %v3741_v30, 0.0  ;;  %v3805_v60 = vmul.f32 0.2, %v3741_v30  ;;  %v3547_v47 = vpop.f32.mrf.mxu0  ;;  %v12067_v19 = vadd.f32 %v14051_v12, %v11934_v34 }
 0x1ee   : > { %3927 = vst.msk [vmem:[#allocation2 + $0x51] sm:$0xff] %vm3865_vm1, %v3838_v24  ;;  %vm3776_vm9 = vcmp.gt.f32.partialorder %v3744_v37, 0.0  ;;  %v3808_v11 = vmul.f32 0.2, %v3744_v37  ;;  %v3743_v42 = vadd.f32 %v11973_v14, %v3704_v55  ;;  %v3707_v46 = vmul.f32 0.0745356, %v3675_v33  ;;  %v12096_v33 = vpop.f32.mrf.mxu1 }
 0x1ef   : > { %v12063_v48 = vld [vmem:[#allocation2 + $0x19] sm:$0xff]  ;;  %v3837_v25 = vsel %vm3773_vm8, %v3741_v30, %v3805_v60  ;;  %v3674_v5 = vadd.f32 %v3547_v47, %v3284_v43  ;;  %v9657_v28 = vpop.f32.mrf.mxu0  ;;  %v12087_v41 = vadd.f32 %v14052_v45, %v11938_v27  ;;  %v3286_v30 = vadd.f32 %v11865_v40, %v12010_v23  ;;  %v14053_v24 = vld [vmem:[#allocation81_spill] sm:$0xff] }
 0x1f0   : > { %9693 = vmatprep.mubr.msk.f32.mxu1 %vm3865_vm1, %v12063_v48  ;;  %v12073_v38 = vld [vmem:[#allocation2 + $0x18] sm:$0xff]  ;;  %v12077_v20 = vld [vmem:[#allocation2 + $0x20] sm:$0xff]  ;;  %3926 = vst.msk [vmem:[#allocation2 + $0x49] sm:$0xff] %vm3865_vm1, %v3837_v25  ;;  %v3840_v57 = vsel %vm3776_vm9, %v3744_v37, %v3808_v11  ;;  %vm3775_vm10 = vcmp.gt.f32.partialorder %v3743_v42, 0.0  ;;  %v3807_v34 = vmul.f32 0.2, %v3743_v42  ;;  %v3746_v49 = vadd.f32 %v11973_v14, %v3707_v46 }
 0x1f1   : > { %9743 = vmatprep.mubr.msk.f32.mxu0 %vm3865_vm1, %v12073_v38  ;;  %9694 = vmatmul.mubr.msk.f32.gmra.mxu1 %vm3865_vm1, %v12075_v54  ;;  %3929 = vst.msk [vmem:[#allocation2 + $0x69] sm:$0xff] %vm3865_vm1, %v3840_v57  ;;  %v3706_v31 = vmul.f32 0.0745356, %v3674_v5  ;;  %v3677_v16 = vadd.f32 %v9657_v28, %v3287_v58  ;;  %v3557_v37 = vpop.f32.mrf.mxu0  ;;  %v3289_v55 = vadd.f32 %v11877_v44, %v12025_v26 }
 0x1f2   : > { %9744 = vmatmul.mubr.msk.f32.gmra.mxu0 %vm3865_vm1, %v12077_v20  ;;  %v3839_v43 = vsel %vm3775_vm10, %v3743_v42, %v3807_v34  ;;  %vm3778_vm11 = vcmp.gt.f32.partialorder %v3746_v49, 0.0  ;;  %v3810_v27 = vmul.f32 0.2, %v3746_v49  ;;  %v2902_v60 = vadd.f32 %v14053_v24, %v11943_v61  ;;  %v12114_v61 = vld [vmem:[#allocation2 + $0x39] sm:$0xff] }
 0x1f3   : > { %3928 = vst.msk [vmem:[#allocation2 + $0x61] sm:$0xff] %vm3865_vm1, %v3839_v43  ;;  %v3745_v40 = vadd.f32 %v11973_v14, %v3706_v31  ;;  %v3709_v23 = vmul.f32 0.0745356, %v3677_v16  ;;  %v3676_v47 = vadd.f32 %v3557_v37, %v3286_v30  ;;  %v9660_v11 = vpop.f32.mrf.mxu0  ;;  %v12102_v46 = vld [vmem:[#allocation2 + $0x31] sm:$0xff]  ;;  %v3288_v26 = vadd.f32 %v11892_v21, %v12043_v22 }
 0x1f4   : > { %v12104_v12 = vld [vmem:[#allocation2 + $0x30] sm:$0xff]  ;;  %v12106_v44 = vld [vmem:[#allocation2 + $0x38] sm:$0xff]  ;;  %v3842_v42 = vsel %vm3778_vm11, %v3746_v49, %v3810_v27  ;;  %v3679_v58 = vadd.f32 %v9660_v11, %v3289_v55  ;;  %9696 = vmatprep.mubr.msk.f32.mxu1 %vm3865_vm1, %v12102_v46  ;;  %v3291_v34 = vadd.f32 %v11907_v36, %v12053_v18  ;;  %v12126_v49 = vpop.f32.mrf.mxu1  ;;  %v3290_v11 = vadd.f32 %v11931_v2, %v12067_v19 }
 0x1f5   : > { %9746 = vmatprep.mubr.msk.f32.mxu0 %vm3865_vm1, %v12104_v12  ;;  %3931 = vst.msk [vmem:[#allocation2 + $0x81] sm:$0xff] %vm3865_vm1, %v3842_v42  ;;  %vm3777_vm12 = vcmp.gt.f32.partialorder %v3745_v40, 0.0  ;;  %v3809_v25 = vmul.f32 0.2, %v3745_v40  ;;  %v3748_v5 = vadd.f32 %v11973_v14, %v3709_v23  ;;  %v3708_v28 = vmul.f32 0.0745356, %v3676_v47  ;;  %9697 = vmatmul.mubr.msk.f32.gmra.mxu1 %vm3865_vm1, %v12114_v61  ;;  %v3567_v21 = vpop.f32.mrf.mxu0 }
 0x1f6   : > { %9747 = vmatmul.mubr.msk.f32.gmra.mxu0 %vm3865_vm1, %v12106_v44  ;;  %v14054_v22 = vld [vmem:[#allocation83_spill] sm:$0xff]  ;;  %v3711_v45 = vmul.f32 0.0745356, %v3679_v58  ;;  %v3678_v30 = vadd.f32 %v3567_v21, %v3288_v26  ;;  %v12152_v58 = vpop.f32.mrf.mxu1  ;;  %v3292_v21 = vadd.f32 %v11977_v6, %v2902_v60 }
 0x1f7   : > { %v2905_v57 = vadd.f32 %v14054_v22, %v11947_v3  ;;  %v3841_v31 = vsel %vm3777_vm12, %v3745_v40, %v3809_v25  ;;  %vm3780_vm13 = vcmp.gt.f32.partialorder %v3748_v5, 0.0  ;;  %v3812_v16 = vmul.f32 0.2, %v3748_v5  ;;  %v9663_v55 = vpop.f32.mrf.mxu0  ;;  %v12129_v43 = vld [vmem:[#allocation2 + $0x49] sm:$0xff]  ;;  %v12143_v47 = vld [vmem:[#allocation2 + $0x51] sm:$0xff] }
 0x1f8   : > { %v3747_v37 = vadd.f32 %v11973_v14, %v3708_v28  ;;  %v12131_v27 = vld [vmem:[#allocation2 + $0x48] sm:$0xff]  ;;  %v12133_v24 = vld [vmem:[#allocation2 + $0x50] sm:$0xff]  ;;  %3930 = vst.msk [vmem:[#allocation2 + $0x79] sm:$0xff] %vm3865_vm1, %v3841_v31  ;;  %v3750_v36 = vadd.f32 %v11973_v14, %v3711_v45  ;;  %v3710_v18 = vmul.f32 0.0745356, %v3678_v30  ;;  %v3681_v40 = vadd.f32 %v9663_v55, %v3291_v34  ;;  %9699 = vmatprep.mubr.msk.f32.mxu1 %vm3865_vm1, %v12129_v43  ;;  %v14056_v6 = vld [vmem:[#allocation87_spill] sm:$0xff] }
 0x1f9   : > { %v14055_v3 = vld [vmem:[#allocation85_spill] sm:$0xff]  ;;  %9749 = vmatprep.mubr.msk.f32.mxu0 %vm3865_vm1, %v12131_v27  ;;  %v3844_v26 = vsel %vm3780_vm13, %v3748_v5, %v3812_v16  ;;  %9700 = vmatmul.mubr.msk.f32.gmra.mxu1 %vm3865_vm1, %v12143_v47  ;;  %v3577_v42 = vpop.f32.mrf.mxu0  ;;  %v3293_v5 = vadd.f32 %v11953_v1, %v12087_v41  ;;  %v2907_v41 = vadd.f32 %v14056_v6, %v11958_v35 }
 0x1fa   : > { %v2904_v23 = vadd.f32 %v14055_v3, %v11951_v13  ;;  %vm3779_vm14 = vcmp.gt.f32.partialorder %v3747_v37, 0.0  ;;  %v3811_v13 = vmul.f32 0.2, %v3747_v37  ;;  %9750 = vmatmul.mubr.msk.f32.gmra.mxu0 %vm3865_vm1, %v12133_v24  ;;  %3933 = vst.msk [vmem:[#allocation2 + $0x99] sm:$0xff] %vm3865_vm1, %v3844_v26  ;;  %vm3782_vm15 = vcmp.gt.f32.partialorder %v3750_v36, 0.0  ;;  %v12156_v19 = vld [vmem:[#allocation2 + $0x61] sm:$0xff] }
 0x1fb   : > { %v3814_v25 = vmul.f32 0.2, %v3750_v36  ;;  %v3749_v28 = vadd.f32 %v11973_v14, %v3710_v18  ;;  %v3713_v2 = vmul.f32 0.0745356, %v3681_v40  ;;  %v3680_v34 = vadd.f32 %v3577_v42, %v3290_v11  ;;  %v9666_v45 = vpop.f32.mrf.mxu0  ;;  %9702 = vmatprep.mubr.msk.f32.mxu1 %vm3865_vm1, %v12156_v19  ;;  %v12163_v30 = vld [vmem:[#allocation2 + $0x60] sm:$0xff]  ;;  %v12165_v31 = vld [vmem:[#allocation2 + $0x68] sm:$0xff]  ;;  %v12181_v40 = vpop.f32.mrf.mxu1 }
 0x1fc   : > { %v3843_v22 = vsel %vm3779_vm14, %v3747_v37, %v3811_v13  ;;  %9752 = vmatprep.mubr.msk.f32.mxu0 %vm3865_vm1, %v12163_v30  ;;  %v12171_v1 = vld [vmem:[#allocation2 + $0x69] sm:$0xff]  ;;  %v3295_v60 = vadd.f32 %v12004_v8, %v2905_v57  ;;  %v3683_v18 = vadd.f32 %v9666_v45, %v3293_v5  ;;  %v14058_v57 = vld [vmem:[#allocation91_spill] sm:$0xff] }
 0x1fd   : > { %3932 = vst.msk [vmem:[#allocation2 + $0x91] sm:$0xff] %vm3865_vm1, %v3843_v22  ;;  %v3846_v16 = vsel %vm3782_vm15, %v3750_v36, %v3814_v25  ;;  %vm3781_vm0 = vcmp.gt.f32.partialorder %v3749_v28, 0.0  ;;  %v3813_v55 = vmul.f32 0.2, %v3749_v28  ;;  %v3752_v3 = vadd.f32 %v11973_v14, %v3713_v2  ;;  %9703 = vmatmul.mubr.msk.f32.gmra.mxu1 %vm3865_vm1, %v12171_v1  ;;  %v3587_v36 = vpop.f32.mrf.mxu0  ;;  %v14057_v35 = vld [vmem:[#allocation89_spill] sm:$0xff] }
 0x1fe   : > { %3935 = vst.msk [vmem:[#allocation2 + $0xb1] sm:$0xff] %vm3865_vm1, %v3846_v16  ;;  %v3712_v37 = vmul.f32 0.0745356, %v3680_v34  ;;  %9753 = vmatmul.mubr.msk.f32.gmra.mxu0 %vm3865_vm1, %v12165_v31  ;;  %v3682_v13 = vadd.f32 %v3587_v36, %v3292_v21  ;;  %v2906_v8 = vadd.f32 %v14057_v35, %v11963_v9  ;;  %v2909_v42 = vadd.f32 %v14058_v57, %v11968_v56  ;;  %v12200_v56 = vld [vmem:[#allocation2 + $0x81] sm:$0xff] }
 0x1ff   : > { %v3845_v11 = vsel %vm3781_vm0, %v3749_v28, %v3813_v55  ;;  %vm3784_vm2 = vcmp.gt.f32.partialorder %v3752_v3, 0.0  ;;  %v3816_v26 = vmul.f32 0.2, %v3752_v3  ;;  %v3715_v2 = vmul.f32 0.0745356, %v3683_v18  ;;  %v9669_v5 = vpop.f32.mrf.mxu0  ;;  %v12189_v22 = vld [vmem:[#allocation2 + $0x79] sm:$0xff] }
 0x200   : > { %3934 = vst.msk [vmem:[#allocation2 + $0xa9] sm:$0xff] %vm3865_vm1, %v3845_v11  ;;  %v3751_v25 = vadd.f32 %v11973_v14, %v3712_v37  ;;  %v12191_v34 = vld [vmem:[#allocation2 + $0x78] sm:$0xff]  ;;  %v12193_v28 = vld [vmem:[#allocation2 + $0x80] sm:$0xff]  ;;  %v3294_v21 = vadd.f32 %v12021_v53, %v2904_v23  ;;  %v3714_v16 = vmul.f32 0.0745356, %v3682_v13  ;;  %v3685_v9 = vadd.f32 %v9669_v5, %v3295_v60  ;;  %9705 = vmatprep.mubr.msk.f32.mxu1 %vm3865_vm1, %v12189_v22  ;;  %v14059_v55 = vld [vmem:[#allocation93_spill] sm:$0xff]  ;;  %v12211_v60 = vpop.f32.mrf.mxu1 }
 0x201   : > { %v3848_v45 = vsel %vm3784_vm2, %v3752_v3, %v3816_v26  ;;  %9755 = vmatprep.mubr.msk.f32.mxu0 %vm3865_vm1, %v12191_v34  ;;  %v2908_v6 = vadd.f32 %v14059_v55, %v11980_v63  ;;  %v3754_v53 = vadd.f32 %v11973_v14, %v3715_v2  ;;  %9706 = vmatmul.mubr.msk.f32.gmra.mxu1 %vm3865_vm1, %v12200_v56  ;;  %v3597_v23 = vpop.f32.mrf.mxu0 }
 0x202   : > { %3937 = vst.msk [vmem:[#allocation2 + $0xc9] sm:$0xff] %vm3865_vm1, %v3848_v45  ;;  %vm3783_vm3 = vcmp.gt.f32.partialorder %v3751_v25, 0.0  ;;  %v3815_v37 = vmul.f32 0.2, %v3751_v25  ;;  %9756 = vmatmul.mubr.msk.f32.gmra.mxu0 %vm3865_vm1, %v12193_v28  ;;  %v3297_v3 = vadd.f32 %v12046_v7, %v2907_v41  ;;  %v3753_v18 = vadd.f32 %v11973_v14, %v3714_v16 }
 0x203   : > { %v3717_v63 = vmul.f32 0.0745356, %v3685_v9  ;;  %v3684_v36 = vadd.f32 %v3597_v23, %v3294_v21  ;;  %v3296_v11 = vadd.f32 %v12060_v52, %v2906_v8  ;;  %vm3786_vm4 = vcmp.gt.f32.partialorder %v3754_v53, 0.0  ;;  %v9672_v35 = vpop.f32.mrf.mxu0  ;;  %v12227_v52 = vld [vmem:[#allocation2 + $0x99] sm:$0xff]  ;;  %v12234_v9 = vpop.f32.mrf.mxu1 }
 0x204   : > { %v3847_v26 = vsel %vm3783_vm3, %v3751_v25, %v3815_v37  ;;  %v3818_v13 = vmul.f32 0.2, %v3754_v53  ;;  %v12215_v57 = vld [vmem:[#allocation2 + $0x91] sm:$0xff]  ;;  %vm3785_vm5 = vcmp.gt.f32.partialorder %v3753_v18, 0.0  ;;  %v3817_v7 = vmul.f32 0.2, %v3753_v18 }
 0x205   : > { %v12217_v2 = vld [vmem:[#allocation2 + $0x90] sm:$0xff]  ;;  %v12219_v5 = vld [vmem:[#allocation2 + $0x98] sm:$0xff]  ;;  %3936 = vst.msk [vmem:[#allocation2 + $0xc1] sm:$0xff] %vm3865_vm1, %v3847_v26  ;;  %v3756_v41 = vadd.f32 %v11973_v14, %v3717_v63  ;;  %v3716_v45 = vmul.f32 0.0745356, %v3684_v36  ;;  %9708 = vmatprep.mubr.msk.f32.mxu1 %vm3865_vm1, %v12215_v57  ;;  %v3299_v8 = vadd.f32 %v12096_v33, %v2909_v42  ;;  %v3687_v21 = vadd.f32 %v9672_v35, %v3297_v3  ;;  %v3607_v16 = vpop.f32.mrf.mxu0 }
 0x206   : > { %14060 = vst [vmem:[#allocation29_spill] sm:$0xff] %v12219_v5  ;;  %9758 = vmatprep.mubr.msk.f32.mxu0 %vm3865_vm1, %v12217_v2  ;;  %v3850_v25 = vsel %vm3786_vm4, %v3754_v53, %v3818_v13  ;;  %9709 = vmatmul.mubr.msk.f32.gmra.mxu1 %vm3865_vm1, %v12227_v52  ;;  %v3849_v55 = vsel %vm3785_vm5, %v3753_v18, %v3817_v7 }
 0x207   : > { %9759 = vmatmul.mubr.msk.f32.gmra.mxu0 %vm3865_vm1, %v12219_v5  ;;  %3939 = vst.msk [vmem:[#allocation2 + $0xe1] sm:$0xff] %vm3865_vm1, %v3850_v25  ;;  %vm3788_vm6 = vcmp.gt.f32.partialorder %v3756_v41, 0.0  ;;  %v3820_v37 = vmul.f32 0.2, %v3756_v41  ;;  %v3755_v23 = vadd.f32 %v11973_v14, %v3716_v45  ;;  %v12238_v63 = vld [vmem:[#allocation2 + $0xa9] sm:$0xff]  ;;  %v2911_v53 = vadd.f32 %v11813_v39, %v11985_v59  ;;  %3938 = vst.msk [vmem:[#allocation2 + $0xd9] sm:$0xff] %vm3865_vm1, %v3849_v55  ;;  %v9675_v18 = vpop.f32.mrf.mxu0 }
 0x208   : > { %v12240_v33 = vld [vmem:[#allocation2 + $0xa8] sm:$0xff]  ;;  %v12242_v42 = vld [vmem:[#allocation2 + $0xb0] sm:$0xff]  ;;  %v3298_v3 = vadd.f32 %v12126_v49, %v2908_v6  ;;  %v3719_v36 = vmul.f32 0.0745356, %v3687_v21  ;;  %v3686_v26 = vadd.f32 %v3607_v16, %v3296_v11  ;;  %9711 = vmatprep.mubr.msk.f32.mxu1 %vm3865_vm1, %v12238_v63  ;;  %v3689_v7 = vadd.f32 %v9675_v18, %v3299_v8  ;;  %v9634_v8 = vpop.f32.mrf.mxu1 }
 0x209   : > { %14061 = vst [vmem:[#allocation13_spill] sm:$0xff] %v12240_v33  ;;  %14062 = vst [vmem:[#allocation31_spill] sm:$0xff] %v12242_v42  ;;  %9761 = vmatprep.mubr.msk.f32.mxu0 %vm3865_vm1, %v12240_v33  ;;  %v3852_v13 = vsel %vm3788_vm6, %v3756_v41, %v3820_v37  ;;  %vm3787_vm7 = vcmp.gt.f32.partialorder %v3755_v23, 0.0  ;;  %v3819_v35 = vmul.f32 0.2, %v3755_v23  ;;  %v12252_v45 = vld [vmem:[#allocation2 + $0xb1] sm:$0xff]  ;;  %v2910_v39 = vadd.f32 %v11830_v51, %v11989_v29  ;;  %v3617_v11 = vpop.f32.mrf.mxu0 }
 0x20a   : > { %v2913_v59 = vadd.f32 %v11850_v4, %v11997_v17  ;;  %3941 = vst.msk [vmem:[#allocation2 + $0xf9] sm:$0xff] %vm3865_vm1, %v3852_v13  ;;  %v3758_v49 = vadd.f32 %v11973_v14, %v3719_v36  ;;  %v3718_v6 = vmul.f32 0.0745356, %v3686_v26  ;;  %9712 = vmatmul.mubr.msk.f32.gmra.mxu1 %vm3865_vm1, %v12252_v45  ;;  %v3301_v41 = vadd.f32 %v12152_v58, %v2911_v53 }
 0x20b   : > { %9762 = vmatmul.mubr.msk.f32.gmra.mxu0 %vm3865_vm1, %v12242_v42  ;;  %v3851_v25 = vsel %vm3787_vm7, %v3755_v23, %v3819_v35  ;;  %v3721_v51 = vmul.f32 0.0745356, %v3689_v7  ;;  %v3688_v29 = vadd.f32 %v3617_v11, %v3298_v3  ;;  %v2912_v4 = vadd.f32 %v11863_v62, %v12007_v50  ;;  %v9678_v16 = vpop.f32.mrf.mxu0  ;;  %v12282_v50 = vld [vmem:[#allocation2 + $0xc9] sm:$0xff] }
 0x20c   : > { %3940 = vst.msk [vmem:[#allocation2 + $0xf1] sm:$0xff] %vm3865_vm1, %v3851_v25  ;;  %vm3790_vm8 = vcmp.gt.f32.partialorder %v3758_v49, 0.0  ;;  %v3822_v17 = vmul.f32 0.2, %v3758_v49  ;;  %v3757_v21 = vadd.f32 %v11973_v14, %v3718_v6  ;;  %v12269_v55 = vld [vmem:[#allocation2 + $0xc1] sm:$0xff]  ;;  %v2915_v58 = vadd.f32 %v11875_v10, %v12016_v15  ;;  %v3257_v15 = vpop.f32.mrf.mxu1 }
 0x20d   : > { %v12271_v37 = vld [vmem:[#allocation2 + $0xc0] sm:$0xff]  ;;  %v12273_v36 = vld [vmem:[#allocation2 + $0xc8] sm:$0xff]  ;;  %v3760_v23 = vadd.f32 %v11973_v14, %v3721_v51  ;;  %v3720_v53 = vmul.f32 0.0745356, %v3688_v29  ;;  %v3691_v62 = vadd.f32 %v9678_v16, %v3301_v41  ;;  %9714 = vmatprep.mubr.msk.f32.mxu1 %vm3865_vm1, %v12269_v55  ;;  %v3300_v3 = vadd.f32 %v12181_v40, %v2910_v39  ;;  %v3627_v10 = vpop.f32.mrf.mxu0 }
 0x20e   : > { %14063 = vst [vmem:[#allocation14_spill] sm:$0xff] %v12271_v37  ;;  %14064 = vst [vmem:[#allocation15_spill] sm:$0xff] %v12273_v36  ;;  %9764 = vmatprep.mubr.msk.f32.mxu0 %vm3865_vm1, %v12271_v37  ;;  %v3854_v26 = vsel %vm3790_vm8, %v3758_v49, %v3822_v17  ;;  %vm3789_vm9 = vcmp.gt.f32.partialorder %v3757_v21, 0.0  ;;  %v3821_v18 = vmul.f32 0.2, %v3757_v21  ;;  %9715 = vmatmul.mubr.msk.f32.gmra.mxu1 %vm3865_vm1, %v12282_v50  ;;  %v12291_v6 = vld [vmem:[#allocation2 + $0xd9] sm:$0xff] }
 0x20f   : > { %9765 = vmatmul.mubr.msk.f32.gmra.mxu0 %vm3865_vm1, %v12273_v36  ;;  %3943 = vst.msk [vmem:[#allocation2 + $0x111] sm:$0xff] %vm3865_vm1, %v3854_v26  ;;  %vm3792_vm10 = vcmp.gt.f32.partialorder %v3760_v23, 0.0  ;;  %v3824_v13 = vmul.f32 0.2, %v3760_v23  ;;  %v3759_v35 = vadd.f32 %v11973_v14, %v3720_v53  ;;  %v3723_v7 = vmul.f32 0.0745356, %v3691_v62  ;;  %v9681_v41 = vpop.f32.mrf.mxu0  ;;  %9717 = vmatprep.mubr.msk.f32.mxu1 %vm3865_vm1, %v12291_v6  ;;  %v9637_v62 = vpop.f32.mrf.mxu1 }
 0x210   : > { %v3303_v40 = vadd.f32 %v12211_v60, %v2913_v59  ;;  %v3302_v39 = vadd.f32 %v12234_v9, %v2912_v4  ;;  %v3853_v49 = vsel %vm3789_vm9, %v3757_v21, %v3821_v18  ;;  %v3690_v11 = vadd.f32 %v3627_v10, %v3300_v3  ;;  %v12297_v25 = vld [vmem:[#allocation2 + $0xd8] sm:$0xff]  ;;  %v12299_v51 = vld [vmem:[#allocation2 + $0xe0] sm:$0xff]  ;;  %v14067_v9 = vld [vmem:[#allocation6_spill] sm:$0xff] }
 0x211   : > { %14065 = vst [vmem:[#allocation16_spill] sm:$0xff] %v12297_v25  ;;  %14066 = vst [vmem:[#allocation27_spill] sm:$0xff] %v12299_v51  ;;  %v3856_v29 = vsel %vm3792_vm10, %v3760_v23, %v3824_v13  ;;  %vm3791_vm11 = vcmp.gt.f32.partialorder %v3759_v35, 0.0  ;;  %v3823_v17 = vmul.f32 0.2, %v3759_v35  ;;  %v3762_v16 = vadd.f32 %v11973_v14, %v3723_v7  ;;  %9767 = vmatprep.mubr.msk.f32.mxu0 %vm3865_vm1, %v12297_v25  ;;  %v12305_v60 = vld [vmem:[#allocation2 + $0xe1] sm:$0xff]  ;;  %v3637_v23 = vpop.f32.mrf.mxu0 }
 0x212   : > { %3942 = vst.msk [vmem:[#allocation2 + $0x109] sm:$0xff] %vm3865_vm1, %v3853_v49  ;;  %v2914_v59 = vadd.f32 %v14067_v9, %v12031_v32  ;;  %v3305_v4 = vadd.f32 %v9634_v8, %v2915_v58  ;;  %3945 = vst.msk [vmem:[#allocation2 + $0x129] sm:$0xff] %vm3865_vm1, %v3856_v29  ;;  %v3722_v21 = vmul.f32 0.0745356, %v3690_v11  ;;  %v3693_v53 = vadd.f32 %v9681_v41, %v3303_v40  ;;  %v14070_v58 = vld [vmem:[#allocation46_spill] sm:$0xff]  ;;  %v14071_v13 = vld [vmem:[#allocation75_spill] sm:$0xff] }
 0x213   : > { %9718 = vmatmul.mubr.msk.f32.gmra.mxu1 %vm3865_vm1, %v12305_v60  ;;  %9768 = vmatmul.mubr.msk.f32.gmra.mxu0 %vm3865_vm1, %v12299_v51  ;;  %v3855_v3 = vsel %vm3791_vm11, %v3759_v35, %v3823_v17  ;;  %vm3794_vm12 = vcmp.gt.f32.partialorder %v3762_v16, 0.0  ;;  %v3826_v26 = vmul.f32 0.2, %v3762_v16  ;;  %v3692_v18 = vadd.f32 %v3637_v23, %v3302_v39  ;;  %v12314_v10 = vld [vmem:[#allocation2 + $0xf1] sm:$0xff]  ;;  %v14072_v40 = vld [vmem:[#allocation9_spill] sm:$0xff]  ;;  %v9684_v29 = vpop.f32.mrf.mxu0 }
 0x214   : > { %v12316_v32 = vld [vmem:[#allocation2 + $0xf0] sm:$0xff]  ;;  %v12318_v8 = vld [vmem:[#allocation2 + $0xf8] sm:$0xff]  ;;  %v2526_v7 = vadd.f32 %v14071_v13, %v14070_v58  ;;  %v14073_v49 = vld [vmem:[#allocation77_spill] sm:$0xff]  ;;  %3944 = vst.msk [vmem:[#allocation2 + $0x121] sm:$0xff] %vm3865_vm1, %v3855_v3  ;;  %v3761_v41 = vadd.f32 %v11973_v14, %v3722_v21  ;;  %v3725_v35 = vmul.f32 0.0745356, %v3693_v53  ;;  %9720 = vmatprep.mubr.msk.f32.mxu1 %vm3865_vm1, %v12314_v10  ;;  %v3304_v39 = vadd.f32 %v3257_v15, %v2914_v59 }
 0x215   : > { %14068 = vst [vmem:[#allocation36_spill] sm:$0xff] %v12316_v32  ;;  %14069 = vst [vmem:[#allocation20_spill] sm:$0xff] %v12318_v8  ;;  %v2525_v11 = vadd.f32 %v14073_v49, %v14072_v40  ;;  %9770 = vmatprep.mubr.msk.f32.mxu0 %vm3865_vm1, %v12316_v32  ;;  %v3858_v17 = vsel %vm3794_vm12, %v3762_v16, %v3826_v26  ;;  %v3724_v9 = vmul.f32 0.0745356, %v3692_v18  ;;  %v12330_v58 = vld [vmem:[#allocation2 + $0xf9] sm:$0xff]  ;;  %v3647_v15 = vpop.f32.mrf.mxu0  ;;  %v14076_v16 = vld [vmem:[#allocation10_spill] sm:$0xff] }
 0x216   : > { %v3695_v23 = vadd.f32 %v9684_v29, %v3305_v4  ;;  %14074 = vst [vmem:[#allocation11_spill] sm:$0xff] %v12330_v58  ;;  %v14075_v13 = vld [vmem:[#allocation7_spill] sm:$0xff]  ;;  %3947 = vst.msk [vmem:[#allocation2 + $0x141] sm:$0xff] %vm3865_vm1, %v3858_v17  ;;  %vm3793_vm13 = vcmp.gt.f32.partialorder %v3761_v41, 0.0  ;;  %v3825_v21 = vmul.f32 0.2, %v3761_v41  ;;  %v3764_v53 = vadd.f32 %v11973_v14, %v3725_v35  ;;  %v3267_v4 = vpop.f32.mrf.mxu1 }
 0x217   : > { %v2917_v40 = vadd.f32 %v14075_v13, %v2526_v7  ;;  %9721 = vmatmul.mubr.msk.f32.gmra.mxu1 %vm3865_vm1, %v12330_v58  ;;  %9771 = vmatmul.mubr.msk.f32.gmra.mxu0 %vm3865_vm1, %v12318_v8  ;;  %v2916_v59 = vadd.f32 %v14076_v16, %v2525_v11  ;;  %v3763_v3 = vadd.f32 %v11973_v14, %v3724_v9  ;;  %v9687_v17 = vpop.f32.mrf.mxu0 }
 0x218   : > { %v3727_v26 = vmul.f32 0.0745356, %v3695_v23  ;;  %v3694_v18 = vadd.f32 %v3647_v15, %v3304_v39  ;;  %v3857_v49 = vsel %vm3793_vm13, %v3761_v41, %v3825_v21  ;;  %vm3796_vm14 = vcmp.gt.f32.partialorder %v3764_v53, 0.0 }
 0x219   : > { %v3307_v7 = vadd.f32 %v9637_v62, %v2917_v40  ;;  %v3828_v29 = vmul.f32 0.2, %v3764_v53  ;;  %v12341_v35 = vld [vmem:[#allocation2 + $0x109] sm:$0xff]  ;;  %3946 = vst.msk [vmem:[#allocation2 + $0x139] sm:$0xff] %vm3865_vm1, %v3857_v49  ;;  %vm3795_vm15 = vcmp.gt.f32.partialorder %v3763_v3, 0.0  ;;  %v12353_v62 = vld [vmem:[#allocation2 + $0x111] sm:$0xff]  ;;  %v3306_v41 = vadd.f32 %v3267_v4, %v2916_v59  ;;  %v3657_v40 = vpop.f32.mrf.mxu0 }
 0x21a   : > { %v12343_v13 = vld [vmem:[#allocation2 + $0x108] sm:$0xff]  ;;  %v12345_v58 = vld [vmem:[#allocation2 + $0x110] sm:$0xff]  ;;  %v3827_v11 = vmul.f32 0.2, %v3763_v3  ;;  %v3766_v16 = vadd.f32 %v11973_v14, %v3727_v26  ;;  %v3726_v9 = vmul.f32 0.0745356, %v3694_v18  ;;  %9723 = vmatprep.mubr.msk.f32.mxu1 %vm3865_vm1, %v12341_v35 }
 0x21b   : > { %14077 = vst [vmem:[#allocation18_spill] sm:$0xff] %v12343_v13  ;;  %14078 = vst [vmem:[#allocation19_spill] sm:$0xff] %v12345_v58  ;;  %9773 = vmatprep.mubr.msk.f32.mxu0 %vm3865_vm1, %v12343_v13  ;;  %v3860_v39 = vsel %vm3796_vm14, %v3764_v53, %v3828_v29  ;;  %v3697_v23 = vadd.f32 %v9687_v17, %v3307_v7  ;;  %9724 = vmatmul.mubr.msk.f32.gmra.mxu1 %vm3865_vm1, %v12353_v62  ;;  %v12361_v18 = vld [vmem:[#allocation2 + $0x121] sm:$0xff]  ;;  %v12372_v29 = vld [vmem:[#allocation2 + $0x129] sm:$0xff] }
 0x21c   : > { %9774 = vmatmul.mubr.msk.f32.gmra.mxu0 %vm3865_vm1, %v12345_v58  ;;  %3949 = vst.msk [vmem:[#allocation2 + $0x159] sm:$0xff] %vm3865_vm1, %v3860_v39  ;;  %v3859_v21 = vsel %vm3795_vm15, %v3763_v3, %v3827_v11  ;;  %vm3798_vm0 = vcmp.gt.f32.partialorder %v3766_v16, 0.0  ;;  %v3830_v15 = vmul.f32 0.2, %v3766_v16  ;;  %v3765_v26 = vadd.f32 %v11973_v14, %v3726_v9  ;;  %v12363_v49 = vld [vmem:[#allocation2 + $0x120] sm:$0xff]  ;;  %v12365_v53 = vld [vmem:[#allocation2 + $0x128] sm:$0xff]  ;;  %9726 = vmatprep.mubr.msk.f32.mxu1 %vm3865_vm1, %v12361_v18 }
 0x21d   : > { %14079 = vst [vmem:[#allocation22_spill] sm:$0xff] %v12363_v49  ;;  %14080 = vst [vmem:[#allocation12_spill] sm:$0xff] %v12365_v53  ;;  %v3729_v59 = vmul.f32 0.0745356, %v3697_v23  ;;  %v3696_v4 = vadd.f32 %v3657_v40, %v3306_v41  ;;  %9776 = vmatprep.mubr.msk.f32.mxu0 %vm3865_vm1, %v12363_v49 }
 0x21e   : > { %3948 = vst.msk [vmem:[#allocation2 + $0x151] sm:$0xff] %vm3865_vm1, %v3859_v21  ;;  %v3862_v3 = vsel %vm3798_vm0, %v3766_v16, %v3830_v15  ;;  %vm3797_vm2 = vcmp.gt.f32.partialorder %v3765_v26, 0.0  ;;  %v3829_v7 = vmul.f32 0.2, %v3765_v26  ;;  %v12392_v21 = vld [vmem:[#allocation2 + $0x141] sm:$0xff] }
 0x21f   : > { %3951 = vst.msk [vmem:[#allocation2 + $0x171] sm:$0xff] %vm3865_vm1, %v3862_v3  ;;  %v3768_v17 = vadd.f32 %v11973_v14, %v3729_v59  ;;  %v3728_v11 = vmul.f32 0.0745356, %v3696_v4  ;;  %9727 = vmatmul.mubr.msk.f32.gmra.mxu1 %vm3865_vm1, %v12372_v29 }
 0x220   : > { %9777 = vmatmul.mubr.msk.f32.gmra.mxu0 %vm3865_vm1, %v12365_v53  ;;  %v3861_v9 = vsel %vm3797_vm2, %v3765_v26, %v3829_v7  ;;  %v12382_v39 = vld [vmem:[#allocation2 + $0x139] sm:$0xff] }
 0x221   : > { %3950 = vst.msk [vmem:[#allocation2 + $0x169] sm:$0xff] %vm3865_vm1, %v3861_v9  ;;  %vm3800_vm3 = vcmp.gt.f32.partialorder %v3768_v17, 0.0  ;;  %v3832_v16 = vmul.f32 0.2, %v3768_v17  ;;  %v3767_v41 = vadd.f32 %v11973_v14, %v3728_v11  ;;  %v12384_v23 = vld [vmem:[#allocation2 + $0x138] sm:$0xff]  ;;  %v12386_v40 = vld [vmem:[#allocation2 + $0x140] sm:$0xff]  ;;  %9729 = vmatprep.mubr.msk.f32.mxu1 %vm3865_vm1, %v12382_v39 }
 0x222   : > { %14081 = vst [vmem:[#allocation24_spill] sm:$0xff] %v12384_v23  ;;  %14082 = vst [vmem:[#allocation25_spill] sm:$0xff] %v12386_v40  ;;  %9779 = vmatprep.mubr.msk.f32.mxu0 %vm3865_vm1, %v12384_v23 }
 0x223   : > { %v3864_v15 = vsel %vm3800_vm3, %v3768_v17, %v3832_v16  ;;  %vm3799_vm4 = vcmp.gt.f32.partialorder %v3767_v41, 0.0  ;;  %v3831_v26 = vmul.f32 0.2, %v3767_v41  ;;  %9730 = vmatmul.mubr.msk.f32.gmra.mxu1 %vm3865_vm1, %v12392_v21  ;;  %v12410_v7 = vld [vmem:[#allocation2 + $0x159] sm:$0xff]  ;;  %v4669_v16 = vld [vmem:[#allocation2 + $0x2] sm:$0xff] }
 0x224   : > { %9780 = vmatmul.mubr.msk.f32.gmra.mxu0 %vm3865_vm1, %v12386_v40  ;;  %3953 = vst.msk [vmem:[#allocation2 + $0x189] sm:$0xff] %vm3865_vm1, %v3864_v15  ;;  %14085 = vst [vmem:[#allocation32_spill] sm:$0xff] %v12410_v7  ;;  %v4670_v15 = vld [vmem:[#allocation2 + $0xa] sm:$0xff] }
 0x225   : > { %v12399_v14 = vld [vmem:[#allocation2 + $0x151] sm:$0xff]  ;;  %v3863_v3 = vsel %vm3799_vm4, %v3767_v41, %v3831_v26 }
 0x226   : > { %v12401_v59 = vld [vmem:[#allocation2 + $0x150] sm:$0xff]  ;;  %v12403_v4 = vld [vmem:[#allocation2 + $0x158] sm:$0xff]  ;;  %9732 = vmatprep.mubr.msk.f32.mxu1 %vm3865_vm1, %v12399_v14  ;;  %3952 = vst.msk [vmem:[#allocation2 + $0x181] sm:$0xff] %vm3865_vm1, %v3863_v3  ;;  %v9742_v3 = vpop.f32.mrf.mxu0 }
 0x227   : > { %14083 = vst [vmem:[#allocation30_spill] sm:$0xff] %v12401_v59  ;;  %14084 = vst [vmem:[#allocation28_spill] sm:$0xff] %v12403_v4  ;;  %9782 = vmatprep.mubr.msk.f32.mxu0 %vm3865_vm1, %v12401_v59  ;;  %9733 = vmatmul.mubr.msk.f32.gmra.mxu1 %vm3865_vm1, %v12410_v7  ;;  %v12426_v41 = vld [vmem:[#allocation2 + $0x171] sm:$0xff]  ;;  %v12440_v7 = vld [vmem:[#allocation2 + $0x1a] sm:$0xff] }
 0x228   : > { %9783 = vmatmul.mubr.msk.f32.gmra.mxu0 %vm3865_vm1, %v12403_v4  ;;  %v12416_v17 = vld [vmem:[#allocation2 + $0x169] sm:$0xff]  ;;  %14088 = vst [vmem:[#allocation39_spill] sm:$0xff] %v12426_v41 }
 0x229   : > { %14086 = vst [vmem:[#allocation33_spill] sm:$0xff] %v12416_v17  ;;  %v12418_v11 = vld [vmem:[#allocation2 + $0x168] sm:$0xff]  ;;  %v12420_v9 = vld [vmem:[#allocation2 + $0x170] sm:$0xff]  ;;  %9735 = vmatprep.mubr.msk.f32.mxu1 %vm3865_vm1, %v12416_v17 }
 0x22a   : > { %14087 = vst [vmem:[#allocation34_spill] sm:$0xff] %v12418_v11  ;;  %9785 = vmatprep.mubr.msk.f32.mxu0 %vm3865_vm1, %v12418_v11 }
 0x22b   : > { %9736 = vmatmul.mubr.msk.f32.gmra.mxu1 %vm3865_vm1, %v12426_v41  ;;  %v12445_v41 = vld [vmem:[%s13731_s3 + $0x30] sm:$0xff] }
 0x22c   : > { %9786 = vmatmul.mubr.msk.f32.gmra.mxu0 %vm3865_vm1, %v12420_v9  ;;  %9790 = vmatprep.mubr.msk.f32.mxu1 %vm3865_vm1, %v4669_v16  ;;  %v9692_v26 = vpop.f32.mrf.mxu1  ;;  %v12462_v16 = vld [vmem:[#allocation2 + $0x22] sm:$0xff] }
 0x22d   : > { %9840 = vmatprep.mubr.msk.f32.mxu0 %vm3865_vm1, %v12073_v38  ;;  %v12435_v17 = vadd.f32 %v9742_v3, %v9692_v26  ;;  %v12450_v38 = vld [vmem:[%s13731_s3 + $0x38] sm:$0xff] }
 0x22e   : > { %v12520_v26 = vld [vmem:[#allocation2 + $0x92] sm:$0xff]  ;;  %v12526_v3 = vld [vmem:[#allocation2 + $0x9a] sm:$0xff] }
 0x22f   : > { %14089 = vst [vmem:[#allocation40_spill] sm:$0xff] %v12435_v17  ;;  %9791 = vmatmul.mubr.msk.f32.vlgmr.msra.gmra.mxu1 %vm3865_vm1, %v4670_v15  ;;  %v12484_v15 = vld [vmem:[#allocation2 + $0x4a] sm:$0xff]  ;;  %v12538_v17 = vld [vmem:[#allocation2 + $0xb2] sm:$0xff] }
 0x230   : > { %9841 = vmatmul.mubr.msk.f32.vlgmr.msra.gmra.mxu0 %vm3865_vm1, %v12077_v20  ;;  %9793 = vmatprep.mubr.msk.f32.mxu1 %vm3865_vm1, %v12440_v7  ;;  %v10183_v20 = vld [vmem:[%s13731_s3 + $0x20] sm:$0xff] }
 0x231   : > { %9843 = vmatprep.mubr.msk.f32.mxu0 %vm3865_vm1, %v12104_v12  ;;  %9889 = vmatpush3.xpose.msk.msra.mxu1 %vm3865_vm1, %v10183_v20  ;;  %v12472_v12 = vld [vmem:[#allocation2 + $0x32] sm:$0xff]  ;;  %v12532_v20 = vld [vmem:[#allocation2 + $0xaa] sm:$0xff] }
 0x232   : > { %9939 = vmatpush3.xpose.msk.msra.mxu0 %vm3865_vm1, %v12039_v0  ;;  %9988 = vmatprep.subr.msk.mxu1 %vm3865_vm1, %v12445_v41  ;;  %v12478_v0 = vld [vmem:[#allocation2 + $0x3a] sm:$0xff] }
 0x233   : > { %10038 = vmatprep.subr.msk.mxu0 %vm3865_vm1, %v12450_v38  ;;  %9794 = vmatmul.mubr.msk.f32.gmra.mxu1 %vm3865_vm1, %v12462_v16 }
 0x234   : > { %9844 = vmatmul.mubr.msk.f32.gmra.mxu0 %vm3865_vm1, %v12106_v44  ;;  %9796 = vmatprep.mubr.msk.f32.mxu1 %vm3865_vm1, %v12472_v12  ;;  %v12490_v44 = vld [vmem:[#allocation2 + $0x52] sm:$0xff] }
 0x235   : > { %9846 = vmatprep.mubr.msk.f32.mxu0 %vm3865_vm1, %v12131_v27  ;;  %v12496_v27 = vld [vmem:[#allocation2 + $0x62] sm:$0xff] }
 0x237   : > { %9797 = vmatmul.mubr.msk.f32.gmra.mxu1 %vm3865_vm1, %v12478_v0 }
 0x238   : > { %9847 = vmatmul.mubr.msk.f32.gmra.mxu0 %vm3865_vm1, %v12133_v24  ;;  %9799 = vmatprep.mubr.msk.f32.mxu1 %vm3865_vm1, %v12484_v15  ;;  %v12502_v24 = vld [vmem:[#allocation2 + $0x6a] sm:$0xff] }
 0x239   : > { %9849 = vmatprep.mubr.msk.f32.mxu0 %vm3865_vm1, %v12163_v30  ;;  %v12508_v30 = vld [vmem:[#allocation2 + $0x7a] sm:$0xff] }
 0x23b   : > { %9800 = vmatmul.mubr.msk.f32.gmra.mxu1 %vm3865_vm1, %v12490_v44 }
 0x23c   : > { %9850 = vmatmul.mubr.msk.f32.gmra.mxu0 %vm3865_vm1, %v12165_v31  ;;  %9802 = vmatprep.mubr.msk.f32.mxu1 %vm3865_vm1, %v12496_v27  ;;  %v12514_v31 = vld [vmem:[#allocation2 + $0x82] sm:$0xff] }
 0x23d   : > { %9852 = vmatprep.mubr.msk.f32.mxu0 %vm3865_vm1, %v12191_v34 }
 0x23f   : > { %9803 = vmatmul.mubr.msk.f32.gmra.mxu1 %vm3865_vm1, %v12502_v24 }
 0x240   : > { %9853 = vmatmul.mubr.msk.f32.gmra.mxu0 %vm3865_vm1, %v12193_v28  ;;  %9805 = vmatprep.mubr.msk.f32.mxu1 %vm3865_vm1, %v12508_v30 }
 0x241   : > { %9855 = vmatprep.mubr.msk.f32.mxu0 %vm3865_vm1, %v12217_v2 }
 0x243   : > { %9806 = vmatmul.mubr.msk.f32.gmra.mxu1 %vm3865_vm1, %v12514_v31 }
 0x244   : > { %9856 = vmatmul.mubr.msk.f32.gmra.mxu0 %vm3865_vm1, %v12219_v5  ;;  %9808 = vmatprep.mubr.msk.f32.mxu1 %vm3865_vm1, %v12520_v26  ;;  %v12630_v5 = vld [vmem:[#allocation2 + $0x180] sm:$0xff] }
 0x245   : > { %9858 = vmatprep.mubr.msk.f32.mxu0 %vm3865_vm1, %v12240_v33  ;;  %v12544_v33 = vld [vmem:[#allocation2 + $0xc2] sm:$0xff]  ;;  %14090 = vst [vmem:[#allocation35_spill] sm:$0xff] %v12630_v5 }
 0x247   : > { %9809 = vmatmul.mubr.msk.f32.gmra.mxu1 %vm3865_vm1, %v12526_v3 }
 0x248   : > { %9859 = vmatmul.mubr.msk.f32.gmra.mxu0 %vm3865_vm1, %v12242_v42  ;;  %9811 = vmatprep.mubr.msk.f32.mxu1 %vm3865_vm1, %v12532_v20  ;;  %v12550_v42 = vld [vmem:[#allocation2 + $0xca] sm:$0xff] }
 0x249   : > { %9861 = vmatprep.mubr.msk.f32.mxu0 %vm3865_vm1, %v12271_v37  ;;  %v12556_v37 = vld [vmem:[#allocation2 + $0xda] sm:$0xff] }
 0x24b   : > { %9812 = vmatmul.mubr.msk.f32.gmra.mxu1 %vm3865_vm1, %v12538_v17 }
 0x24c   : > { %9862 = vmatmul.mubr.msk.f32.gmra.mxu0 %vm3865_vm1, %v12273_v36  ;;  %9814 = vmatprep.mubr.msk.f32.mxu1 %vm3865_vm1, %v12544_v33  ;;  %v12562_v36 = vld [vmem:[#allocation2 + $0xe2] sm:$0xff] }
 0x24d   : > { %9864 = vmatprep.mubr.msk.f32.mxu0 %vm3865_vm1, %v12297_v25  ;;  %v12568_v25 = vld [vmem:[#allocation2 + $0xf2] sm:$0xff] }
 0x24f   : > { %9815 = vmatmul.mubr.msk.f32.gmra.mxu1 %vm3865_vm1, %v12550_v42 }
 0x250   : > { %9865 = vmatmul.mubr.msk.f32.gmra.mxu0 %vm3865_vm1, %v12299_v51  ;;  %9817 = vmatprep.mubr.msk.f32.mxu1 %vm3865_vm1, %v12556_v37  ;;  %v12574_v51 = vld [vmem:[#allocation2 + $0xfa] sm:$0xff] }
 0x251   : > { %9867 = vmatprep.mubr.msk.f32.mxu0 %vm3865_vm1, %v12316_v32  ;;  %v12580_v32 = vld [vmem:[#allocation2 + $0x10a] sm:$0xff] }
 0x253   : > { %9818 = vmatmul.mubr.msk.f32.gmra.mxu1 %vm3865_vm1, %v12562_v36 }
 0x254   : > { %9868 = vmatmul.mubr.msk.f32.gmra.mxu0 %vm3865_vm1, %v12318_v8  ;;  %9820 = vmatprep.mubr.msk.f32.mxu1 %vm3865_vm1, %v12568_v25  ;;  %v12586_v8 = vld [vmem:[#allocation2 + $0x112] sm:$0xff] }
 0x255   : > { %9870 = vmatprep.mubr.msk.f32.mxu0 %vm3865_vm1, %v12343_v13  ;;  %v12592_v13 = vld [vmem:[#allocation2 + $0x122] sm:$0xff] }
 0x257   : > { %9821 = vmatmul.mubr.msk.f32.gmra.mxu1 %vm3865_vm1, %v12574_v51 }
 0x258   : > { %9871 = vmatmul.mubr.msk.f32.gmra.mxu0 %vm3865_vm1, %v12345_v58  ;;  %9823 = vmatprep.mubr.msk.f32.mxu1 %vm3865_vm1, %v12580_v32  ;;  %v12598_v58 = vld [vmem:[#allocation2 + $0x12a] sm:$0xff] }
 0x259   : > { %9873 = vmatprep.mubr.msk.f32.mxu0 %vm3865_vm1, %v12363_v49  ;;  %v12604_v49 = vld [vmem:[#allocation2 + $0x13a] sm:$0xff] }
 0x25b   : > { %9824 = vmatmul.mubr.msk.f32.gmra.mxu1 %vm3865_vm1, %v12586_v8 }
 0x25c   : > { %9874 = vmatmul.mubr.msk.f32.gmra.mxu0 %vm3865_vm1, %v12365_v53  ;;  %9826 = vmatprep.mubr.msk.f32.mxu1 %vm3865_vm1, %v12592_v13  ;;  %v12610_v53 = vld [vmem:[#allocation2 + $0x142] sm:$0xff] }
 0x25d   : > { %9876 = vmatprep.mubr.msk.f32.mxu0 %vm3865_vm1, %v12384_v23  ;;  %v12616_v23 = vld [vmem:[#allocation2 + $0x152] sm:$0xff] }
 0x25f   : > { %9827 = vmatmul.mubr.msk.f32.gmra.mxu1 %vm3865_vm1, %v12598_v58 }
 0x260   : > { %9877 = vmatmul.mubr.msk.f32.gmra.mxu0 %vm3865_vm1, %v12386_v40  ;;  %9829 = vmatprep.mubr.msk.f32.mxu1 %vm3865_vm1, %v12604_v49  ;;  %v12622_v40 = vld [vmem:[#allocation2 + $0x15a] sm:$0xff] }
 0x261   : > { %9879 = vmatprep.mubr.msk.f32.mxu0 %vm3865_vm1, %v12401_v59  ;;  %v12628_v59 = vld [vmem:[#allocation2 + $0x16a] sm:$0xff] }
 0x263   : > { %9830 = vmatmul.mubr.msk.f32.gmra.mxu1 %vm3865_vm1, %v12610_v53 }
 0x264   : > { %9880 = vmatmul.mubr.msk.f32.gmra.mxu0 %vm3865_vm1, %v12403_v4  ;;  %9832 = vmatprep.mubr.msk.f32.mxu1 %vm3865_vm1, %v12616_v23  ;;  %v12636_v4 = vld [vmem:[#allocation2 + $0x172] sm:$0xff] }
 0x265   : > { %9882 = vmatprep.mubr.msk.f32.mxu0 %vm3865_vm1, %v12418_v11  ;;  %v12638_v11 = vld [vmem:[#allocation2 + $0x188] sm:$0xff] }
 0x267   : > { %9833 = vmatmul.mubr.msk.f32.gmra.mxu1 %vm3865_vm1, %v12622_v40 }
 0x268   : > { %9883 = vmatmul.mubr.msk.f32.gmra.mxu0 %vm3865_vm1, %v12420_v9  ;;  %9835 = vmatprep.mubr.msk.f32.mxu1 %vm3865_vm1, %v12628_v59 }
 0x269   : > { %9885 = vmatprep.mubr.msk.f32.mxu0 %vm3865_vm1, %v12630_v5  ;;  %v12655_v5 = vld [vmem:[%s13731_s3 + $0x40] sm:$0xff] }
 0x26b   : > { %9836 = vmatmul.mubr.msk.f32.gmra.mxu1 %vm3865_vm1, %v12636_v4 }
 0x26c   : > { %9886 = vmatmul.mubr.msk.f32.gmra.mxu0 %vm3865_vm1, %v12638_v11  ;;  %9890 = vmatprep.mubr.msk.f32.mxu1 %vm3865_vm1, %v12063_v48  ;;  %v14091_v48 = vld [vmem:[#allocation11_spill] sm:$0xff] }
 0x26d   : > { %9940 = vmatprep.mubr.msk.f32.mxu0 %vm3865_vm1, %v12440_v7  ;;  %v6233_v7 = vld [vmem:[#allocation2 + $0x50] sm:$0xff] }
 0x26f   : > { %9891 = vmatmul.mubr.msk.f32.vlgmr.msra.gmra.mxu1 %vm3865_vm1, %v12075_v54  ;;  %v14092_v54 = vld [vmem:[#allocation32_spill] sm:$0xff] }
 0x270   : > { %9941 = vmatmul.mubr.msk.f32.vlgmr.msra.gmra.mxu0 %vm3865_vm1, %v12462_v16  ;;  %9893 = vmatprep.mubr.msk.f32.mxu1 %vm3865_vm1, %v12102_v46  ;;  %v14093_v46 = vld [vmem:[#allocation33_spill] sm:$0xff]  ;;  %v6234_v16 = vld [vmem:[#allocation2 + $0x60] sm:$0xff] }
 0x271   : > { %9943 = vmatprep.mubr.msk.f32.mxu0 %vm3865_vm1, %v12472_v12  ;;  %9989 = vmatpush3.xpose.msk.msra.mxu1 %vm3865_vm1, %v12445_v41  ;;  %v6623_v41 = vld [vmem:[#allocation2 + $0x51] sm:$0xff] }
 0x272   : > { %10039 = vmatpush3.xpose.msk.msra.mxu0 %vm3865_vm1, %v12450_v38  ;;  %10088 = vmatprep.subr.msk.mxu1 %vm3865_vm1, %v12655_v5 }
 0x273   : > { %9894 = vmatmul.mubr.msk.f32.gmra.mxu1 %vm3865_vm1, %v12114_v61  ;;  %v14094_v61 = vld [vmem:[#allocation39_spill] sm:$0xff] }
 0x274   : > { %9944 = vmatmul.mubr.msk.f32.gmra.mxu0 %vm3865_vm1, %v12478_v0  ;;  %9896 = vmatprep.mubr.msk.f32.mxu1 %vm3865_vm1, %v12129_v43  ;;  %v12775_v43 = vld [vmem:[#allocation2 + $0x181] sm:$0xff] }
 0x275   : > { %9946 = vmatprep.mubr.msk.f32.mxu0 %vm3865_vm1, %v12484_v15 }
 0x277   : > { %9897 = vmatmul.mubr.msk.f32.gmra.mxu1 %vm3865_vm1, %v12143_v47  ;;  %v12777_v47 = vld [vmem:[#allocation2 + $0x182] sm:$0xff] }
 0x278   : > { %9947 = vmatmul.mubr.msk.f32.gmra.mxu0 %vm3865_vm1, %v12490_v44  ;;  %9899 = vmatprep.mubr.msk.f32.mxu1 %vm3865_vm1, %v12156_v19  ;;  %14095 = vst [vmem:[#allocation41_spill] sm:$0xff] %v12777_v47  ;;  %v12783_v19 = vld [vmem:[#allocation2 + $0x189] sm:$0xff] }
 0x279   : > { %9949 = vmatprep.mubr.msk.f32.mxu0 %vm3865_vm1, %v12496_v27 }
 0x27b   : > { %9900 = vmatmul.mubr.msk.f32.gmra.mxu1 %vm3865_vm1, %v12171_v1  ;;  %v12785_v1 = vld [vmem:[#allocation2 + $0x18a] sm:$0xff] }
 0x27c   : > { %9950 = vmatmul.mubr.msk.f32.gmra.mxu0 %vm3865_vm1, %v12502_v24  ;;  %9902 = vmatprep.mubr.msk.f32.mxu1 %vm3865_vm1, %v12189_v22  ;;  %14096 = vst [vmem:[#allocation43_spill] sm:$0xff] %v12785_v1 }
 0x27d   : > { %9952 = vmatprep.mubr.msk.f32.mxu0 %vm3865_vm1, %v12508_v30 }
 0x27f   : > { %9903 = vmatmul.mubr.msk.f32.gmra.mxu1 %vm3865_vm1, %v12200_v56  ;;  %v6230_v56 = vld [vmem:[#allocation2 + $0x30] sm:$0xff] }
 0x280   : > { %9953 = vmatmul.mubr.msk.f32.gmra.mxu0 %vm3865_vm1, %v12514_v31  ;;  %9905 = vmatprep.mubr.msk.f32.mxu1 %vm3865_vm1, %v12215_v57 }
 0x281   : > { %9955 = vmatprep.mubr.msk.f32.mxu0 %vm3865_vm1, %v12520_v26 }
 0x283   : > { %9906 = vmatmul.mubr.msk.f32.gmra.mxu1 %vm3865_vm1, %v12227_v52 }
 0x284   : > { %9956 = vmatmul.mubr.msk.f32.gmra.mxu0 %vm3865_vm1, %v12526_v3  ;;  %9908 = vmatprep.mubr.msk.f32.mxu1 %vm3865_vm1, %v12238_v63 }
 0x285   : > { %9958 = vmatprep.mubr.msk.f32.mxu0 %vm3865_vm1, %v12532_v20 }
 0x287   : > { %9909 = vmatmul.mubr.msk.f32.gmra.mxu1 %vm3865_vm1, %v12252_v45 }
 0x288   : > { %9959 = vmatmul.mubr.msk.f32.gmra.mxu0 %vm3865_vm1, %v12538_v17  ;;  %9911 = vmatprep.mubr.msk.f32.mxu1 %vm3865_vm1, %v12269_v55 }
 0x289   : > { %9961 = vmatprep.mubr.msk.f32.mxu0 %vm3865_vm1, %v12544_v33 }
 0x28b   : > { %9912 = vmatmul.mubr.msk.f32.gmra.mxu1 %vm3865_vm1, %v12282_v50 }
 0x28c   : > { %9962 = vmatmul.mubr.msk.f32.gmra.mxu0 %vm3865_vm1, %v12550_v42  ;;  %9914 = vmatprep.mubr.msk.f32.mxu1 %vm3865_vm1, %v12291_v6 }
 0x28d   : > { %9964 = vmatprep.mubr.msk.f32.mxu0 %vm3865_vm1, %v12556_v37 }
 0x28f   : > { %9915 = vmatmul.mubr.msk.f32.gmra.mxu1 %vm3865_vm1, %v12305_v60 }
 0x290   : > { %9965 = vmatmul.mubr.msk.f32.gmra.mxu0 %vm3865_vm1, %v12562_v36  ;;  %9917 = vmatprep.mubr.msk.f32.mxu1 %vm3865_vm1, %v12314_v10 }
 0x291   : > { %9967 = vmatprep.mubr.msk.f32.mxu0 %vm3865_vm1, %v12568_v25 }
 0x293   : > { %9918 = vmatmul.mubr.msk.f32.gmra.mxu1 %vm3865_vm1, %v14091_v48 }
 0x294   : > { %9968 = vmatmul.mubr.msk.f32.gmra.mxu0 %vm3865_vm1, %v12574_v51  ;;  %9920 = vmatprep.mubr.msk.f32.mxu1 %vm3865_vm1, %v12341_v35 }
 0x295   : > { %9970 = vmatprep.mubr.msk.f32.mxu0 %vm3865_vm1, %v12580_v32 }
 0x297   : > { %9921 = vmatmul.mubr.msk.f32.gmra.mxu1 %vm3865_vm1, %v12353_v62 }
 0x298   : > { %9971 = vmatmul.mubr.msk.f32.gmra.mxu0 %vm3865_vm1, %v12586_v8  ;;  %9923 = vmatprep.mubr.msk.f32.mxu1 %vm3865_vm1, %v12361_v18  ;;  %v6620_v8 = vld [vmem:[#allocation2 + $0x31] sm:$0xff] }
 0x299   : > { %9973 = vmatprep.mubr.msk.f32.mxu0 %vm3865_vm1, %v12592_v13 }
 0x29b   : > { %9924 = vmatmul.mubr.msk.f32.gmra.mxu1 %vm3865_vm1, %v12372_v29 }
 0x29c   : > { %9974 = vmatmul.mubr.msk.f32.gmra.mxu0 %vm3865_vm1, %v12598_v58  ;;  %9926 = vmatprep.mubr.msk.f32.mxu1 %vm3865_vm1, %v12382_v39  ;;  %v6231_v58 = vld [vmem:[#allocation2 + $0x38] sm:$0xff] }
 0x29d   : > { %9976 = vmatprep.mubr.msk.f32.mxu0 %vm3865_vm1, %v12604_v49  ;;  %v6621_v49 = vld [vmem:[#allocation2 + $0x39] sm:$0xff] }
 0x29f   : > { %9927 = vmatmul.mubr.msk.f32.gmra.mxu1 %vm3865_vm1, %v12392_v21 }
 0x2a0   : > { %9977 = vmatmul.mubr.msk.f32.gmra.mxu0 %vm3865_vm1, %v12610_v53  ;;  %9929 = vmatprep.mubr.msk.f32.mxu1 %vm3865_vm1, %v12399_v14  ;;  %v6232_v53 = vld [vmem:[#allocation2 + $0x48] sm:$0xff] }
 0x2a1   : > { %9979 = vmatprep.mubr.msk.f32.mxu0 %vm3865_vm1, %v12616_v23  ;;  %v6622_v23 = vld [vmem:[#allocation2 + $0x49] sm:$0xff] }
 0x2a3   : > { %9930 = vmatmul.mubr.msk.f32.gmra.mxu1 %vm3865_vm1, %v14092_v54 }
 0x2a4   : > { %9980 = vmatmul.mubr.msk.f32.gmra.mxu0 %vm3865_vm1, %v12622_v40  ;;  %9932 = vmatprep.mubr.msk.f32.mxu1 %vm3865_vm1, %v14093_v46  ;;  %v12795_v40 = vpop.f32.mrf.mxu1 }
 0x2a5   : > { %9982 = vmatprep.mubr.msk.f32.mxu0 %vm3865_vm1, %v12628_v59  ;;  %v12799_v59 = vpop.f32.mrf.mxu0 }
 0x2a7   : > { %9933 = vmatmul.mubr.msk.f32.gmra.mxu1 %vm3865_vm1, %v14094_v61 }
 0x2a8   : > { %9983 = vmatmul.mubr.msk.f32.gmra.mxu0 %vm3865_vm1, %v12636_v4  ;;  %9935 = vmatprep.mubr.msk.f32.mxu1 %vm3865_vm1, %v12775_v43 }
 0x2a9   : > { %9985 = vmatprep.mubr.msk.f32.mxu0 %vm3865_vm1, %v12777_v47 }
 0x2ab   : > { %9936 = vmatmul.mubr.msk.f32.gmra.mxu1 %vm3865_vm1, %v12783_v19 }
 0x2ac   : > { %9986 = vmatmul.mubr.msk.f32.gmra.mxu0 %vm3865_vm1, %v12785_v1  ;;  %9990 = vmatprep.mubr.msk.f32.mxu1 %vm3865_vm1, %v6230_v56  ;;  %v6624_v56 = vld [vmem:[#allocation2 + $0x61] sm:$0xff] }
 0x2ad   : > { %10040 = vmatprep.mubr.msk.f32.mxu0 %vm3865_vm1, %v6620_v8 }
 0x2af   : > { %9991 = vmatmul.mubr.msk.f32.vlgmr.msra.gmra.mxu1 %vm3865_vm1, %v6231_v58 }
 0x2b0   : > { %10041 = vmatmul.mubr.msk.f32.vlgmr.msra.gmra.mxu0 %vm3865_vm1, %v6621_v49  ;;  %9993 = vmatprep.mubr.msk.f32.mxu1 %vm3865_vm1, %v6232_v53 }
 0x2b1   : > { %10043 = vmatprep.mubr.msk.f32.mxu0 %vm3865_vm1, %v6622_v23  ;;  %10089 = vmatpush3.xpose.msk.msra.mxu1 %vm3865_vm1, %v12655_v5  ;;  %v9695_v4 = vpop.f32.mrf.mxu1  ;;  %v6235_v5 = vld [vmem:[#allocation2 + $0x68] sm:$0xff] }
 0x2b2   : > { %v9745_v38 = vpop.f32.mrf.mxu0  ;;  %v6625_v23 = vld [vmem:[#allocation2 + $0x69] sm:$0xff] }
 0x2b3   : > { %9994 = vmatmul.mubr.msk.f32.gmra.mxu1 %vm3865_vm1, %v6233_v7  ;;  %v12805_v8 = vadd.f32 %v9745_v38, %v9695_v4  ;;  %v4196_v58 = vpop.f32.mrf.mxu1 }
 0x2b4   : > { %10044 = vmatmul.mubr.msk.f32.gmra.mxu0 %vm3865_vm1, %v6623_v41  ;;  %9996 = vmatprep.mubr.msk.f32.mxu1 %vm3865_vm1, %v6234_v16  ;;  %v4520_v49 = vpop.f32.mrf.mxu0  ;;  %v6627_v16 = vld [vmem:[#allocation2 + $0x81] sm:$0xff] }
 0x2b5   : > { %10046 = vmatprep.mubr.msk.f32.mxu0 %vm3865_vm1, %v6624_v56  ;;  %v12809_v53 = vadd.f32 %v4520_v49, %v4196_v58  ;;  %v9698_v1 = vpop.f32.mrf.mxu1 }
 0x2b6   : > { %v9748_v47 = vpop.f32.mrf.mxu0 }
 0x2b7   : > { %9997 = vmatmul.mubr.msk.f32.gmra.mxu1 %vm3865_vm1, %v6235_v5  ;;  %v12813_v7 = vadd.f32 %v9748_v47, %v9698_v1  ;;  %v4206_v4 = vpop.f32.mrf.mxu1 }
 0x2b8   : > { %10047 = vmatmul.mubr.msk.f32.gmra.mxu0 %vm3865_vm1, %v6625_v23  ;;  %9999 = vmatprep.mubr.msk.f32.mxu1 %vm3865_vm1, %v12191_v34  ;;  %v4530_v41 = vpop.f32.mrf.mxu0  ;;  %v14097_v23 = vld [vmem:[#allocation29_spill] sm:$0xff] }
 0x2b9   : > { %10049 = vmatprep.mubr.msk.f32.mxu0 %vm3865_vm1, %v12189_v22  ;;  %v12819_v38 = vadd.f32 %v4530_v41, %v4206_v4  ;;  %v9701_v56 = vpop.f32.mrf.mxu1  ;;  %v14098_v4 = vld [vmem:[#allocation13_spill] sm:$0xff] }
 0x2ba   : > { %v9751_v58 = vpop.f32.mrf.mxu0 }
 0x2bb   : > { %10000 = vmatmul.mubr.msk.f32.gmra.mxu1 %vm3865_vm1, %v12193_v28  ;;  %v12824_v47 = vadd.f32 %v9751_v58, %v9701_v56  ;;  %v4216_v22 = vpop.f32.mrf.mxu1  ;;  %v14099_v58 = vld [vmem:[#allocation31_spill] sm:$0xff] }
 0x2bc   : > { %10050 = vmatmul.mubr.msk.f32.gmra.mxu0 %vm3865_vm1, %v6627_v16  ;;  %10002 = vmatprep.mubr.msk.f32.mxu1 %vm3865_vm1, %v12217_v2  ;;  %v4540_v34 = vpop.f32.mrf.mxu0 }
 0x2bd   : > { %10052 = vmatprep.mubr.msk.f32.mxu0 %vm3865_vm1, %v12215_v57  ;;  %v12830_v1 = vadd.f32 %v4540_v34, %v4216_v22  ;;  %v9704_v49 = vpop.f32.mrf.mxu1  ;;  %v14100_v22 = vld [vmem:[#allocation14_spill] sm:$0xff] }
 0x2be   : > { %v9754_v5 = vpop.f32.mrf.mxu0 }
 0x2bf   : > { %10003 = vmatmul.mubr.msk.f32.gmra.mxu1 %vm3865_vm1, %v14097_v23  ;;  %v12836_v28 = vadd.f32 %v9754_v5, %v9704_v49  ;;  %v4226_v57 = vpop.f32.mrf.mxu1 }
 0x2c0   : > { %10053 = vmatmul.mubr.msk.f32.gmra.mxu0 %vm3865_vm1, %v12227_v52  ;;  %10005 = vmatprep.mubr.msk.f32.mxu1 %vm3865_vm1, %v14098_v4  ;;  %v4550_v2 = vpop.f32.mrf.mxu0  ;;  %v14101_v4 = vld [vmem:[#allocation15_spill] sm:$0xff] }
 0x2c1   : > { %10055 = vmatprep.mubr.msk.f32.mxu0 %vm3865_vm1, %v12238_v63  ;;  %v12842_v41 = vadd.f32 %v4550_v2, %v4226_v57  ;;  %v9707_v16 = vpop.f32.mrf.mxu1  ;;  %v14102_v57 = vld [vmem:[#allocation16_spill] sm:$0xff] }
 0x2c2   : > { %v9757_v56 = vpop.f32.mrf.mxu0 }
 0x2c3   : > { %10006 = vmatmul.mubr.msk.f32.gmra.mxu1 %vm3865_vm1, %v14099_v58  ;;  %v12848_v52 = vadd.f32 %v9757_v56, %v9707_v16  ;;  %v4236_v63 = vpop.f32.mrf.mxu1 }
 0x2c4   : > { %10056 = vmatmul.mubr.msk.f32.gmra.mxu0 %vm3865_vm1, %v12252_v45  ;;  %10008 = vmatprep.mubr.msk.f32.mxu1 %vm3865_vm1, %v14100_v22  ;;  %v4560_v34 = vpop.f32.mrf.mxu0  ;;  %v14103_v22 = vld [vmem:[#allocation27_spill] sm:$0xff] }
 0x2c5   : > { %10058 = vmatprep.mubr.msk.f32.mxu0 %vm3865_vm1, %v12269_v55  ;;  %v12854_v49 = vadd.f32 %v4560_v34, %v4236_v63  ;;  %v14104_v63 = vld [vmem:[#allocation36_spill] sm:$0xff] }
 0x2c6   : > { %v9710_v5 = vpop.f32.mrf.mxu1 }
 0x2c7   : > { %v9760_v23 = vpop.f32.mrf.mxu0  ;;  %10009 = vmatmul.mubr.msk.f32.gmra.mxu1 %vm3865_vm1, %v14101_v4 }
 0x2c8   : > { %10059 = vmatmul.mubr.msk.f32.gmra.mxu0 %vm3865_vm1, %v12282_v50  ;;  %v12860_v45 = vadd.f32 %v9760_v23, %v9710_v5  ;;  %10011 = vmatprep.mubr.msk.f32.mxu1 %vm3865_vm1, %v14102_v57  ;;  %v4246_v55 = vpop.f32.mrf.mxu1  ;;  %v14105_v57 = vld [vmem:[#allocation20_spill] sm:$0xff] }
 0x2c9   : > { %10061 = vmatprep.mubr.msk.f32.mxu0 %vm3865_vm1, %v12291_v6  ;;  %v4570_v2 = vpop.f32.mrf.mxu0 }
 0x2ca   : > { %v12866_v16 = vadd.f32 %v4570_v2, %v4246_v55  ;;  %v9713_v56 = vpop.f32.mrf.mxu1  ;;  %v14106_v55 = vld [vmem:[#allocation18_spill] sm:$0xff] }
 0x2cb   : > { %v9763_v58 = vpop.f32.mrf.mxu0  ;;  %10012 = vmatmul.mubr.msk.f32.gmra.mxu1 %vm3865_vm1, %v14103_v22  ;;  %v14107_v22 = vld [vmem:[#allocation19_spill] sm:$0xff] }
 0x2cc   : > { %10062 = vmatmul.mubr.msk.f32.gmra.mxu0 %vm3865_vm1, %v12305_v60  ;;  %v12872_v50 = vadd.f32 %v9763_v58, %v9713_v56  ;;  %10014 = vmatprep.mubr.msk.f32.mxu1 %vm3865_vm1, %v14104_v63  ;;  %v4256_v6 = vpop.f32.mrf.mxu1  ;;  %v14108_v63 = vld [vmem:[#allocation22_spill] sm:$0xff] }
 0x2cd   : > { %10064 = vmatprep.mubr.msk.f32.mxu0 %vm3865_vm1, %v12314_v10  ;;  %v4580_v34 = vpop.f32.mrf.mxu0 }
 0x2ce   : > { %v12878_v5 = vadd.f32 %v4580_v34, %v4256_v6  ;;  %v9716_v23 = vpop.f32.mrf.mxu1 }
 0x2cf   : > { %v9766_v4 = vpop.f32.mrf.mxu0  ;;  %10015 = vmatmul.mubr.msk.f32.gmra.mxu1 %vm3865_vm1, %v14105_v57  ;;  %v14110_v57 = vld [vmem:[#allocation24_spill] sm:$0xff] }
 0x2d0   : > { %10065 = vmatmul.mubr.msk.f32.gmra.mxu0 %vm3865_vm1, %v14091_v48  ;;  %v12884_v60 = vadd.f32 %v9766_v4, %v9716_v23  ;;  %10017 = vmatprep.mubr.msk.f32.mxu1 %vm3865_vm1, %v14106_v55  ;;  %v12890_v10 = vpop.f32.mrf.mxu1  ;;  %v14109_v4 = vld [vmem:[#allocation12_spill] sm:$0xff] }
 0x2d1   : > { %10067 = vmatprep.mubr.msk.f32.mxu0 %vm3865_vm1, %v12341_v35  ;;  %v12892_v2 = vpop.f32.mrf.mxu0 }
 0x2d3   : > { %v9719_v56 = vpop.f32.mrf.mxu1  ;;  %v9769_v58 = vpop.f32.mrf.mxu0  ;;  %10018 = vmatmul.mubr.msk.f32.gmra.mxu1 %vm3865_vm1, %v14107_v22  ;;  %v14111_v22 = vld [vmem:[#allocation25_spill] sm:$0xff] }
 0x2d4   : > { %10068 = vmatmul.mubr.msk.f32.gmra.mxu0 %vm3865_vm1, %v12353_v62  ;;  %v12898_v48 = vadd.f32 %v9769_v58, %v9719_v56  ;;  %10020 = vmatprep.mubr.msk.f32.mxu1 %vm3865_vm1, %v14108_v63  ;;  %v14112_v63 = vld [vmem:[#allocation30_spill] sm:$0xff] }
 0x2d5   : > { %10070 = vmatprep.mubr.msk.f32.mxu0 %vm3865_vm1, %v12361_v18  ;;  %v12904_v35 = vpop.f32.mrf.mxu1  ;;  %v12906_v6 = vpop.f32.mrf.mxu0 }
 0x2d7   : > { %v9722_v34 = vpop.f32.mrf.mxu1  ;;  %v9772_v23 = vpop.f32.mrf.mxu0  ;;  %10021 = vmatmul.mubr.msk.f32.gmra.mxu1 %vm3865_vm1, %v14109_v4 }
 0x2d8   : > { %10071 = vmatmul.mubr.msk.f32.gmra.mxu0 %vm3865_vm1, %v12372_v29  ;;  %v12912_v62 = vadd.f32 %v9772_v23, %v9722_v34  ;;  %10023 = vmatprep.mubr.msk.f32.mxu1 %vm3865_vm1, %v14110_v57  ;;  %v14113_v57 = vld [vmem:[#allocation28_spill] sm:$0xff] }
 0x2d9   : > { %10073 = vmatprep.mubr.msk.f32.mxu0 %vm3865_vm1, %v12382_v39  ;;  %v12918_v18 = vpop.f32.mrf.mxu1  ;;  %v12920_v55 = vpop.f32.mrf.mxu0 }
 0x2db   : > { %v9725_v56 = vpop.f32.mrf.mxu1  ;;  %10024 = vmatmul.mubr.msk.f32.gmra.mxu1 %vm3865_vm1, %v14111_v22 }
 0x2dc   : > { %v9775_v58 = vpop.f32.mrf.mxu0  ;;  %10074 = vmatmul.mubr.msk.f32.gmra.mxu0 %vm3865_vm1, %v12392_v21  ;;  %10026 = vmatprep.mubr.msk.f32.mxu1 %vm3865_vm1, %v14112_v63 }
 0x2dd   : > { %v12926_v29 = vadd.f32 %v9775_v58, %v9725_v56  ;;  %10076 = vmatprep.mubr.msk.f32.mxu0 %vm3865_vm1, %v12399_v14  ;;  %v12932_v39 = vpop.f32.mrf.mxu1  ;;  %v14115_v56 = vld [vmem:[#allocation34_spill] sm:$0xff] }
 0x2de   : > { %v12934_v34 = vpop.f32.mrf.mxu0 }
 0x2df   : > { %v9728_v23 = vpop.f32.mrf.mxu1  ;;  %10027 = vmatmul.mubr.msk.f32.gmra.mxu1 %vm3865_vm1, %v14113_v57  ;;  %v6260_v57 = vld [vmem:[#allocation2 + $0x198] sm:$0xff] }
 0x2e0   : > { %v9778_v4 = vpop.f32.mrf.mxu0  ;;  %10077 = vmatmul.mubr.msk.f32.gmra.mxu0 %vm3865_vm1, %v14092_v54  ;;  %10029 = vmatprep.mubr.msk.f32.mxu1 %vm3865_vm1, %v14115_v56  ;;  %v6650_v56 = vld [vmem:[#allocation2 + $0x199] sm:$0xff] }
 0x2e1   : > { %v12940_v21 = vadd.f32 %v9778_v4, %v9728_v23  ;;  %10079 = vmatprep.mubr.msk.f32.mxu0 %vm3865_vm1, %v14093_v46  ;;  %v12946_v14 = vpop.f32.mrf.mxu1  ;;  %v14118_v23 = vld [vmem:[#allocation35_spill] sm:$0xff] }
 0x2e2   : > { %v12948_v58 = vpop.f32.mrf.mxu0 }
 0x2e3   : > { %14114 = vst [vmem:[#allocation44_spill] sm:$0xff] %v12940_v21  ;;  %14116 = vst [vmem:[#allocation17_spill] sm:$0xff] %v12948_v58  ;;  %v9731_v22 = vpop.f32.mrf.mxu1  ;;  %10030 = vmatmul.mubr.msk.f32.gmra.mxu1 %vm3865_vm1, %v12420_v9 }
 0x2e4   : > { %v9781_v63 = vpop.f32.mrf.mxu0  ;;  %10080 = vmatmul.mubr.msk.f32.gmra.mxu0 %vm3865_vm1, %v14094_v61  ;;  %10032 = vmatprep.mubr.msk.f32.mxu1 %vm3865_vm1, %v14118_v23  ;;  %v6261_v61 = vld [vmem:[#allocation2 + $0x1a0] sm:$0xff] }
 0x2e5   : > { %v12954_v54 = vadd.f32 %v9781_v63, %v9731_v22  ;;  %10082 = vmatprep.mubr.msk.f32.mxu0 %vm3865_vm1, %v12775_v43  ;;  %v12960_v46 = vpop.f32.mrf.mxu1  ;;  %v6651_v43 = vld [vmem:[#allocation2 + $0x1a1] sm:$0xff] }
 0x2e6   : > { %v12962_v4 = vpop.f32.mrf.mxu0 }
 0x2e7   : > { %14117 = vst [vmem:[#allocation45_spill] sm:$0xff] %v12954_v54  ;;  %v9734_v21 = vpop.f32.mrf.mxu1  ;;  %10033 = vmatmul.mubr.msk.f32.gmra.mxu1 %vm3865_vm1, %v12638_v11 }
 0x2e8   : > { %v9784_v58 = vpop.f32.mrf.mxu0  ;;  %10083 = vmatmul.mubr.msk.f32.gmra.mxu0 %vm3865_vm1, %v12783_v19  ;;  %10035 = vmatprep.mubr.msk.f32.mxu1 %vm3865_vm1, %v6260_v57 }
 0x2e9   : > { %v12968_v9 = vadd.f32 %v9784_v58, %v9734_v21  ;;  %10085 = vmatprep.mubr.msk.f32.mxu0 %vm3865_vm1, %v6650_v56  ;;  %v12972_v22 = vpop.f32.mrf.mxu1  ;;  %v4511_v56 = vadd.f32 %v12799_v59, %v12795_v40 }
 0x2ea   : > { %v12974_v63 = vpop.f32.mrf.mxu0 }
 0x2eb   : > { %14119 = vst [vmem:[#allocation47_spill] sm:$0xff] %v12968_v9  ;;  %v9737_v23 = vpop.f32.mrf.mxu1  ;;  %10036 = vmatmul.mubr.msk.f32.gmra.mxu1 %vm3865_vm1, %v6261_v61  ;;  %v14123_v61 = vld [vmem:[#allocation40_spill] sm:$0xff] }
 0x2ec   : > { %v9787_v54 = vpop.f32.mrf.mxu0  ;;  %10086 = vmatmul.mubr.msk.f32.gmra.mxu0 %vm3865_vm1, %v6651_v43  ;;  %10090 = vmatprep.mubr.msk.f32.mxu1 %vm3865_vm1, %v12472_v12 }
 0x2ed   : > { %v12978_v11 = vadd.f32 %v9787_v54, %v9737_v23  ;;  %v12982_v19 = vpop.f32.mrf.mxu1 }
 0x2ee   : > { %14121 = vst [vmem:[#allocation48_spill] sm:$0xff] %v12982_v19  ;;  %v12984_v21 = vpop.f32.mrf.mxu0 }
 0x2ef   : > { %14120 = vst [vmem:[#allocation37_spill] sm:$0xff] %v12978_v11  ;;  %14122 = vst [vmem:[#allocation50_spill] sm:$0xff] %v12984_v21  ;;  %v9792_v58 = vpop.f32.mrf.mxu1  ;;  %10091 = vmatmul.mubr.msk.f32.vlgmr.msra.gmra.mxu1 %vm3865_vm1, %v12478_v0 }
 0x2f0   : > { %v9842_v57 = vpop.f32.mrf.mxu0  ;;  %v5028_v9 = vadd.f32 %v9792_v58, %v14123_v61  ;;  %10093 = vmatprep.mubr.msk.f32.mxu1 %vm3865_vm1, %v12484_v15 }
 0x2f1   : > { %v4868_v54 = vpop.f32.mrf.mxu1 }
 0x2f2   : > { %v5258_v43 = vpop.f32.mrf.mxu0  ;;  %v12993_v12 = vadd.f32 %v9842_v57, %v5028_v9  ;;  %v5027_v23 = vadd.f32 %v4868_v54, %v4511_v56 }
 0x2f3   : > { %v9795_v11 = vpop.f32.mrf.mxu1  ;;  %10094 = vmatmul.mubr.msk.f32.gmra.mxu1 %vm3865_vm1, %v12490_v44 }
 0x2f4   : > { %v9845_v21 = vpop.f32.mrf.mxu0  ;;  %v12997_v19 = vadd.f32 %v5258_v43, %v5027_v23  ;;  %v5030_v0 = vadd.f32 %v9795_v11, %v12805_v8  ;;  %10096 = vmatprep.mubr.msk.f32.mxu1 %vm3865_vm1, %v12496_v27 }
 0x2f5   : > { %v4878_v40 = vpop.f32.mrf.mxu1 }
 0x2f6   : > { %v5268_v59 = vpop.f32.mrf.mxu0  ;;  %v13002_v15 = vadd.f32 %v9845_v21, %v5030_v0  ;;  %v5029_v9 = vadd.f32 %v4878_v40, %v12809_v53 }
 0x2f7   : > { %v9798_v58 = vpop.f32.mrf.mxu1  ;;  %10097 = vmatmul.mubr.msk.f32.gmra.mxu1 %vm3865_vm1, %v12502_v24 }
 0x2f8   : > { %v9848_v57 = vpop.f32.mrf.mxu0  ;;  %v13007_v56 = vadd.f32 %v5268_v59, %v5029_v9  ;;  %v5032_v44 = vadd.f32 %v9798_v58, %v12813_v7  ;;  %10099 = vmatprep.mubr.msk.f32.mxu1 %vm3865_vm1, %v12508_v30 }
 0x2f9   : > { %v4888_v8 = vpop.f32.mrf.mxu1 }
 0x2fa   : > { %v5278_v27 = vpop.f32.mrf.mxu0  ;;  %v13012_v11 = vadd.f32 %v9848_v57, %v5032_v44  ;;  %v5031_v21 = vadd.f32 %v4888_v8, %v12819_v38 }
 0x2fb   : > { %v9801_v61 = vpop.f32.mrf.mxu1  ;;  %10100 = vmatmul.mubr.msk.f32.gmra.mxu1 %vm3865_vm1, %v12514_v31 }
 0x2fc   : > { %v9851_v53 = vpop.f32.mrf.mxu0  ;;  %v13017_v54 = vadd.f32 %v5278_v27, %v5031_v21  ;;  %v5034_v24 = vadd.f32 %v9801_v61, %v12824_v47  ;;  %10102 = vmatprep.mubr.msk.f32.mxu1 %vm3865_vm1, %v12520_v26 }
 0x2fd   : > { %v4898_v7 = vpop.f32.mrf.mxu1 }
 0x2fe   : > { %v5288_v30 = vpop.f32.mrf.mxu0  ;;  %v13022_v43 = vadd.f32 %v9851_v53, %v5034_v24  ;;  %v5033_v23 = vadd.f32 %v4898_v7, %v12830_v1 }
 0x2ff   : > { %v9804_v0 = vpop.f32.mrf.mxu1  ;;  %10103 = vmatmul.mubr.msk.f32.gmra.mxu1 %vm3865_vm1, %v12526_v3 }
 0x300   : > { %v9854_v38 = vpop.f32.mrf.mxu0  ;;  %v13027_v40 = vadd.f32 %v5288_v30, %v5033_v23  ;;  %v5036_v31 = vadd.f32 %v9804_v0, %v12836_v28  ;;  %10105 = vmatprep.mubr.msk.f32.mxu1 %vm3865_vm1, %v12532_v20 }
 0x301   : > { %v4908_v47 = vpop.f32.mrf.mxu1 }
 0x302   : > { %v5298_v26 = vpop.f32.mrf.mxu0  ;;  %v13032_v59 = vadd.f32 %v9854_v38, %v5036_v31  ;;  %v5035_v9 = vadd.f32 %v4908_v47, %v12842_v41 }
 0x303   : > { %v9807_v58 = vpop.f32.mrf.mxu1  ;;  %10106 = vmatmul.mubr.msk.f32.gmra.mxu1 %vm3865_vm1, %v12538_v17 }
 0x304   : > { %v9857_v1 = vpop.f32.mrf.mxu0  ;;  %v13037_v57 = vadd.f32 %v5298_v26, %v5035_v9  ;;  %v5038_v3 = vadd.f32 %v9807_v58, %v12848_v52  ;;  %10108 = vmatprep.mubr.msk.f32.mxu1 %vm3865_vm1, %v12544_v33  ;;  %v7029_v26 = vld [vmem:[#allocation2 + $0x112] sm:$0xff] }
 0x305   : > { %v4918_v28 = vpop.f32.mrf.mxu1 }
 0x306   : > { %v5308_v20 = vpop.f32.mrf.mxu0  ;;  %v13042_v44 = vadd.f32 %v9857_v1, %v5038_v3  ;;  %v5037_v8 = vadd.f32 %v4918_v28, %v12854_v49  ;;  %v7031_v28 = vld [vmem:[#allocation2 + $0x12a] sm:$0xff] }
 0x307   : > { %v9810_v27 = vpop.f32.mrf.mxu1  ;;  %10109 = vmatmul.mubr.msk.f32.gmra.mxu1 %vm3865_vm1, %v12550_v42 }
 0x308   : > { %v9860_v41 = vpop.f32.mrf.mxu0  ;;  %v13047_v21 = vadd.f32 %v5308_v20, %v5037_v8  ;;  %v5040_v17 = vadd.f32 %v9810_v27, %v12860_v45  ;;  %10111 = vmatprep.mubr.msk.f32.mxu1 %vm3865_vm1, %v12556_v37  ;;  %v7032_v27 = vld [vmem:[#allocation2 + $0x13a] sm:$0xff] }
 0x309   : > { %v4928_v52 = vpop.f32.mrf.mxu1 }
 0x30a   : > { %v5318_v33 = vpop.f32.mrf.mxu0  ;;  %v13052_v61 = vadd.f32 %v9860_v41, %v5040_v17  ;;  %v5039_v53 = vadd.f32 %v4928_v52, %v12866_v16 }
 0x30b   : > { %v9813_v24 = vpop.f32.mrf.mxu1  ;;  %10112 = vmatmul.mubr.msk.f32.gmra.mxu1 %vm3865_vm1, %v12562_v36  ;;  %v4591_v36 = vadd.f32 %v12892_v2, %v12890_v10 }
 0x30c   : > { %v9863_v49 = vpop.f32.mrf.mxu0  ;;  %v13057_v7 = vadd.f32 %v5318_v33, %v5039_v53  ;;  %v5042_v42 = vadd.f32 %v9813_v24, %v12872_v50  ;;  %10114 = vmatprep.mubr.msk.f32.mxu1 %vm3865_vm1, %v12568_v25  ;;  %v7033_v33 = vld [vmem:[#allocation2 + $0x142] sm:$0xff] }
 0x30d   : > { %v4938_v45 = vpop.f32.mrf.mxu1 }
 0x30e   : > { %v5328_v37 = vpop.f32.mrf.mxu0  ;;  %v13062_v30 = vadd.f32 %v9863_v49, %v5042_v42  ;;  %v5041_v23 = vadd.f32 %v4938_v45, %v12878_v5  ;;  %v7034_v49 = vld [vmem:[#allocation2 + $0x152] sm:$0xff] }
 0x30f   : > { %v9816_v0 = vpop.f32.mrf.mxu1  ;;  %10115 = vmatmul.mubr.msk.f32.gmra.mxu1 %vm3865_vm1, %v12574_v51  ;;  %v4601_v51 = vadd.f32 %v12906_v6, %v12904_v35  ;;  %v4611_v35 = vadd.f32 %v12920_v55, %v12918_v18  ;;  %v4621_v18 = vadd.f32 %v12934_v34, %v12932_v39 }
 0x310   : > { %v9866_v16 = vpop.f32.mrf.mxu0  ;;  %v13069_v38 = vadd.f32 %v5328_v37, %v5041_v23  ;;  %v5044_v50 = vadd.f32 %v9816_v0, %v12884_v60  ;;  %10117 = vmatprep.mubr.msk.f32.mxu1 %vm3865_vm1, %v12580_v32  ;;  %v7035_v0 = vld [vmem:[#allocation2 + $0x15a] sm:$0xff] }
 0x311   : > { %v4948_v25 = vpop.f32.mrf.mxu1 }
 0x312   : > { %v5338_v31 = vpop.f32.mrf.mxu0  ;;  %v13074_v47 = vadd.f32 %v9866_v16, %v5044_v50  ;;  %v5043_v5 = vadd.f32 %v4948_v25, %v4591_v36  ;;  %v7036_v50 = vld [vmem:[#allocation2 + $0x16a] sm:$0xff] }
 0x313   : > { %v9819_v9 = vpop.f32.mrf.mxu1  ;;  %10118 = vmatmul.mubr.msk.f32.gmra.mxu1 %vm3865_vm1, %v7029_v26  ;;  %v14124_v25 = vld [vmem:[#allocation17_spill] sm:$0xff] }
 0x314   : > { %v9869_v58 = vpop.f32.mrf.mxu0  ;;  %v13079_v10 = vadd.f32 %v5338_v31, %v5043_v5  ;;  %v5046_v60 = vadd.f32 %v9819_v9, %v12898_v48  ;;  %10120 = vmatprep.mubr.msk.f32.mxu1 %vm3865_vm1, %v12592_v13  ;;  %v4631_v39 = vadd.f32 %v14124_v25, %v12946_v14  ;;  %v14125_v31 = vld [vmem:[#allocation44_spill] sm:$0xff] }
 0x315   : > { %v4958_v32 = vpop.f32.mrf.mxu1 }
 0x316   : > { %v5348_v2 = vpop.f32.mrf.mxu0  ;;  %v13084_v1 = vadd.f32 %v9869_v58, %v5046_v60  ;;  %v5045_v3 = vadd.f32 %v4958_v32, %v4601_v51  ;;  %v7037_v51 = vld [vmem:[#allocation2 + $0x172] sm:$0xff] }
 0x317   : > { %v9822_v20 = vpop.f32.mrf.mxu1  ;;  %10121 = vmatmul.mubr.msk.f32.gmra.mxu1 %vm3865_vm1, %v7031_v28 }
 0x318   : > { %v9872_v8 = vpop.f32.mrf.mxu0  ;;  %v13089_v6 = vadd.f32 %v5348_v2, %v5045_v3  ;;  %v5048_v48 = vadd.f32 %v9822_v20, %v12912_v62  ;;  %10123 = vmatprep.mubr.msk.f32.mxu1 %vm3865_vm1, %v7032_v27  ;;  %v4641_v2 = vadd.f32 %v12962_v4, %v12960_v46  ;;  %v14126_v3 = vld [vmem:[#allocation45_spill] sm:$0xff]  ;;  %v4651_v46 = vadd.f32 %v12974_v63, %v12972_v22 }
 0x319   : > { %v4968_v13 = vpop.f32.mrf.mxu1  ;;  %v14127_v20 = vld [vmem:[#allocation41_spill] sm:$0xff] }
 0x31a   : > { %v5358_v41 = vpop.f32.mrf.mxu0  ;;  %v13093_v17 = vadd.f32 %v9872_v8, %v5048_v48  ;;  %v5047_v52 = vadd.f32 %v4968_v13, %v4611_v35  ;;  %v7040_v35 = vld [vmem:[#allocation2 + $0x19a] sm:$0xff]  ;;  %v14132_v63 = vld [vmem:[#allocation37_spill] sm:$0xff] }
 0x31b   : > { %v9825_v53 = vpop.f32.mrf.mxu1  ;;  %10124 = vmatmul.mubr.msk.f32.gmra.mxu1 %vm3865_vm1, %v7033_v33  ;;  %v14128_v33 = vld [vmem:[#allocation43_spill] sm:$0xff] }
 0x31c   : > { %v9875_v24 = vpop.f32.mrf.mxu0  ;;  %v13098_v55 = vadd.f32 %v5358_v41, %v5047_v52  ;;  %v5050_v62 = vadd.f32 %v9825_v53, %v12926_v29  ;;  %10126 = vmatprep.mubr.msk.f32.mxu1 %vm3865_vm1, %v7034_v49  ;;  %v14129_v53 = vld [vmem:[#allocation47_spill] sm:$0xff]  ;;  %v7041_v49 = vld [vmem:[#allocation2 + $0x1a2] sm:$0xff] }
 0x31d   : > { %v4978_v42 = vpop.f32.mrf.mxu1 }
 0x31e   : > { %v5368_v45 = vpop.f32.mrf.mxu0  ;;  %v13102_v37 = vadd.f32 %v9875_v24, %v5050_v62  ;;  %v5049_v23 = vadd.f32 %v4978_v42, %v4621_v18 }
 0x31f   : > { %v9828_v16 = vpop.f32.mrf.mxu1  ;;  %10127 = vmatmul.mubr.msk.f32.gmra.mxu1 %vm3865_vm1, %v7035_v0 }
 0x320   : > { %v9878_v36 = vpop.f32.mrf.mxu0  ;;  %v13107_v34 = vadd.f32 %v5368_v45, %v5049_v23  ;;  %v5052_v29 = vadd.f32 %v9828_v16, %v14125_v31  ;;  %10129 = vmatprep.mubr.msk.f32.mxu1 %vm3865_vm1, %v7036_v50  ;;  %v14130_v16 = vld [vmem:[#allocation48_spill] sm:$0xff] }
 0x321   : > { %v4988_v5 = vpop.f32.mrf.mxu1 }
 0x322   : > { %v5378_v26 = vpop.f32.mrf.mxu0  ;;  %v13111_v9 = vadd.f32 %v9878_v36, %v5052_v29  ;;  %v5051_v58 = vadd.f32 %v4988_v5, %v4631_v39  ;;  %v14131_v36 = vld [vmem:[#allocation50_spill] sm:$0xff] }
 0x323   : > { %v9831_v60 = vpop.f32.mrf.mxu1  ;;  %10130 = vmatmul.mubr.msk.f32.gmra.mxu1 %vm3865_vm1, %v7037_v51  ;;  %v4661_v50 = vadd.f32 %v14131_v36, %v14130_v16 }
 0x324   : > { %v9881_v32 = vpop.f32.mrf.mxu0  ;;  %v13116_v14 = vadd.f32 %v5378_v26, %v5051_v58  ;;  %v5054_v28 = vadd.f32 %v9831_v60, %v14126_v3  ;;  %10132 = vmatprep.mubr.msk.f32.mxu1 %vm3865_vm1, %v14127_v20 }
 0x325   : > { %v4998_v8 = vpop.f32.mrf.mxu1 }
 0x326   : > { %v5388_v27 = vpop.f32.mrf.mxu0  ;;  %v13121_v48 = vadd.f32 %v9881_v32, %v5054_v28  ;;  %v5053_v13 = vadd.f32 %v4998_v8, %v4641_v2 }
 0x327   : > { %v9834_v41 = vpop.f32.mrf.mxu1  ;;  %10133 = vmatmul.mubr.msk.f32.gmra.mxu1 %vm3865_vm1, %v14128_v33 }
 0x328   : > { %v9884_v52 = vpop.f32.mrf.mxu0  ;;  %v13127_v4 = vadd.f32 %v5388_v27, %v5053_v13  ;;  %v5056_v24 = vadd.f32 %v9834_v41, %v14129_v53  ;;  %10135 = vmatprep.mubr.msk.f32.mxu1 %vm3865_vm1, %v7040_v35 }
 0x329   : > { %v5008_v18 = vpop.f32.mrf.mxu1 }
 0x32a   : > { %v5398_v62 = vpop.f32.mrf.mxu0  ;;  %v13131_v42 = vadd.f32 %v9884_v52, %v5056_v24  ;;  %v5055_v45 = vadd.f32 %v5008_v18, %v4651_v46 }
 0x32b   : > { %v9837_v23 = vpop.f32.mrf.mxu1  ;;  %10136 = vmatmul.mubr.msk.f32.gmra.mxu1 %vm3865_vm1, %v7041_v49 }
 0x32c   : > { %v9887_v0 = vpop.f32.mrf.mxu0  ;;  %v13136_v22 = vadd.f32 %v5398_v62, %v5055_v45  ;;  %v5058_v25 = vadd.f32 %v9837_v23, %v14132_v63 }
 0x32d   : > { %v5018_v39 = vpop.f32.mrf.mxu1 }
 0x32e   : > { %v5408_v31 = vpop.f32.mrf.mxu0  ;;  %v13139_v29 = vadd.f32 %v9887_v0, %v5058_v25  ;;  %v5057_v5 = vadd.f32 %v5018_v39, %v4661_v50 }
 0x32f   : > { %v9892_v26 = vpop.f32.mrf.mxu1 }
 0x330   : > { %v9942_v58 = vpop.f32.mrf.mxu0  ;;  %v13141_v51 = vadd.f32 %v5408_v31, %v5057_v5  ;;  %v5808_v60 = vadd.f32 %v9892_v26, %v12993_v12 }
 0x331   : > { %v5648_v32 = vpop.f32.mrf.mxu1 }
 0x332   : > { %v6038_v2 = vpop.f32.mrf.mxu0  ;;  %v13144_v3 = vadd.f32 %v9942_v58, %v5808_v60  ;;  %v5807_v28 = vadd.f32 %v5648_v32, %v12997_v19 }
 0x333   : > { %v9895_v20 = vpop.f32.mrf.mxu1 }
 0x334   : > { %v9945_v8 = vpop.f32.mrf.mxu0  ;;  %v13147_v27 = vadd.f32 %v6038_v2, %v5807_v28  ;;  %v5810_v35 = vadd.f32 %v9895_v20, %v13002_v15 }
 0x335   : > { %v5658_v13 = vpop.f32.mrf.mxu1 }
 0x336   : > { %v6048_v41 = vpop.f32.mrf.mxu0  ;;  %v13150_v52 = vadd.f32 %v9945_v8, %v5810_v35  ;;  %v5809_v33 = vadd.f32 %v5658_v13, %v13007_v56 }
 0x337   : > { %v9898_v46 = vpop.f32.mrf.mxu1 }
 0x338   : > { %v9948_v12 = vpop.f32.mrf.mxu0  ;;  %v13153_v53 = vadd.f32 %v6048_v41, %v5809_v33  ;;  %v5812_v24 = vadd.f32 %v9898_v46, %v13012_v11 }
 0x339   : > { %v5668_v49 = vpop.f32.mrf.mxu1 }
 0x33a   : > { %v6058_v19 = vpop.f32.mrf.mxu0  ;;  %v13156_v18 = vadd.f32 %v9948_v12, %v5812_v24  ;;  %v5811_v62 = vadd.f32 %v5668_v49, %v13017_v54 }
 0x33b   : > { %v9901_v45 = vpop.f32.mrf.mxu1 }
 0x33c   : > { %v9951_v15 = vpop.f32.mrf.mxu0  ;;  %v13159_v23 = vadd.f32 %v6058_v19, %v5811_v62  ;;  %v5814_v0 = vadd.f32 %v9901_v45, %v13022_v43 }
 0x33d   : > { %v5678_v16 = vpop.f32.mrf.mxu1 }
 0x33e   : > { %v6068_v56 = vpop.f32.mrf.mxu0  ;;  %v13162_v36 = vadd.f32 %v9951_v15, %v5814_v0  ;;  %v5813_v50 = vadd.f32 %v5678_v16, %v13027_v40 }
 0x33f   : > { %v9904_v63 = vpop.f32.mrf.mxu1 }
 0x340   : > { %v9954_v11 = vpop.f32.mrf.mxu0  ;;  %v13165_v25 = vadd.f32 %v6068_v56, %v5813_v50  ;;  %v5816_v39 = vadd.f32 %v9904_v63, %v13032_v59 }
 0x341   : > { %v5688_v31 = vpop.f32.mrf.mxu1 }
 0x342   : > { %v6078_v54 = vpop.f32.mrf.mxu0  ;;  %v13168_v5 = vadd.f32 %v9954_v11, %v5816_v39  ;;  %v5815_v26 = vadd.f32 %v5688_v31, %v13037_v57 }
 0x343   : > { %v9907_v58 = vpop.f32.mrf.mxu1 }
 0x344   : > { %v9957_v43 = vpop.f32.mrf.mxu0  ;;  %v13171_v60 = vadd.f32 %v6078_v54, %v5815_v26  ;;  %v5818_v32 = vadd.f32 %v9907_v58, %v13042_v44 }
 0x345   : > { %v5698_v2 = vpop.f32.mrf.mxu1 }
 0x346   : > { %v6088_v40 = vpop.f32.mrf.mxu0  ;;  %v13174_v28 = vadd.f32 %v9957_v43, %v5818_v32  ;;  %v5817_v20 = vadd.f32 %v5698_v2, %v13047_v21 }
 0x347   : > { %v9910_v8 = vpop.f32.mrf.mxu1 }
 0x348   : > { %v9960_v59 = vpop.f32.mrf.mxu0  ;;  %v13177_v35 = vadd.f32 %v6088_v40, %v5817_v20  ;;  %v5820_v13 = vadd.f32 %v9910_v8, %v13052_v61 }
 0x349   : > { %v5708_v41 = vpop.f32.mrf.mxu1 }
 0x34a   : > { %v6098_v57 = vpop.f32.mrf.mxu0  ;;  %v13180_v33 = vadd.f32 %v9960_v59, %v5820_v13  ;;  %v5819_v46 = vadd.f32 %v5708_v41, %v13057_v7 }
 0x34b   : > { %v9913_v12 = vpop.f32.mrf.mxu1 }
 0x34c   : > { %v9963_v44 = vpop.f32.mrf.mxu0  ;;  %v13183_v24 = vadd.f32 %v6098_v57, %v5819_v46  ;;  %v5822_v49 = vadd.f32 %v9913_v12, %v13062_v30 }
 0x34d   : > { %v5718_v19 = vpop.f32.mrf.mxu1 }
 0x34e   : > { %v6108_v21 = vpop.f32.mrf.mxu0  ;;  %v13186_v62 = vadd.f32 %v9963_v44, %v5822_v49  ;;  %v5821_v45 = vadd.f32 %v5718_v19, %v13069_v38 }
 0x34f   : > { %v9916_v15 = vpop.f32.mrf.mxu1 }
 0x350   : > { %v9966_v61 = vpop.f32.mrf.mxu0  ;;  %v13189_v0 = vadd.f32 %v6108_v21, %v5821_v45  ;;  %v5824_v16 = vadd.f32 %v9916_v15, %v13074_v47 }
 0x351   : > { %v5728_v56 = vpop.f32.mrf.mxu1 }
 0x352   : > { %v6118_v7 = vpop.f32.mrf.mxu0  ;;  %v13192_v50 = vadd.f32 %v9966_v61, %v5824_v16  ;;  %v5823_v63 = vadd.f32 %v5728_v56, %v13079_v10 }
 0x353   : > { %v9919_v11 = vpop.f32.mrf.mxu1 }
 0x354   : > { %v9969_v30 = vpop.f32.mrf.mxu0  ;;  %v13195_v39 = vadd.f32 %v6118_v7, %v5823_v63  ;;  %v5826_v31 = vadd.f32 %v9919_v11, %v13084_v1 }
 0x355   : > { %v5738_v54 = vpop.f32.mrf.mxu1 }
 0x356   : > { %v6128_v38 = vpop.f32.mrf.mxu0  ;;  %v13198_v26 = vadd.f32 %v9969_v30, %v5826_v31  ;;  %v5825_v58 = vadd.f32 %v5738_v54, %v13089_v6 }
 0x357   : > { %v9922_v43 = vpop.f32.mrf.mxu1 }
 0x358   : > { %v9972_v47 = vpop.f32.mrf.mxu0  ;;  %v13201_v32 = vadd.f32 %v6128_v38, %v5825_v58  ;;  %v5828_v2 = vadd.f32 %v9922_v43, %v13093_v17 }
 0x359   : > { %v5748_v40 = vpop.f32.mrf.mxu1 }
 0x35a   : > { %v6138_v10 = vpop.f32.mrf.mxu0  ;;  %v13204_v20 = vadd.f32 %v9972_v47, %v5828_v2  ;;  %v5827_v8 = vadd.f32 %v5748_v40, %v13098_v55 }
 0x35b   : > { %v9925_v59 = vpop.f32.mrf.mxu1 }
 0x35c   : > { %v9975_v1 = vpop.f32.mrf.mxu0  ;;  %v13207_v13 = vadd.f32 %v6138_v10, %v5827_v8  ;;  %v5830_v41 = vadd.f32 %v9925_v59, %v13102_v37 }
 0x35d   : > { %v5758_v57 = vpop.f32.mrf.mxu1 }
 0x35e   : > { %v6148_v6 = vpop.f32.mrf.mxu0  ;;  %v13210_v46 = vadd.f32 %v9975_v1, %v5830_v41  ;;  %v5829_v12 = vadd.f32 %v5758_v57, %v13107_v34 }
 0x35f   : > { %v9928_v44 = vpop.f32.mrf.mxu1 }
 0x360   : > { %v9978_v17 = vpop.f32.mrf.mxu0  ;;  %v13213_v49 = vadd.f32 %v6148_v6, %v5829_v12  ;;  %v5832_v19 = vadd.f32 %v9928_v44, %v13111_v9 }
 0x361   : > { %v5768_v21 = vpop.f32.mrf.mxu1 }
 0x362   : > { %v6158_v55 = vpop.f32.mrf.mxu0  ;;  %v13216_v45 = vadd.f32 %v9978_v17, %v5832_v19  ;;  %v5831_v15 = vadd.f32 %v5768_v21, %v13116_v14 }
 0x363   : > { %v9931_v61 = vpop.f32.mrf.mxu1 }
 0x364   : > { %v9981_v37 = vpop.f32.mrf.mxu0  ;;  %v13219_v16 = vadd.f32 %v6158_v55, %v5831_v15  ;;  %v5834_v56 = vadd.f32 %v9931_v61, %v13121_v48 }
 0x365   : > { %v5778_v7 = vpop.f32.mrf.mxu1 }
 0x366   : > { %v6168_v34 = vpop.f32.mrf.mxu0  ;;  %v13222_v63 = vadd.f32 %v9981_v37, %v5834_v56  ;;  %v5833_v11 = vadd.f32 %v5778_v7, %v13127_v4 }
 0x367   : > { %v9934_v30 = vpop.f32.mrf.mxu1 }
 0x368   : > { %v9984_v9 = vpop.f32.mrf.mxu0  ;;  %v13225_v31 = vadd.f32 %v6168_v34, %v5833_v11  ;;  %v5836_v54 = vadd.f32 %v9934_v30, %v13131_v42 }
 0x369   : > { %v5788_v38 = vpop.f32.mrf.mxu1 }
 0x36a   : > { %v6178_v14 = vpop.f32.mrf.mxu0  ;;  %v13228_v58 = vadd.f32 %v9984_v9, %v5836_v54  ;;  %v5835_v43 = vadd.f32 %v5788_v38, %v13136_v22 }
 0x36b   : > { %v9937_v47 = vpop.f32.mrf.mxu1 }
 0x36c   : > { %v13231_v48 = vpop.f32.mrf.mxu0  ;;  %v13233_v2 = vadd.f32 %v6178_v14, %v5835_v43  ;;  %v13236_v40 = vadd.f32 %v9937_v47, %v13139_v29 }
 0x36d   : > { %v5798_v4 = vpop.f32.mrf.mxu1 }
 0x36e   : > { %v13238_v10 = vpop.f32.mrf.mxu0  ;;  %v13241_v8 = vadd.f32 %v5798_v4, %v13141_v51 }
 0x36f   : > { %v9992_v42 = vpop.f32.mrf.mxu1 }
 0x370   : > { %v10042_v59 = vpop.f32.mrf.mxu0  ;;  %v6589_v1 = vadd.f32 %v9992_v42, %v13144_v3 }
 0x371   : > { %v6429_v41 = vpop.f32.mrf.mxu1 }
 0x372   : > { %v6819_v22 = vpop.f32.mrf.mxu0  ;;  %v13244_v57 = vadd.f32 %v10042_v59, %v6589_v1  ;;  %v6588_v6 = vadd.f32 %v6429_v41, %v13147_v27 }
 0x373   : > { %v9995_v12 = vpop.f32.mrf.mxu1 }
 0x374   : > { %v10045_v44 = vpop.f32.mrf.mxu0  ;;  %v13247_v29 = vadd.f32 %v6819_v22, %v6588_v6  ;;  %v6591_v17 = vadd.f32 %v9995_v12, %v13150_v52 }
 0x375   : > { %v6439_v19 = vpop.f32.mrf.mxu1 }
 0x376   : > { %v6829_v21 = vpop.f32.mrf.mxu0  ;;  %v13250_v51 = vadd.f32 %v10045_v44, %v6591_v17  ;;  %v6590_v55 = vadd.f32 %v6439_v19, %v13153_v53 }
 0x377   : > { %v9998_v15 = vpop.f32.mrf.mxu1 }
 0x378   : > { %v10048_v3 = vpop.f32.mrf.mxu0  ;;  %v13253_v61 = vadd.f32 %v6829_v21, %v6590_v55  ;;  %v6593_v37 = vadd.f32 %v9998_v15, %v13156_v18 }
 0x379   : > { %v6449_v56 = vpop.f32.mrf.mxu1 }
 0x37a   : > { %v6839_v27 = vpop.f32.mrf.mxu0  ;;  %v13256_v7 = vadd.f32 %v10048_v3, %v6593_v37  ;;  %v6592_v34 = vadd.f32 %v6449_v56, %v13159_v23 }
 0x37b   : > { %v10001_v11 = vpop.f32.mrf.mxu1 }
 0x37c   : > { %v10051_v52 = vpop.f32.mrf.mxu0  ;;  %v13259_v30 = vadd.f32 %v6839_v27, %v6592_v34  ;;  %v6595_v9 = vadd.f32 %v10001_v11, %v13162_v36 }
 0x37d   : > { %v6459_v54 = vpop.f32.mrf.mxu1 }
 0x37e   : > { %v13262_v53 = vadd.f32 %v10051_v52, %v6595_v9  ;;  %v6594_v38 = vadd.f32 %v6459_v54, %v13165_v25  ;;  %v6849_v14 = vpop.f32.mrf.mxu0 }
 0x37f   : > { %v10004_v43 = vpop.f32.mrf.mxu1 }
 0x380   : > { %v13265_v18 = vadd.f32 %v6849_v14, %v6594_v38  ;;  %v13268_v47 = vadd.f32 %v10004_v43, %v13168_v5  ;;  %v13279_v25 = vpop.f32.mrf.mxu0 }
 0x381   : > { %v6469_v4 = vpop.f32.mrf.mxu1 }
 0x382   : > { %v13271_v23 = vadd.f32 %v6469_v4, %v13171_v60  ;;  %v13287_v60 = vpop.f32.mrf.mxu0 }
 0x383   : > { %v10007_v42 = vpop.f32.mrf.mxu1 }
 0x384   : > { %v13274_v59 = vadd.f32 %v10007_v42, %v13174_v28  ;;  %v13295_v17 = vpop.f32.mrf.mxu0 }
 0x385   : > { %v6479_v36 = vpop.f32.mrf.mxu1 }
 0x386   : > { %v13277_v1 = vadd.f32 %v6479_v36, %v13177_v35  ;;  %v13303_v55 = vpop.f32.mrf.mxu0 }
 0x387   : > { %v10010_v41 = vpop.f32.mrf.mxu1 }
 0x388   : > { %v13282_v22 = vadd.f32 %v10010_v41, %v13180_v33 }
 0x389   : > { %v6489_v5 = vpop.f32.mrf.mxu1 }
 0x38a   : > { %v13285_v6 = vadd.f32 %v6489_v5, %v13183_v24 }
 0x38b   : > { %v10013_v12 = vpop.f32.mrf.mxu1 }
 0x38c   : > { %v13290_v28 = vadd.f32 %v10013_v12, %v13186_v62 }
 0x38d   : > { %v6499_v44 = vpop.f32.mrf.mxu1 }
 0x38e   : > { %v13293_v35 = vadd.f32 %v6499_v44, %v13189_v0  ;;  %v7568_v0 = vld [vmem:[%s13733_s5 + $0x8] sm:$0xff] }
 0x38f   : > { %v10016_v19 = vpop.f32.mrf.mxu1  ;;  %7647 = vmatprep.mubr.f32.mxu0 %v7568_v0 }
 0x390   : > { %v13298_v33 = vadd.f32 %v10016_v19, %v13192_v50  ;;  %v13314_v50 = vpop.f32.mrf.mxu0 }
 0x391   : > { %v6509_v21 = vpop.f32.mrf.mxu1 }
 0x392   : > { %v13301_v24 = vadd.f32 %v6509_v21, %v13195_v39 }
 0x393   : > { %v10019_v15 = vpop.f32.mrf.mxu1 }
 0x394   : > { %v13306_v62 = vadd.f32 %v10019_v15, %v13198_v26  ;;  %v13322_v26 = vpop.f32.mrf.mxu0 }
 0x395   : > { %v6519_v3 = vpop.f32.mrf.mxu1 }
 0x396   : > { %v13312_v37 = vadd.f32 %v6519_v3, %v13201_v32  ;;  %v13330_v54 = vpop.f32.mrf.mxu0 }
 0x397   : > { %v10022_v56 = vpop.f32.mrf.mxu1 }
 0x398   : > { %v13317_v39 = vadd.f32 %v10022_v56, %v13204_v20  ;;  %v13338_v43 = vpop.f32.mrf.mxu0 }
 0x399   : > { %v6529_v27 = vpop.f32.mrf.mxu1 }
 0x39a   : > { %v13320_v34 = vadd.f32 %v6529_v27, %v13207_v13  ;;  %v13346_v36 = vpop.f32.mrf.mxu0 }
 0x39b   : > { %v10025_v11 = vpop.f32.mrf.mxu1 }
 0x39c   : > { %v13325_v52 = vadd.f32 %v10025_v11, %v13210_v46  ;;  %v6899_v12 = vpop.f32.mrf.mxu0 }
 0x39d   : > { %v6539_v9 = vpop.f32.mrf.mxu1 }
 0x39e   : > { %v13328_v32 = vadd.f32 %v6539_v9, %v13213_v49 }
 0x39f   : > { %v10028_v38 = vpop.f32.mrf.mxu1 }
 0x3a0   : > { %v13333_v20 = vadd.f32 %v10028_v38, %v13216_v45 }
 0x3a1   : > { %v6549_v14 = vpop.f32.mrf.mxu1 }
 0x3a2   : > { %v13336_v13 = vadd.f32 %v6549_v14, %v13219_v16 }
 0x3a3   : > { %v10031_v4 = vpop.f32.mrf.mxu1 }
 0x3a4   : > { %v13341_v46 = vadd.f32 %v10031_v4, %v13222_v63  ;;  %v10069_v63 = vpop.f32.mrf.mxu0 }
 0x3a5   : > { %v6559_v42 = vpop.f32.mrf.mxu1 }
 0x3a6   : > { %v13344_v49 = vadd.f32 %v6559_v42, %v13225_v31  ;;  %v6909_v3 = vpop.f32.mrf.mxu0 }
 0x3a7   : > { %v10034_v41 = vpop.f32.mrf.mxu1 }
 0x3a8   : > { %v13349_v45 = vadd.f32 %v10034_v41, %v13228_v58  ;;  %v10072_v11 = vpop.f32.mrf.mxu0 }
 0x3a9   : > { %v6569_v5 = vpop.f32.mrf.mxu1 }
 0x3aa   : > { %v13352_v16 = vadd.f32 %v6569_v5, %v13233_v2 }
 0x3ab   : > { %v10037_v44 = vpop.f32.mrf.mxu1 }
 0x3ac   : > { %14133 = vst [vmem:[#allocation80_spill] sm:$0xff] %v13352_v16 }
 0x3ad   : > { %v13354_v19 = vpop.f32.mrf.mxu1 }
 0x3af   : > { %v10092_v21 = vpop.f32.mrf.mxu1 }
 0x3b0   : > { %v13357_v15 = vadd.f32 %v10092_v21, %v13244_v57 }
 0x3b1   : > { %v7209_v31 = vpop.f32.mrf.mxu1 }
 0x3b2   : > { %14134 = vst [vmem:[#allocation49_spill] sm:$0xff] %v13357_v15  ;;  %v13360_v0 = vadd.f32 %v7209_v31, %v13247_v29  ;;  %v6919_v29 = vpop.f32.mrf.mxu0 }
 0x3b3   : > { %v10095_v58 = vpop.f32.mrf.mxu1 }
 0x3b4   : > { %14135 = vst [vmem:[#allocation21_spill] sm:$0xff] %v13360_v0  ;;  %v13363_v56 = vadd.f32 %v10095_v58, %v13250_v51  ;;  %v10075_v5 = vpop.f32.mrf.mxu0 }
 0x3b5   : > { %v7219_v2 = vpop.f32.mrf.mxu1 }
 0x3b6   : > { %14136 = vst [vmem:[#allocation51_spill] sm:$0xff] %v13363_v56  ;;  %v13366_v27 = vadd.f32 %v7219_v2, %v13253_v61  ;;  %v6929_v31 = vpop.f32.mrf.mxu0 }
 0x3b7   : > { %v10098_v9 = vpop.f32.mrf.mxu1 }
 0x3b8   : > { %14137 = vst [vmem:[#allocation52_spill] sm:$0xff] %v13366_v27  ;;  %v13369_v38 = vadd.f32 %v10098_v9, %v13256_v7  ;;  %v10078_v7 = vpop.f32.mrf.mxu0 }
 0x3b9   : > { %v7229_v57 = vpop.f32.mrf.mxu1 }
 0x3ba   : > { %14138 = vst [vmem:[#allocation53_spill] sm:$0xff] %v13369_v38  ;;  %v13372_v14 = vadd.f32 %v7229_v57, %v13259_v30  ;;  %v6939_v30 = vpop.f32.mrf.mxu0 }
 0x3bb   : > { %v10101_v4 = vpop.f32.mrf.mxu1 }
 0x3bc   : > { %14139 = vst [vmem:[#allocation54_spill] sm:$0xff] %v13372_v14  ;;  %v7375_v42 = vadd.f32 %v10101_v4, %v13262_v53  ;;  %v10081_v0 = vpop.f32.mrf.mxu0 }
 0x3bd   : > { %v7239_v41 = vpop.f32.mrf.mxu1 }
 0x3be   : > { %v13376_v51 = vadd.f32 %v7239_v41, %v13265_v18  ;;  %v6949_v18 = vpop.f32.mrf.mxu0 }
 0x3bf   : > { %v10104_v61 = vpop.f32.mrf.mxu1 }
 0x3c0   : > { %14140 = vst [vmem:[#allocation23_spill] sm:$0xff] %v13376_v51  ;;  %v10084_v38 = vpop.f32.mrf.mxu0 }
 0x3c1   : > { %v7249_v21 = vpop.f32.mrf.mxu1 }
 0x3c2   : > { %v6959_v56 = vpop.f32.mrf.mxu0 }
 0x3c3   : > { %v10107_v58 = vpop.f32.mrf.mxu1 }
 0x3c5   : > { %v13378_v2 = vpop.f32.mrf.mxu1 }
 0x3c6   : > { %14141 = vst [vmem:[#allocation55_spill] sm:$0xff] %v13378_v2 }
 0x3c7   : > { %v10110_v9 = vpop.f32.mrf.mxu1 }
 0x3c9   : > { %v13380_v27 = vpop.f32.mrf.mxu1 }
 0x3ca   : > { %14142 = vst [vmem:[#allocation82_spill] sm:$0xff] %v13380_v27  ;;  %v6228_v27 = vadd.f32 %v13231_v48, %v13236_v40  ;;  %v6991_v48 = vadd.f32 %v13314_v50, %v13282_v22  ;;  %v6990_v40 = vadd.f32 %v13322_v26, %v13285_v6  ;;  %v13429_v22 = vadd.f32 %v6909_v3, %v13312_v37 }
 0x3cb   : > { %v10113_v57 = vpop.f32.mrf.mxu1  ;;  %v13432_v6 = vadd.f32 %v10072_v11, %v13317_v39  ;;  %v13450_v37 = vadd.f32 %v6939_v30, %v13336_v13  ;;  %v7005_v50 = vadd.f32 %v10081_v0, %v13341_v46 }
 0x3cd   : > { %v7279_v14 = vpop.f32.mrf.mxu1 }
 0x3cf   : > { %v13382_v53 = vpop.f32.mrf.mxu1 }
 0x3d0   : > { %14143 = vst [vmem:[#allocation56_spill] sm:$0xff] %v13382_v53  ;;  %v6227_v53 = vadd.f32 %v13238_v10, %v13241_v8  ;;  %v6993_v10 = vadd.f32 %v13330_v54, %v13290_v28  ;;  %v10087_v8 = vpop.f32.mrf.mxu0  ;;  %v7007_v54 = vadd.f32 %v10084_v38, %v13349_v45  ;;  %v14151_v45 = vld [vmem:[#allocation53_spill] sm:$0xff] }
 0x3d1   : > { %v13384_v4 = vpop.f32.mrf.mxu1  ;;  %v7405_v38 = vmul.f32 0.05270463, %v14151_v45 }
 0x3d2   : > { %14144 = vst [vmem:[#allocation57_spill] sm:$0xff] %v13384_v4  ;;  %v6987_v4 = vadd.f32 %v13279_v25, %v13268_v47  ;;  %v13426_v25 = vadd.f32 %v10069_v63, %v13306_v62  ;;  %v13447_v62 = vadd.f32 %v10078_v7, %v13333_v20  ;;  %v6969_v39 = vpop.f32.mrf.mxu0  ;;  %v14149_v20 = vld [vmem:[#allocation51_spill] sm:$0xff]  ;;  %v7383_v11 = vadd.f32 %v10113_v57, %v6993_v10  ;;  %v14154_v7 = vld [vmem:[#allocation54_spill] sm:$0xff] }
 0x3d3   : > { %v13386_v41 = vpop.f32.mrf.mxu1  ;;  %v14155_v57 = vld [vmem:[#allocation23_spill] sm:$0xff] }
 0x3d4   : > { %14145 = vst [vmem:[#allocation58_spill] sm:$0xff] %v13386_v41  ;;  %v6989_v41 = vadd.f32 %v13295_v17, %v13274_v59  ;;  %v13420_v59 = vadd.f32 %v13346_v36, %v13298_v33  ;;  %v7377_v28 = vadd.f32 %v10104_v61, %v6987_v4  ;;  %v13440_v33 = vadd.f32 %v10075_v5, %v13325_v52  ;;  %v14148_v36 = vld [vmem:[#allocation80_spill] sm:$0xff] }
 0x3d5   : > { %v13388_v51 = vpop.f32.mrf.mxu1  ;;  %v7004_v52 = vadd.f32 %v6949_v18, %v13344_v49  ;;  %v13465_v49 = vld [vmem:[%s13732_s4] ss:$0 sm:$0xff] }
 0x3d6   : > { %14146 = vst [vmem:[#allocation26_spill] sm:$0xff] %v13388_v51  ;;  %v6986_v51 = vadd.f32 %v13287_v60, %v13271_v23  ;;  %v6992_v23 = vadd.f32 %v13338_v43, %v13293_v35  ;;  %v6619_v60 = vadd.f32 %v10037_v44, %v6228_v27  ;;  %v13437_v35 = vadd.f32 %v6919_v29, %v13320_v34  ;;  %v14150_v27 = vld [vmem:[#allocation49_spill] sm:$0xff] }
 0x3d7   : > { %v13390_v15 = vpop.f32.mrf.mxu1  ;;  %v7379_v26 = vadd.f32 %v10107_v58, %v6989_v41  ;;  %v7381_v43 = vadd.f32 %v10110_v9, %v6991_v48  ;;  %v7409_v63 = vmul.f32 0.05270463, %v7377_v28  ;;  %v13460_v46 = vmul.f32 0.05270463, %v14150_v27  ;;  %v14157_v41 = vld [vmem:[#allocation52_spill] sm:$0xff] }
 0x3d8   : > { %v7009_v44 = vadd.f32 %v10087_v8, %v6619_v60  ;;  %v7376_v0 = vadd.f32 %v7249_v21, %v6986_v51  ;;  %v7382_v5 = vadd.f32 %v7279_v14, %v6992_v23  ;;  %v7404_v9 = vmul.f32 0.05270463, %v14154_v7 }
 0x3d9   : > { %v13392_v2 = vpop.f32.mrf.mxu1  ;;  %v7411_v29 = vmul.f32 0.05270463, %v7379_v26  ;;  %v7413_v21 = vmul.f32 0.05270463, %v7381_v43  ;;  %v13481_v4 = vadd.f32 %v13465_v49, %v7409_v63  ;;  %v13485_v48 = vmul.f32 0.05270463, %v14157_v41 }
 0x3da   : > { %14147 = vst [vmem:[#allocation59_spill] sm:$0xff] %v13392_v2  ;;  %v6988_v2 = vadd.f32 %v13303_v55, %v13277_v1  ;;  %v13423_v1 = vadd.f32 %v6899_v12, %v13301_v24  ;;  %v13443_v24 = vadd.f32 %v6929_v31, %v13328_v32  ;;  %v6618_v55 = vadd.f32 %v13354_v19, %v6227_v53  ;;  %v14153_v31 = vld [vmem:[#allocation21_spill] sm:$0xff] }
 0x3db   : > { %v13396_v16 = vpop.f32.mrf.mxu1  ;;  %v7407_v32 = vmul.f32 0.05270463, %v7375_v42  ;;  %v7006_v12 = vadd.f32 %v6959_v56, %v14148_v36  ;;  %v7403_v19 = vmul.f32 0.05270463, %v14149_v20  ;;  %v14152_v56 = vld [vmem:[#allocation55_spill] sm:$0xff]  ;;  %v13488_v60 = vadd.f32 %v13465_v49, %v7405_v38 }
 0x3dc   : > { %v7008_v3 = vadd.f32 %v6969_v39, %v6618_v55  ;;  %v7378_v42 = vadd.f32 %v14152_v56, %v6988_v2  ;;  %v13470_v58 = vmul.f32 0.05270463, %v14153_v31  ;;  %v7406_v53 = vmul.f32 0.05270463, %v14155_v57  ;;  %v14156_v2 = vld [vmem:[#allocation82_spill] sm:$0xff] }
 0x3dd   : > { %v13414_v47 = vpop.f32.mrf.mxu1  ;;  %v13474_v51 = vadd.f32 %v13465_v49, %v7407_v32  ;;  %v13477_v30 = vadd.f32 %v13465_v49, %v7403_v19  ;;  %v7380_v14 = vadd.f32 %v14156_v2, %v6990_v40  ;;  %v7408_v10 = vmul.f32 0.05270463, %v7376_v0 }
 0x3de   : > { %v7415_v8 = vmul.f32 0.05270463, %v7383_v11  ;;  %v13491_v28 = vadd.f32 %v13465_v49, %v7411_v29  ;;  %v7410_v55 = vmul.f32 0.05270463, %v7378_v42  ;;  %v7414_v39 = vmul.f32 0.05270463, %v7382_v5 }
 0x3df   : > { %v13434_v17 = vpop.f32.mrf.mxu1  ;;  %v13494_v32 = vadd.f32 %v13465_v49, %v7404_v9  ;;  %v13497_v40 = vmul.f32 0.2, %v13474_v51  ;;  %v13500_v43 = vadd.f32 %v13465_v49, %v7413_v21  ;;  %v13506_v20 = vmul.f32 0.2, %v13481_v4 }
 0x3e0   : > { %v7412_v19 = vmul.f32 0.05270463, %v7380_v14  ;;  %v13509_v0 = vadd.f32 %v13465_v49, %v7408_v10  ;;  %v7454_v11 = vadd.f32 %v13465_v49, %v7415_v8  ;;  %v13513_v29 = vmul.f32 0.2, %v13491_v28 }
 0x3e1   : > { %v13453_v34 = vpop.f32.mrf.mxu1  ;;  %v7453_v56 = vadd.f32 %v13465_v49, %v7414_v39  ;;  %vm7484_vm5 = vcmp.gt.f32.partialorder %v13500_v43, 0.0  ;;  %vm7482_vm8 = vcmp.gt.f32.partialorder %v13491_v28, 0.0  ;;  %v7390_v39 = vadd.f32 %v13414_v47, %v13443_v24 }
 0x3e2   : > { %v7451_v9 = vadd.f32 %v13465_v49, %v7412_v19  ;;  %v7518_v57 = vmul.f32 0.2, %v7454_v11  ;;  %v7392_v14 = vadd.f32 %v13453_v34, %v13450_v37  ;;  %vm7486_vm6 = vcmp.gt.f32.partialorder %v7454_v11, 0.0 }
 0x3e3   : > { %v10131_v13 = vpop.f32.mrf.mxu1  ;;  %vm7485_vm9 = vcmp.gt.f32.partialorder %v7453_v56, 0.0  ;;  %vm7480_vm12 = vcmp.gt.f32.partialorder %v13481_v4, 0.0 }
 0x3e4   : > { %v7395_v63 = vadd.f32 %v10131_v13, %v7005_v50  ;;  %v7516_v50 = vmul.f32 0.2, %v13500_v43  ;;  %vm7483_vm14 = vcmp.gt.f32.partialorder %v7451_v9, 0.0 }
 0x3e5   : > { %v7339_v61 = vpop.f32.mrf.mxu1 }
 0x3e6   : > { %v7394_v42 = vadd.f32 %v7339_v61, %v7004_v52  ;;  %v7427_v21 = vmul.f32 0.05270463, %v7395_v63  ;;  %v7517_v61 = vmul.f32 0.2, %v7453_v56  ;;  %v7389_v63 = vadd.f32 %v13390_v15, %v13432_v6 }
 0x3e7   : > { %v10134_v18 = vpop.f32.mrf.mxu1  ;;  %v7548_v15 = vsel %vm7484_vm5, %v13500_v43, %v7516_v50  ;;  %v7422_v6 = vmul.f32 0.05270463, %v7390_v39  ;;  %vm7479_vm5 = vcmp.gt.f32.partialorder %v13509_v0, 0.0 }
 0x3e8   : > { %v7397_v23 = vadd.f32 %v10134_v18, %v7007_v54  ;;  %v13503_v54 = vadd.f32 %v13465_v49, %v7406_v53  ;;  %v7426_v18 = vmul.f32 0.05270463, %v7394_v42  ;;  %v7466_v8 = vadd.f32 %v13465_v49, %v7427_v21  ;;  %v14158_v42 = vld [vmem:[#allocation59_spill] sm:$0xff] }
 0x3e9   : > { %v7349_v26 = vpop.f32.mrf.mxu1 }
 0x3ea   : > { %v7396_v36 = vadd.f32 %v7349_v26, %v7006_v12  ;;  %v7429_v45 = vmul.f32 0.05270463, %v7397_v23  ;;  %v13516_v12 = vadd.f32 %v13465_v49, %v7410_v55  ;;  %v7515_v55 = vmul.f32 0.2, %v7451_v9 }
 0x3eb   : > { %v10137_v27 = vpop.f32.mrf.mxu1  ;;  %v7550_v26 = vsel %vm7486_vm6, %v7454_v11, %v7518_v57  ;;  %v7465_v19 = vadd.f32 %v13465_v49, %v7426_v18  ;;  %vm7498_vm15 = vcmp.gt.f32.partialorder %v7466_v8, 0.0 }
 0x3ec   : > { %v7399_v38 = vadd.f32 %v10137_v27, %v7009_v44  ;;  %v7428_v13 = vmul.f32 0.05270463, %v7396_v36  ;;  %v7393_v44 = vadd.f32 %v13434_v17, %v13447_v62  ;;  %v7468_v53 = vadd.f32 %v13465_v49, %v7429_v45 }
 0x3ed   : > { %v7359_v5 = vpop.f32.mrf.mxu1  ;;  %v7391_v62 = vadd.f32 %v13396_v16, %v13440_v33  ;;  %v7424_v36 = vmul.f32 0.05270463, %v7392_v14  ;;  %v7549_v27 = vsel %vm7485_vm9, %v7453_v56, %v7517_v61  ;;  %v7530_v45 = vmul.f32 0.2, %v7466_v8 }
 0x3ee   : > { %v7431_v31 = vmul.f32 0.05270463, %v7399_v38  ;;  %v7398_v7 = vadd.f32 %v7359_v5, %v7008_v3  ;;  %v7467_v3 = vadd.f32 %v13465_v49, %v7428_v13  ;;  %v7425_v10 = vmul.f32 0.05270463, %v7393_v44 }
 0x3ef   : > { %v7532_v34 = vmul.f32 0.2, %v7468_v53  ;;  %vm7500_vm11 = vcmp.gt.f32.partialorder %v7468_v53, 0.0  ;;  %v7423_v47 = vmul.f32 0.05270463, %v7391_v62  ;;  %v7388_v5 = vadd.f32 %v14158_v42, %v13437_v35 }
 0x3f0   : > { %v7470_v2 = vadd.f32 %v13465_v49, %v7431_v31  ;;  %v7430_v52 = vmul.f32 0.05270463, %v7398_v7  ;;  %v7531_v33 = vmul.f32 0.2, %v7467_v3  ;;  %vm7499_vm13 = vcmp.gt.f32.partialorder %v7467_v3, 0.0  ;;  %v14159_v7 = vld [vmem:[#allocation58_spill] sm:$0xff] }
 0x3f1   : > { %v7464_v24 = vadd.f32 %v13465_v49, %v7425_v10  ;;  %v7564_v11 = vsel %vm7500_vm11, %v7468_v53, %v7532_v34  ;;  %v7513_v38 = vmul.f32 0.2, %v13516_v12  ;;  %v7463_v56 = vadd.f32 %v13465_v49, %v7424_v36  ;;  %v14162_v10 = vld [vmem:[#allocation57_spill] sm:$0xff] }
 0x3f2   : > { %v7469_v41 = vadd.f32 %v13465_v49, %v7430_v52  ;;  %vm7502_vm7 = vcmp.gt.f32.partialorder %v7470_v2, 0.0  ;;  %v7534_v17 = vmul.f32 0.2, %v7470_v2  ;;  %v7563_v13 = vsel %vm7499_vm13, %v7467_v3, %v7531_v33  ;;  %v14161_v3 = vld [vmem:[#allocation56_spill] sm:$0xff] }
 0x3f3   : > { %v7529_v31 = vmul.f32 0.2, %v7465_v19  ;;  %v7387_v44 = vadd.f32 %v14159_v7, %v13426_v25  ;;  %v7547_v21 = vsel %vm7483_vm14, %v7451_v9, %v7515_v55  ;;  %vm7497_vm0 = vcmp.gt.f32.partialorder %v7465_v19, 0.0 }
 0x3f4   : > { %v7566_v23 = vsel %vm7502_vm7, %v7470_v2, %v7534_v17  ;;  %vm7501_vm10 = vcmp.gt.f32.partialorder %v7469_v41, 0.0  ;;  %v7533_v37 = vmul.f32 0.2, %v7469_v41  ;;  %vm7481_vm2 = vcmp.gt.f32.partialorder %v13516_v12, 0.0  ;;  %v14160_v2 = vld [vmem:[#allocation26_spill] sm:$0xff] }
 0x3f5   : > { %9182 = vmatprep.subr.mxu0 %v7566_v23  ;;  %v7421_v35 = vmul.f32 0.05270463, %v7389_v63  ;;  %v7462_v57 = vadd.f32 %v13465_v49, %v7423_v47  ;;  %v7562_v43 = vsel %vm7498_vm15, %v7466_v8, %v7530_v45  ;;  %v7528_v50 = vmul.f32 0.2, %v7464_v24 }
 0x3f6   : > { %9183 = vmatpush3.msra.mxu0 %v7550_v26  ;;  %v7565_v16 = vsel %vm7501_vm10, %v7469_v41, %v7533_v37  ;;  %v7511_v53 = vmul.f32 0.2, %v13509_v0  ;;  %v7386_v52 = vadd.f32 %v14160_v2, %v13429_v22  ;;  %v7546_v25 = vsel %vm7482_vm8, %v13491_v28, %v13513_v29  ;;  %v7571_v2 = vld [vmem:[%s13733_s5 + $0x20] sm:$0xff] }
 0x3f7   : > { %9184 = vmatprep.subr.mxu0 %v7565_v16  ;;  %vm7496_vm3 = vcmp.gt.f32.partialorder %v7464_v24, 0.0  ;;  %v7420_v9 = vmul.f32 0.05270463, %v7388_v5  ;;  %v7461_v61 = vadd.f32 %v13465_v49, %v7422_v6  ;;  %v7561_v14 = vsel %vm7497_vm0, %v7465_v19, %v7529_v31 }
 0x3f8   : > { %9185 = vmatpush3.msra.mxu0 %v7549_v27  ;;  %v7527_v18 = vmul.f32 0.2, %v7463_v56  ;;  %v7385_v41 = vadd.f32 %v14161_v3, %v13420_v59  ;;  %v7545_v22 = vsel %vm7481_vm2, %v13516_v12, %v7513_v38  ;;  %vm7495_vm4 = vcmp.gt.f32.partialorder %v7463_v56, 0.0  ;;  %v7580_v3 = vld [vmem:[%s13733_s5 + $0x68] sm:$0xff] }
 0x3f9   : > { %9186 = vmatprep.subr.mxu0 %v7564_v11  ;;  %v7419_v17 = vmul.f32 0.05270463, %v7387_v44  ;;  %v7460_v28 = vadd.f32 %v13465_v49, %v7421_v35  ;;  %v7560_v29 = vsel %vm7496_vm3, %v7464_v24, %v7528_v50  ;;  %v7526_v62 = vmul.f32 0.2, %v7462_v57  ;;  %v7569_v50 = vld [vmem:[%s13733_s5 + $0x10] sm:$0xff] }
 0x3fa   : > { %9187 = vmatpush3.msra.mxu0 %v7548_v15  ;;  %v7384_v8 = vadd.f32 %v14162_v10, %v13423_v1  ;;  %v7544_v59 = vsel %vm7480_vm12, %v13481_v4, %v13506_v20  ;;  %vm7494_vm6 = vcmp.gt.f32.partialorder %v7462_v57, 0.0  ;;  %vm7478_vm7 = vcmp.gt.f32.partialorder %v13474_v51, 0.0 }
 0x3fb   : > { %9188 = vmatprep.subr.mxu0 %v7563_v13  ;;  %v7418_v12 = vmul.f32 0.05270463, %v7386_v52  ;;  %v7459_v23 = vadd.f32 %v13465_v49, %v7420_v9  ;;  %v7559_v37 = vsel %vm7495_vm4, %v7463_v56, %v7527_v18  ;;  %v7525_v34 = vmul.f32 0.2, %v7461_v61  ;;  %v7574_v52 = vld [vmem:[%s13733_s5 + $0x38] sm:$0xff]  ;;  %v7576_v9 = vld [vmem:[%s13733_s5 + $0x48] sm:$0xff] }
 0x3fc   : > { %9189 = vmatpush3.msra.mxu0 %v7547_v21  ;;  %v7509_v55 = vmul.f32 0.2, %v13503_v54  ;;  %v7543_v1 = vsel %vm7479_vm5, %v13509_v0, %v7511_v53  ;;  %vm7493_vm8 = vcmp.gt.f32.partialorder %v7461_v61, 0.0  ;;  %vm7477_vm9 = vcmp.gt.f32.partialorder %v13503_v54, 0.0  ;;  %v7572_v53 = vld [vmem:[%s13733_s5 + $0x28] sm:$0xff]  ;;  %v7577_v18 = vld [vmem:[%s13733_s5 + $0x50] sm:$0xff] }
 0x3fd   : > { %9190 = vmatprep.subr.mxu0 %v7562_v43  ;;  %v7417_v4 = vmul.f32 0.05270463, %v7385_v41  ;;  %v7458_v20 = vadd.f32 %v13465_v49, %v7419_v17  ;;  %v7558_v39 = vsel %vm7494_vm6, %v7462_v57, %v7526_v62  ;;  %v7524_v26 = vmul.f32 0.2, %v7460_v28  ;;  %v7570_v43 = vld [vmem:[%s13733_s5 + $0x18] sm:$0xff]  ;;  %v7579_v41 = vld [vmem:[%s13733_s5 + $0x60] sm:$0xff] }
 0x3fe   : > { %9191 = vmatpush3.msra.mxu0 %v7546_v25  ;;  %v7508_v36 = vmul.f32 0.2, %v13488_v60  ;;  %v7542_v19 = vsel %vm7478_vm7, %v13474_v51, %v13497_v40  ;;  %vm7492_vm10 = vcmp.gt.f32.partialorder %v7460_v28, 0.0  ;;  %vm7476_vm11 = vcmp.gt.f32.partialorder %v13488_v60, 0.0  ;;  %v7573_v25 = vld [vmem:[%s13733_s5 + $0x30] sm:$0xff] }
 0x3ff   : > { %9192 = vmatprep.subr.mxu0 %v7561_v14  ;;  %v7416_v0 = vmul.f32 0.05270463, %v7384_v8  ;;  %v7457_v16 = vadd.f32 %v13465_v49, %v7418_v12  ;;  %v7557_v33 = vsel %vm7493_vm8, %v7461_v61, %v7525_v34  ;;  %v7523_v63 = vmul.f32 0.2, %v7459_v23  ;;  %v7575_v61 = vld [vmem:[%s13733_s5 + $0x40] sm:$0xff]  ;;  %v7578_v14 = vld [vmem:[%s13733_s5 + $0x58] sm:$0xff] }
 0x400   : > { %9193 = vmatpush3.msra.mxu0 %v7545_v22  ;;  %v7441_v27 = vadd.f32 %v13465_v49, %v13485_v48  ;;  %v7507_v47 = vmul.f32 0.2, %v13494_v32  ;;  %v7541_v24 = vsel %vm7477_vm9, %v13503_v54, %v7509_v55  ;;  %vm7491_vm12 = vcmp.gt.f32.partialorder %v7459_v23, 0.0  ;;  %v7582_v22 = vld [vmem:[%s13733_s5 + $0x78] sm:$0xff]  ;;  %v7581_v17 = vld [vmem:[%s13733_s5 + $0x70] sm:$0xff] }
 0x401   : > { %9194 = vmatprep.subr.mxu0 %v7560_v29  ;;  %v7456_v51 = vadd.f32 %v13465_v49, %v7417_v4  ;;  %v7556_v40 = vsel %vm7492_vm10, %v7460_v28, %v7524_v26  ;;  %vm7475_vm13 = vcmp.gt.f32.partialorder %v13494_v32, 0.0  ;;  %v7522_v11 = vmul.f32 0.2, %v7458_v20 }
 0x402   : > { %9195 = vmatpush3.msra.mxu0 %v7544_v59  ;;  %v7440_v45 = vadd.f32 %v13465_v49, %v13460_v46  ;;  %v7506_v48 = vmul.f32 0.2, %v13477_v30  ;;  %v7540_v38 = vsel %vm7476_vm11, %v13488_v60, %v7508_v36  ;;  %vm7490_vm14 = vcmp.gt.f32.partialorder %v7458_v20, 0.0 }
 0x403   : > { %9196 = vmatprep.subr.mxu0 %v7559_v37  ;;  %v7455_v54 = vadd.f32 %v13465_v49, %v7416_v0  ;;  %v7555_v42 = vsel %vm7491_vm12, %v7459_v23, %v7523_v63  ;;  %vm7474_vm15 = vcmp.gt.f32.partialorder %v13477_v30, 0.0  ;;  %v7521_v5 = vmul.f32 0.2, %v7457_v16 }
 0x404   : > { %9197 = vmatpush3.msra.mxu0 %v7543_v1  ;;  %v7439_v15 = vadd.f32 %v13465_v49, %v13470_v58  ;;  %v7505_v6 = vmul.f32 0.2, %v7441_v27  ;;  %v7539_v46 = vsel %vm7475_vm13, %v13494_v32, %v7507_v47  ;;  %vm7489_vm0 = vcmp.gt.f32.partialorder %v7457_v16, 0.0 }
 0x405   : > { %9198 = vmatprep.subr.mxu0 %v7558_v39  ;;  %v7554_v56 = vsel %vm7490_vm14, %v7458_v20, %v7522_v11  ;;  %vm7473_vm2 = vcmp.gt.f32.partialorder %v7441_v27, 0.0  ;;  %v7520_v60 = vmul.f32 0.2, %v7456_v51  ;;  %v7504_v13 = vmul.f32 0.2, %v7440_v45 }
 0x406   : > { %9199 = vmatpush3.msra.mxu0 %v7542_v19  ;;  %v7538_v31 = vsel %vm7474_vm15, %v13477_v30, %v7506_v48  ;;  %vm7488_vm3 = vcmp.gt.f32.partialorder %v7456_v51, 0.0  ;;  %v7553_v7 = vsel %vm7489_vm0, %v7457_v16, %v7521_v5  ;;  %vm7472_vm4 = vcmp.gt.f32.partialorder %v7440_v45, 0.0  ;;  %v7567_v30 = vld [vmem:[%s13733_s5] sm:$0xff] }
 0x407   : > { %9200 = vmatprep.subr.mxu0 %v7557_v33  ;;  %v7519_v44 = vmul.f32 0.2, %v7455_v54  ;;  %v7503_v21 = vmul.f32 0.2, %v7439_v15  ;;  %v7537_v49 = vsel %vm7473_vm2, %v7441_v27, %v7505_v6  ;;  %vm7487_vm5 = vcmp.gt.f32.partialorder %v7455_v54, 0.0 }
 0x408   : > { %9201 = vmatpush3.msra.mxu0 %v7541_v24  ;;  %v7552_v58 = vsel %vm7488_vm3, %v7456_v51, %v7520_v60  ;;  %vm7471_vm6 = vcmp.gt.f32.partialorder %v7439_v15, 0.0  ;;  %v7536_v32 = vsel %vm7472_vm4, %v7440_v45, %v7504_v13 }
 0x409   : > { %9202 = vmatprep.subr.mxu0 %v7556_v40  ;;  %v7551_v35 = vsel %vm7487_vm5, %v7455_v54, %v7519_v44  ;;  %v7535_v57 = vsel %vm7471_vm6, %v7439_v15, %v7503_v21 }
 0x40a   : > { %9203 = vmatpush3.msra.mxu0 %v7540_v38 }
 0x40b   : > { %9204 = vmatprep.subr.mxu0 %v7555_v42 }
 0x40c   : > { %9205 = vmatpush3.msra.mxu0 %v7539_v46 }
 0x40d   : > { %9206 = vmatprep.subr.mxu0 %v7554_v56 }
 0x40e   : > { %9207 = vmatpush3.msra.mxu0 %v7538_v31 }
 0x40f   : > { %9208 = vmatprep.subr.mxu0 %v7553_v7 }
 0x410   : > { %9209 = vmatpush3.msra.mxu0 %v7537_v49 }
 0x411   : > { %9210 = vmatprep.subr.mxu0 %v7552_v58 }
 0x412   : > { %9211 = vmatpush3.msra.mxu0 %v7536_v32 }
 0x413   : > { %9212 = vmatprep.subr.mxu0 %v7551_v35 }
 0x414   : > { %9213 = vmatpush3.msra.mxu0 %v7535_v57 }
 0x415   : > { %7648 = vmatmul.mubr.f32.vlgmr.msra.gmra.mxu0 %v7567_v30 }
 0x416   : > { %7652 = vmatprep.mubr.f32.mxu0 %v7570_v43 }
 0x419   : > { %7653 = vmatmul.mubr.f32.gmra.mxu0 %v7569_v50 }
 0x41a   : > { %7657 = vmatprep.mubr.f32.mxu0 %v7572_v53 }
 0x41d   : > { %7658 = vmatmul.mubr.f32.gmra.mxu0 %v7571_v2 }
 0x41e   : > { %7662 = vmatprep.mubr.f32.mxu0 %v7574_v52 }
 0x421   : > { %7663 = vmatmul.mubr.f32.gmra.mxu0 %v7573_v25 }
 0x422   : > { %7667 = vmatprep.mubr.f32.mxu0 %v7576_v9 }
 0x425   : > { %7668 = vmatmul.mubr.f32.gmra.mxu0 %v7575_v61 }
 0x426   : > { %7672 = vmatprep.mubr.f32.mxu0 %v7578_v14 }
 0x429   : > { %7673 = vmatmul.mubr.f32.gmra.mxu0 %v7577_v18 }
 0x42a   : > { %7677 = vmatprep.mubr.f32.mxu0 %v7580_v3 }
 0x42d   : > { %7678 = vmatmul.mubr.f32.gmra.mxu0 %v7579_v41 }
 0x42e   : > { %7682 = vmatprep.mubr.f32.mxu0 %v7582_v22 }
 0x431   : > { %7683 = vmatmul.mubr.f32.gmra.mxu0 %v7581_v17 }
 0x4d5   : > { %v9214_v28 = vpop.f32.mrf.mxu0 }
 0x4d7   : > { %v9215_v29 = vpop.f32.mrf.mxu0 }
 0x4d8   : > { %v9216_v62 = vadd.f32 %v9215_v29, %v9214_v28 }
 0x4d9   : > { %v9217_v10 = vpop.f32.mrf.mxu0 }
 0x4da   : > { %7688 = vst.msk [vmem:[%s13659_s15] sm:$0xff] %vm3865_vm1, %v9216_v62 }
 0x4db   : > { %v9218_v8 = vpop.f32.mrf.mxu0 }
 0x4dc   : > { %v9219_v59 = vadd.f32 %v9218_v8, %v9217_v10 }
 0x4dd   : > { %v9220_v12 = vpop.f32.mrf.mxu0 }
 0x4de   : > { %7689 = vst.msk [vmem:[%s13659_s15 + $0x8] sm:$0xff] %vm3865_vm1, %v9219_v59 }
 0x4df   : > { %v9221_v23 = vpop.f32.mrf.mxu0 }
 0x4e0   : > { %v9222_v37 = vadd.f32 %v9221_v23, %v9220_v12 }
 0x4e1   : > { %v9223_v34 = vpop.f32.mrf.mxu0 }
 0x4e2   : > { %7690 = vst.msk [vmem:[%s13659_s15 + $0x10] sm:$0xff] %vm3865_vm1, %v9222_v37 }
 0x4e3   : > { %v9224_v55 = vpop.f32.mrf.mxu0 }
 0x4e4   : > { %v9225_v1 = vadd.f32 %v9224_v55, %v9223_v34 }
 0x4e5   : > { %v9226_v4 = vpop.f32.mrf.mxu0 }
 0x4e6   : > { %7691 = vst.msk [vmem:[%s13659_s15 + $0x18] sm:$0xff] %vm3865_vm1, %v9225_v1 }
 0x4e7   : > { %v9227_v20 = vpop.f32.mrf.mxu0 }
 0x4e8   : > { %v9228_v39 = vadd.f32 %v9227_v20, %v9226_v4 }
 0x4e9   : > { %v9229_v26 = vpop.f32.mrf.mxu0 }
 0x4ea   : > { %7692 = vst.msk [vmem:[%s13659_s15 + $0x20] sm:$0xff] %vm3865_vm1, %v9228_v39 }
 0x4eb   : > { %v9230_v36 = vpop.f32.mrf.mxu0 }
 0x4ec   : > { %v9231_v19 = vadd.f32 %v9230_v36, %v9229_v26 }
 0x4ed   : > { %v9232_v0 = vpop.f32.mrf.mxu0 }
 0x4ee   : > { %7693 = vst.msk [vmem:[%s13659_s15 + $0x28] sm:$0xff] %vm3865_vm1, %v9231_v19 }
 0x4ef   : > { %v9233_v16 = vpop.f32.mrf.mxu0 }
 0x4f0   : > { %v9234_v33 = vadd.f32 %v9233_v16, %v9232_v0 }
 0x4f1   : > { %v9235_v63 = vpop.f32.mrf.mxu0 }
 0x4f2   : > { %7694 = vst.msk [vmem:[%s13659_s15 + $0x30] sm:$0xff] %vm3865_vm1, %v9234_v33 }
 0x4f3   : > { %v9236_v27 = vpop.f32.mrf.mxu0 }
 0x4f4   : > { %v9237_v47 = vadd.f32 %v9236_v27, %v9235_v63 }
 0x4f6   : > { %7695 = vst.msk [vmem:[%s13659_s15 + $0x38] sm:$0xff] %vm3865_vm1, %v9237_v47 }
 0x4f7   : > { %10197 = shalt.err (!%p10194_p3)
}
 0x4f8   : > { %s10198_s10 = scalar_lea.hbm %s13680_s20, 1024  ;;  %s10202_s13 = scalar_lea.hbm %s13734_s6, 2048 }
 0x4f9   : > { %p10199_p4 = scmp.ne.s32.totalorder %s13680_s20, %s10198_s10  ;;  %p10203_p9 = scmp.lt.s32.totalorder %s13680_s20, %s13734_s6 }
 0x4fa   : > { %p10204_p10 = scmp.lt.s32.totalorder %s10202_s13, %s10198_s10 }
 0x4fb   : > { %p10200_p7 = pnand %p10199_p4, %p10323_p5 }
 0x4fc   : > { %p10205_p11 = por %p10204_p10, %p10203_p9 }
 0x4fd   : > { %p10201_p8 = pneg %p10200_p7 }
 0x4ff   : > { %p10206_p12 = pnand %p10205_p11, %p10201_p8 }
 0x501   : > { %10209 = shalt.err (!%p10206_p12)
}
 0x502   : > { %s10248_s16 = smov 128   ;;  %s10249_s18 = smov 8  }
 0x503   : > { %10141 = dma.vmem_to_hbm [thread:$0]  (%p10323_p5), %s13682_s17, 1024, %s13680_s20, %s13688_s25, %s10248_s16, %s10248_s16, %s10249_s18  }
 0x504 PF: > { %p10147_p13 = scmp.ge.s32.totalorder %s10244_s24, 2  ;;  %s7725_s19 = sand.u32 1, %s10232_s21  }
 0x505   : > { %s7726_s26 = scalar_lea.sflag [#allocation4], %s7725_s19 }
 0x506   : > { %p10144_p0 = pnand %p10147_p13, %p10327_p6 }
 0x508   : > { %p10145_p1 = pneg %p10144_p0 }
 0x50a   : > { %10227 = dma.done.wait (%p10145_p1), %s7726_s26, 1024  }
 0x50b   : > { %10229 = vsyncadd (%p10145_p1), %s7726_s26, 4294966272  ;;  %p16_p2 = scmp.ge.s32.totalorder %s10310_s27, 4   ;;  %s14163_s21 = smov %s10236_s22 }
 0x50c   : > { %s14164_s22 = smov %s10240_s23  ;;  %s14165_s23 = smov %s10321_s30 }
 0x50d   : > { %s14166_s24 = smov %s10310_s27  ;;  %18 = sbr.rel (!%p16_p2) target bundleno = 3 (0x3), region = 99 }
 0x512   :  { %7731 = vsyncpa [#allocation4], 1 }
 0x513   :  { %7733 = vsyncpa [#allocation4 + $0x1], 1 }

</bundles_post_ra>
